<compile_context>
chip_gen: v7x
topology: tpu7x:2x2x1
jax: 0.10.0
libtpu: 0.0.40
codegen_flags: <defaults>
</compile_context>

<pallas_src>
import functools

import jax
import jax.numpy as jnp
from jax.experimental import pallas as pl
from jax.experimental.pallas import tpu as pltpu

# ---- synthetic GPT-2 config (small stand-in for hidden=768, 12 layers) ----
VOCAB = 64
MAX_POS = 16
HIDDEN = 32
N_HEAD = 4
N_LAYER = 2
LN_EPS = 1e-5
N_OUT = 7          # linear_out (1) + linear_aux_out (6)
OUT_PAD = 128      # lane-dense padded output width
NEG_INF = -1e4     # GPT-2 masked-fill value


# --------------------------- in-kernel math helpers ---------------------------
def _layer_norm(x, g, b):
    mu = jnp.mean(x, axis=-1, keepdims=True)
    var = jnp.mean(jnp.square(x - mu), axis=-1, keepdims=True)
    return (x - mu) * jax.lax.rsqrt(var + LN_EPS) * g + b


def _gelu_new(x):
    # GPT-2 "gelu_new" (tanh approximation)
    return 0.5 * x * (1.0 + jnp.tanh(0.7978845608028654 * (x + 0.044715 * x * x * x)))


# ------------------------------- fused Pallas kernel -------------------------------
def gpt2_fused_kernel(ids_ref, wte_ref, wpe_ref, bias_ref,
                      ln1_g, ln1_b, w_q, b_q, w_k, b_k, w_v, b_v,
                      w_proj_h, b_proj, ln2_g, ln2_b,
                      w_fc, b_fc, w_fc2, b_fc2,
                      lnf_g, lnf_b, w_head_avg, w_head_max, b_heads,
                      o_ref, *, n_head):
    BS = ids_ref.shape[0]
    vocab, H = wte_ref.shape
    S = wpe_ref.shape[0]
    B = BS // S
    L = ln1_g.shape[0]
    hd = H // n_head
    scale = 1.0 / (hd ** 0.5)

    # ---- fused embedding: one-hot(ids) @ wte on the MXU + positional add ----
    ids = ids_ref[...]                                               # (BS, 1) i32
    onehot = (ids == jax.lax.broadcasted_iota(jnp.int32, (BS, vocab), 1)
              ).astype(jnp.float32)                                  # (BS, V)
    x = jnp.dot(onehot, wte_ref[...], preferred_element_type=jnp.float32)
    x = (x.reshape(B, S, H) + wpe_ref[...][None]).reshape(BS, H)     # (BS, H)

    bias = bias_ref[...][None]                                       # (1, S, S) additive

    # ---- transformer blocks: single in-kernel unrolled layer loop ----
    for l in range(L):
        # self-attention (pre-LN); q/k/v as separate lane-aligned 2-D matmuls
        h = _layer_norm(x, ln1_g[l], ln1_b[l])
        q = jnp.dot(h, w_q[l], preferred_element_type=jnp.float32) + b_q[l]
        k = jnp.dot(h, w_k[l], preferred_element_type=jnp.float32) + b_k[l]
        v = jnp.dot(h, w_v[l], preferred_element_type=jnp.float32) + b_v[l]

        def to_heads(t):   # (BS, H) -> (n_head*B, S, hd), fused batch n = head*B + b
            return jnp.concatenate(
                [t[:, hh * hd:(hh + 1) * hd].reshape(B, S, hd)
                 for hh in range(n_head)], axis=0)

        q_f, k_f, v_f = to_heads(q), to_heads(k), to_heads(v)

        s = jnp.einsum('nqd,nkd->nqk', q_f, k_f,
                       preferred_element_type=jnp.float32) * scale
        s = s + bias                                    # additive causal mask
        s = s - jnp.max(s, axis=-1, keepdims=True)
        p = jnp.exp(s)
        p = p * pl.reciprocal(jnp.sum(p, axis=-1, keepdims=True), approx=True)
        ctx_f = jnp.einsum('nqk,nkd->nqd', p, v_f,
                           preferred_element_type=jnp.float32)   # (n_head*B, S, hd)

        # per-head output projection, accumulated (== concat(heads) @ W_proj)
        attn = b_proj[l]
        for hh in range(n_head):
            ctx_hh = ctx_f[hh * B:(hh + 1) * B].reshape(BS, hd)
            attn = attn + jnp.dot(ctx_hh, w_proj_h[l, hh],
                                  preferred_element_type=jnp.float32)
        x = x + attn

        # MLP (pre-LN); w_fc keeps the lane-dense 4H=128 inner dim
        h2 = _layer_norm(x, ln2_g[l], ln2_b[l])
        f = _gelu_new(jnp.dot(h2, w_fc[l], preferred_element_type=jnp.float32)
                      + b_fc[l])
        x = x + jnp.dot(f, w_fc2[l], preferred_element_type=jnp.float32) + b_fc2[l]

    # ---- epilogue: ln_f, avg/max pooling over sequence, classification heads ----
    hf = _layer_norm(x, lnf_g[...], lnf_b[...]).reshape(B, S, H)
    avg_pool = jnp.mean(hf, axis=1)                     # torch.mean(hidden, 1)
    max_pool = jnp.max(hf, axis=1)                      # torch.max(hidden, 1).values
    # self.dropout is identity in eval; cat([avg,max]) @ W == avg@W[:H] + max@W[H:]
    o_ref[...] = (jnp.dot(avg_pool, w_head_avg[...], preferred_element_type=jnp.float32)
                  + jnp.dot(max_pool, w_head_max[...], preferred_element_type=jnp.float32)
                  + b_heads[...])


# ------------------------------- kernel wrapper -------------------------------
_STACKED_KEYS = ['ln1_g', 'ln1_b', 'w_q', 'b_q', 'w_k', 'b_k', 'w_v', 'b_v',
                 'w_proj_h', 'b_proj', 'ln2_g', 'ln2_b',
                 'w_fc', 'b_fc', 'w_fc2', 'b_fc2']


@jax.jit
def forward(params, input_ids):
    B, S = input_ids.shape
    ids = input_ids.reshape(B * S, 1).astype(jnp.int32)
    wpe = params['wpe'][:S]                              # (S, H), static slice
    # additive causal bias (0 keep / -1e4 mask), built once, reused every layer
    row = jnp.arange(S, dtype=jnp.int32)
    causal_bias = jnp.where(row[:, None] >= row[None, :], 0.0, NEG_INF
                            ).astype(jnp.float32)

    stk = params['stacked']
    args = ([ids, params['wte'], wpe, causal_bias]
            + [stk[k] for k in _STACKED_KEYS]
            + [params['lnf_g'], params['lnf_b'],
               params['w_head_avg'], params['w_head_max'], params['b_heads']])

    out = pl.pallas_call(
        functools.partial(gpt2_fused_kernel, n_head=N_HEAD),
        in_specs=[pl.BlockSpec(memory_space=pltpu.MemorySpace.VMEM) for _ in args],
        out_specs=pl.BlockSpec(memory_space=pltpu.MemorySpace.VMEM),
        out_shape=jax.ShapeDtypeStruct((B, OUT_PAD), jnp.float32),
        compiler_params=pltpu.CompilerParams(
            vmem_limit_bytes=32 * 1024 * 1024),
    )(*args)
    return out[:, :N_OUT]


# ------------------------------ pure-JAX reference ------------------------------
def ref_forward(params, input_ids):
    B, S = input_ids.shape
    H = HIDDEN
    hd = H // N_HEAD
    x = params['wte'][input_ids] + params['wpe'][jnp.arange(S)][None, :, :]
    causal = (jnp.arange(S)[None, :] <= jnp.arange(S)[:, None])[None]
    stk = params['stacked']
    for i in range(N_LAYER):
        blk = {k: v[i] for k, v in stk.items()}
        h = _layer_norm(x, blk['ln1_g'], blk['ln1_b'])
        q = jnp.einsum('bsh,hk->bsk', h, blk['w_q'],
                       preferred_element_type=jnp.float32) + blk['b_q']
        k = jnp.einsum('bsh,hk->bsk', h, blk['w_k'],
                       preferred_element_type=jnp.float32) + blk['b_k']
        v = jnp.einsum('bsh,hk->bsk', h, blk['w_v'],
                       preferred_element_type=jnp.float32) + blk['b_v']
        ctx = []
        for hh in range(N_HEAD):
            q_h, k_h, v_h = (t[:, :, hh * hd:(hh + 1) * hd] for t in (q, k, v))
            s = jnp.einsum('bqd,bkd->bqk', q_h, k_h,
                           preferred_element_type=jnp.float32) / (hd ** 0.5)
            s = jnp.where(causal, s, NEG_INF)
            p = jax.nn.softmax(s, axis=-1)
            ctx.append(jnp.einsum('bqk,bkd->bqd', p, v_h,
                                  preferred_element_type=jnp.float32))
        ctx = jnp.concatenate(ctx, axis=-1)
        w_proj = blk['w_proj_h'].reshape(H, H)
        x = x + jnp.einsum('bsh,hk->bsk', ctx, w_proj,
                           preferred_element_type=jnp.float32) + blk['b_proj']
        h2 = _layer_norm(x, blk['ln2_g'], blk['ln2_b'])
        f = _gelu_new(jnp.einsum('bsh,hk->bsk', h2, blk['w_fc'],
                                 preferred_element_type=jnp.float32) + blk['b_fc'])
        x = x + jnp.einsum('bsk,kh->bsh', f, blk['w_fc2'],
                           preferred_element_type=jnp.float32) + blk['b_fc2']
    hfin = _layer_norm(x, params['lnf_g'], params['lnf_b'])
    avg = jnp.mean(hfin, axis=1)
    mx = jnp.max(hfin, axis=1)
    out = (jnp.dot(avg, params['w_head_avg'], preferred_element_type=jnp.float32)
           + jnp.dot(mx, params['w_head_max'], preferred_element_type=jnp.float32)
           + params['b_heads'])
    return out[:, :N_OUT]


# --------------------------------- param init ---------------------------------
def init_params(key):
    keys = iter(jax.random.split(key, 64))

    def nrm(shape, std=0.02):
        return (std * jax.random.normal(next(keys), shape)).astype(jnp.float32)

    L, H, NH = N_LAYER, HIDDEN, N_HEAD
    hd = H // NH
    params = {
        'wte': nrm((VOCAB, H)),
        'wpe': nrm((MAX_POS, H), 0.01),
        'lnf_g': 1.0 + nrm((1, H), 0.02),
        'lnf_b': nrm((1, H), 0.02),
        'stacked': dict(
            ln1_g=1.0 + nrm((L, 1, H), 0.02),
            ln1_b=nrm((L, 1, H), 0.02),
            # QKV stored as three separate (in, out) Conv1D-style weights
            w_q=nrm((L, H, H)), b_q=nrm((L, 1, H), 0.02),
            w_k=nrm((L, H, H)), b_k=nrm((L, 1, H), 0.02),
            w_v=nrm((L, H, H)), b_v=nrm((L, 1, H), 0.02),
            # c_proj stored per-head: (L, n_head, hd, H); full W = reshape(H, H)
            w_proj_h=nrm((L, NH, hd, H)), b_proj=nrm((L, 1, H), 0.02),
            ln2_g=1.0 + nrm((L, 1, H), 0.02),
            ln2_b=nrm((L, 1, H), 0.02),
            w_fc=nrm((L, H, 4 * H)), b_fc=nrm((L, 1, 4 * H), 0.02),
            w_fc2=nrm((L, 4 * H, H)), b_fc2=nrm((L, 1, H), 0.02),
        ),
    }
    # linear_out (2H -> 1) ++ linear_aux_out (2H -> 6), zero-padded to 128 lanes,
    # and split into the avg/max halves so the kernel avoids a 2H concat.
    w_out = nrm((2 * H, 1))
    w_aux = nrm((2 * H, 6))
    w_heads = jnp.pad(jnp.concatenate([w_out, w_aux], axis=1),
                      ((0, 0), (0, OUT_PAD - N_OUT)))                # (2H, 128)
    params['w_head_avg'] = w_heads[:H]                               # (H, 128)
    params['w_head_max'] = w_heads[H:]                               # (H, 128)
    params['b_heads'] = jnp.pad(nrm((1, N_OUT), 0.02),
                                ((0, 0), (0, OUT_PAD - N_OUT)))      # (1, 128)
    return params


# ------------------------------------- main -------------------------------------
if __name__ == "__main__":
    root = jax.random.PRNGKey(0)
    pkey, dkey = jax.random.split(root)
    params = init_params(pkey)

    B, S = 2, 8
    input_ids = jax.random.randint(dkey, (B, S), 0, VOCAB, dtype=jnp.int32)

    out = jax.block_until_ready(forward(params, input_ids))

    assert out.shape == (B, N_OUT), out.shape
    ref = ref_forward(params, input_ids)
    assert bool(jnp.all(jnp.isfinite(out)))
    assert bool(jnp.allclose(out, ref, atol=5e-3, rtol=5e-3)), float(
        jnp.max(jnp.abs(out - ref)))

    print("KERNEL_OK")
</pallas_src>

<mosaic_0001>
module attributes {stable_mosaic.version = 11 : i64} {
  func.func @gpt2_fused_kernel(%arg0: memref<16x1xi32, #tpu.memory_space<vmem>>, %arg1: memref<64x32xf32, #tpu.memory_space<vmem>>, %arg2: memref<8x32xf32, #tpu.memory_space<vmem>>, %arg3: memref<8x8xf32, #tpu.memory_space<vmem>>, %arg4: memref<2x1x32xf32, #tpu.memory_space<vmem>>, %arg5: memref<2x1x32xf32, #tpu.memory_space<vmem>>, %arg6: memref<2x32x32xf32, #tpu.memory_space<vmem>>, %arg7: memref<2x1x32xf32, #tpu.memory_space<vmem>>, %arg8: memref<2x32x32xf32, #tpu.memory_space<vmem>>, %arg9: memref<2x1x32xf32, #tpu.memory_space<vmem>>, %arg10: memref<2x32x32xf32, #tpu.memory_space<vmem>>, %arg11: memref<2x1x32xf32, #tpu.memory_space<vmem>>, %arg12: memref<2x4x8x32xf32, #tpu.memory_space<vmem>>, %arg13: memref<2x1x32xf32, #tpu.memory_space<vmem>>, %arg14: memref<2x1x32xf32, #tpu.memory_space<vmem>>, %arg15: memref<2x1x32xf32, #tpu.memory_space<vmem>>, %arg16: memref<2x32x128xf32, #tpu.memory_space<vmem>>, %arg17: memref<2x1x128xf32, #tpu.memory_space<vmem>>, %arg18: memref<2x128x32xf32, #tpu.memory_space<vmem>>, %arg19: memref<2x1x32xf32, #tpu.memory_space<vmem>>, %arg20: memref<1x32xf32, #tpu.memory_space<vmem>>, %arg21: memref<1x32xf32, #tpu.memory_space<vmem>>, %arg22: memref<32x128xf32, #tpu.memory_space<vmem>>, %arg23: memref<32x128xf32, #tpu.memory_space<vmem>>, %arg24: memref<1x128xf32, #tpu.memory_space<vmem>>, %arg25: memref<2x128xf32, #tpu.memory_space<vmem>>) attributes {dimension_semantics = [], scalar_prefetch = 0 : i64, scratch_operands = 0 : i64, tpu.core_type = #tpu.core_type<tc>} {
    %c0 = arith.constant 0 : index
    %c0_0 = arith.constant 0 : index
    %0 = vector.load %arg0[%c0, %c0_0] : memref<16x1xi32, #tpu.memory_space<vmem>>, vector<16x1xi32>
    %1 = tpu.iota {dimensions = array<i32: 1>} : vector<16x64xi32>
    %2 = vector.broadcast %0 : vector<16x1xi32> to vector<16x64xi32>
    %3 = arith.cmpi eq, %2, %1 : vector<16x64xi32>
    %4 = arith.extui %3 : vector<16x64xi1> to vector<16x64xi32>
    %5 = arith.sitofp %4 : vector<16x64xi32> to vector<16x64xf32>
    %c0_1 = arith.constant 0 : index
    %c0_2 = arith.constant 0 : index
    %6 = vector.load %arg1[%c0_1, %c0_2] : memref<64x32xf32, #tpu.memory_space<vmem>>, vector<64x32xf32>
    %cst = arith.constant dense<0.000000e+00> : vector<16x32xf32>
    %7 = tpu.matmul %5, %6, %cst {dimension_numbers = #tpu.dot_dimension_numbers<[1], [0], [0], [1], [0, 0, 1, 1], [], []>} : vector<16x64xf32>, vector<64x32xf32>, vector<16x32xf32> -> vector<16x32xf32>
    %8 = vector.shape_cast %7 : vector<16x32xf32> to vector<2x8x32xf32>
    %c0_3 = arith.constant 0 : index
    %c0_4 = arith.constant 0 : index
    %9 = vector.load %arg2[%c0_3, %c0_4] : memref<8x32xf32, #tpu.memory_space<vmem>>, vector<8x32xf32>
    %10 = vector.shape_cast %9 : vector<8x32xf32> to vector<1x8x32xf32>
    %11 = vector.broadcast %10 : vector<1x8x32xf32> to vector<2x8x32xf32>
    %12 = arith.addf %8, %11 : vector<2x8x32xf32>
    %13 = vector.shape_cast %12 : vector<2x8x32xf32> to vector<16x32xf32>
    %c0_5 = arith.constant 0 : index
    %c0_6 = arith.constant 0 : index
    %14 = vector.load %arg3[%c0_5, %c0_6] : memref<8x8xf32, #tpu.memory_space<vmem>>, vector<8x8xf32>
    %15 = vector.shape_cast %14 : vector<8x8xf32> to vector<1x8x8xf32>
    %c0_7 = arith.constant 0 : index
    %c0_8 = arith.constant 0 : index
    %c0_9 = arith.constant 0 : index
    %16 = vector.load %arg4[%c0_7, %c0_8, %c0_9] : memref<2x1x32xf32, #tpu.memory_space<vmem>>, vector<1x1x32xf32>
    %17 = vector.shape_cast %16 : vector<1x1x32xf32> to vector<1x32xf32>
    %c0_10 = arith.constant 0 : index
    %c0_11 = arith.constant 0 : index
    %c0_12 = arith.constant 0 : index
    %18 = vector.load %arg5[%c0_10, %c0_11, %c0_12] : memref<2x1x32xf32, #tpu.memory_space<vmem>>, vector<1x1x32xf32>
    %19 = vector.shape_cast %18 : vector<1x1x32xf32> to vector<1x32xf32>
    %cst_13 = arith.constant dense<0.000000e+00> : vector<16xf32>
    %20 = vector.multi_reduction <add>, %13, %cst_13 [1] : vector<16x32xf32> to vector<16xf32>
    %21 = vector.shape_cast %20 : vector<16xf32> to vector<16x1xf32>
    %cst_14 = arith.constant 3.200000e+01 : f32
    %22 = vector.broadcast %cst_14 : f32 to vector<16x1xf32>
    %23 = arith.divf %21, %22 : vector<16x1xf32>
    %24 = vector.broadcast %23 : vector<16x1xf32> to vector<16x32xf32>
    %25 = arith.subf %13, %24 : vector<16x32xf32>
    %26 = arith.mulf %25, %25 : vector<16x32xf32>
    %cst_15 = arith.constant dense<0.000000e+00> : vector<16xf32>
    %27 = vector.multi_reduction <add>, %26, %cst_15 [1] : vector<16x32xf32> to vector<16xf32>
    %28 = vector.shape_cast %27 : vector<16xf32> to vector<16x1xf32>
    %cst_16 = arith.constant 3.200000e+01 : f32
    %29 = vector.broadcast %cst_16 : f32 to vector<16x1xf32>
    %30 = arith.divf %28, %29 : vector<16x1xf32>
    %31 = vector.broadcast %23 : vector<16x1xf32> to vector<16x32xf32>
    %32 = arith.subf %13, %31 : vector<16x32xf32>
    %cst_17 = arith.constant 9.99999974E-6 : f32
    %33 = vector.broadcast %cst_17 : f32 to vector<16x1xf32>
    %34 = arith.addf %30, %33 : vector<16x1xf32>
    %35 = math.rsqrt %34 : vector<16x1xf32>
    %36 = vector.broadcast %35 : vector<16x1xf32> to vector<16x32xf32>
    %37 = arith.mulf %32, %36 : vector<16x32xf32>
    %38 = vector.broadcast %17 : vector<1x32xf32> to vector<16x32xf32>
    %39 = arith.mulf %37, %38 : vector<16x32xf32>
    %40 = vector.broadcast %19 : vector<1x32xf32> to vector<16x32xf32>
    %41 = arith.addf %39, %40 : vector<16x32xf32>
    %c0_18 = arith.constant 0 : index
    %c0_19 = arith.constant 0 : index
    %c0_20 = arith.constant 0 : index
    %42 = vector.load %arg6[%c0_18, %c0_19, %c0_20] : memref<2x32x32xf32, #tpu.memory_space<vmem>>, vector<1x32x32xf32>
    %43 = vector.shape_cast %42 : vector<1x32x32xf32> to vector<32x32xf32>
    %cst_21 = arith.constant dense<0.000000e+00> : vector<16x32xf32>
    %44 = tpu.matmul %41, %43, %cst_21 {dimension_numbers = #tpu.dot_dimension_numbers<[1], [0], [0], [1], [0, 0, 1, 1], [], []>} : vector<16x32xf32>, vector<32x32xf32>, vector<16x32xf32> -> vector<16x32xf32>
    %c0_22 = arith.constant 0 : index
    %c0_23 = arith.constant 0 : index
    %c0_24 = arith.constant 0 : index
    %45 = vector.load %arg7[%c0_22, %c0_23, %c0_24] : memref<2x1x32xf32, #tpu.memory_space<vmem>>, vector<1x1x32xf32>
    %46 = vector.shape_cast %45 : vector<1x1x32xf32> to vector<1x32xf32>
    %47 = vector.broadcast %46 : vector<1x32xf32> to vector<16x32xf32>
    %48 = arith.addf %44, %47 : vector<16x32xf32>
    %c0_25 = arith.constant 0 : index
    %c0_26 = arith.constant 0 : index
    %c0_27 = arith.constant 0 : index
    %49 = vector.load %arg8[%c0_25, %c0_26, %c0_27] : memref<2x32x32xf32, #tpu.memory_space<vmem>>, vector<1x32x32xf32>
    %50 = vector.shape_cast %49 : vector<1x32x32xf32> to vector<32x32xf32>
    %cst_28 = arith.constant dense<0.000000e+00> : vector<16x32xf32>
    %51 = tpu.matmul %41, %50, %cst_28 {dimension_numbers = #tpu.dot_dimension_numbers<[1], [0], [0], [1], [0, 0, 1, 1], [], []>} : vector<16x32xf32>, vector<32x32xf32>, vector<16x32xf32> -> vector<16x32xf32>
    %c0_29 = arith.constant 0 : index
    %c0_30 = arith.constant 0 : index
    %c0_31 = arith.constant 0 : index
    %52 = vector.load %arg9[%c0_29, %c0_30, %c0_31] : memref<2x1x32xf32, #tpu.memory_space<vmem>>, vector<1x1x32xf32>
    %53 = vector.shape_cast %52 : vector<1x1x32xf32> to vector<1x32xf32>
    %54 = vector.broadcast %53 : vector<1x32xf32> to vector<16x32xf32>
    %55 = arith.addf %51, %54 : vector<16x32xf32>
    %c0_32 = arith.constant 0 : index
    %c0_33 = arith.constant 0 : index
    %c0_34 = arith.constant 0 : index
    %56 = vector.load %arg10[%c0_32, %c0_33, %c0_34] : memref<2x32x32xf32, #tpu.memory_space<vmem>>, vector<1x32x32xf32>
    %57 = vector.shape_cast %56 : vector<1x32x32xf32> to vector<32x32xf32>
    %cst_35 = arith.constant dense<0.000000e+00> : vector<16x32xf32>
    %58 = tpu.matmul %41, %57, %cst_35 {dimension_numbers = #tpu.dot_dimension_numbers<[1], [0], [0], [1], [0, 0, 1, 1], [], []>} : vector<16x32xf32>, vector<32x32xf32>, vector<16x32xf32> -> vector<16x32xf32>
    %c0_36 = arith.constant 0 : index
    %c0_37 = arith.constant 0 : index
    %c0_38 = arith.constant 0 : index
    %59 = vector.load %arg11[%c0_36, %c0_37, %c0_38] : memref<2x1x32xf32, #tpu.memory_space<vmem>>, vector<1x1x32xf32>
    %60 = vector.shape_cast %59 : vector<1x1x32xf32> to vector<1x32xf32>
    %61 = vector.broadcast %60 : vector<1x32xf32> to vector<16x32xf32>
    %62 = arith.addf %58, %61 : vector<16x32xf32>
    %63 = vector.extract_strided_slice %48 {offsets = [0, 0], sizes = [16, 8], strides = [1, 1]} : vector<16x32xf32> to vector<16x8xf32>
    %64 = vector.shape_cast %63 : vector<16x8xf32> to vector<2x8x8xf32>
    %65 = vector.extract_strided_slice %48 {offsets = [0, 8], sizes = [16, 8], strides = [1, 1]} : vector<16x32xf32> to vector<16x8xf32>
    %66 = vector.shape_cast %65 : vector<16x8xf32> to vector<2x8x8xf32>
    %67 = vector.extract_strided_slice %48 {offsets = [0, 16], sizes = [16, 8], strides = [1, 1]} : vector<16x32xf32> to vector<16x8xf32>
    %68 = vector.shape_cast %67 : vector<16x8xf32> to vector<2x8x8xf32>
    %69 = vector.extract_strided_slice %48 {offsets = [0, 24], sizes = [16, 8], strides = [1, 1]} : vector<16x32xf32> to vector<16x8xf32>
    %70 = vector.shape_cast %69 : vector<16x8xf32> to vector<2x8x8xf32>
    %71 = tpu.concatenate %64, %66, %68, %70 in 0 : vector<2x8x8xf32>, vector<2x8x8xf32>, vector<2x8x8xf32>, vector<2x8x8xf32> -> vector<8x8x8xf32>
    %72 = vector.extract_strided_slice %55 {offsets = [0, 0], sizes = [16, 8], strides = [1, 1]} : vector<16x32xf32> to vector<16x8xf32>
    %73 = vector.shape_cast %72 : vector<16x8xf32> to vector<2x8x8xf32>
    %74 = vector.extract_strided_slice %55 {offsets = [0, 8], sizes = [16, 8], strides = [1, 1]} : vector<16x32xf32> to vector<16x8xf32>
    %75 = vector.shape_cast %74 : vector<16x8xf32> to vector<2x8x8xf32>
    %76 = vector.extract_strided_slice %55 {offsets = [0, 16], sizes = [16, 8], strides = [1, 1]} : vector<16x32xf32> to vector<16x8xf32>
    %77 = vector.shape_cast %76 : vector<16x8xf32> to vector<2x8x8xf32>
    %78 = vector.extract_strided_slice %55 {offsets = [0, 24], sizes = [16, 8], strides = [1, 1]} : vector<16x32xf32> to vector<16x8xf32>
    %79 = vector.shape_cast %78 : vector<16x8xf32> to vector<2x8x8xf32>
    %80 = tpu.concatenate %73, %75, %77, %79 in 0 : vector<2x8x8xf32>, vector<2x8x8xf32>, vector<2x8x8xf32>, vector<2x8x8xf32> -> vector<8x8x8xf32>
    %81 = vector.extract_strided_slice %62 {offsets = [0, 0], sizes = [16, 8], strides = [1, 1]} : vector<16x32xf32> to vector<16x8xf32>
    %82 = vector.shape_cast %81 : vector<16x8xf32> to vector<2x8x8xf32>
    %83 = vector.extract_strided_slice %62 {offsets = [0, 8], sizes = [16, 8], strides = [1, 1]} : vector<16x32xf32> to vector<16x8xf32>
    %84 = vector.shape_cast %83 : vector<16x8xf32> to vector<2x8x8xf32>
    %85 = vector.extract_strided_slice %62 {offsets = [0, 16], sizes = [16, 8], strides = [1, 1]} : vector<16x32xf32> to vector<16x8xf32>
    %86 = vector.shape_cast %85 : vector<16x8xf32> to vector<2x8x8xf32>
    %87 = vector.extract_strided_slice %62 {offsets = [0, 24], sizes = [16, 8], strides = [1, 1]} : vector<16x32xf32> to vector<16x8xf32>
    %88 = vector.shape_cast %87 : vector<16x8xf32> to vector<2x8x8xf32>
    %89 = tpu.concatenate %82, %84, %86, %88 in 0 : vector<2x8x8xf32>, vector<2x8x8xf32>, vector<2x8x8xf32>, vector<2x8x8xf32> -> vector<8x8x8xf32>
    "tpu.trace_start"() <{level = 10 : i32, message = "nqd,nkd->nqk"}> : () -> ()
    %cst_39 = arith.constant dense<0.000000e+00> : vector<8x8x8xf32>
    %90 = tpu.matmul %71, %80, %cst_39 {dimension_numbers = #tpu.dot_dimension_numbers<[2], [2], [1], [1], [0, 0, 0, 1, 1, 1], [0], [0]>} : vector<8x8x8xf32>, vector<8x8x8xf32>, vector<8x8x8xf32> -> vector<8x8x8xf32>
    "tpu.trace_stop"() : () -> ()
    %cst_40 = arith.constant 0.353553385 : f32
    %91 = vector.broadcast %cst_40 : f32 to vector<8x8x8xf32>
    %92 = arith.mulf %90, %91 : vector<8x8x8xf32>
    %93 = vector.broadcast %15 : vector<1x8x8xf32> to vector<8x8x8xf32>
    %94 = arith.addf %92, %93 : vector<8x8x8xf32>
    %cst_41 = arith.constant dense<0xFF800000> : vector<8x8xf32>
    %95 = vector.multi_reduction <maximumf>, %94, %cst_41 [2] : vector<8x8x8xf32> to vector<8x8xf32>
    %96 = vector.shape_cast %95 : vector<8x8xf32> to vector<8x8x1xf32>
    %97 = vector.broadcast %96 : vector<8x8x1xf32> to vector<8x8x8xf32>
    %98 = arith.subf %94, %97 : vector<8x8x8xf32>
    %99 = math.exp %98 : vector<8x8x8xf32>
    %cst_42 = arith.constant dense<0.000000e+00> : vector<8x8xf32>
    %100 = vector.multi_reduction <add>, %99, %cst_42 [2] : vector<8x8x8xf32> to vector<8x8xf32>
    %101 = vector.shape_cast %100 : vector<8x8xf32> to vector<8x8x1xf32>
    %102 = tpu.reciprocal %101 {approx = true} : vector<8x8x1xf32> -> vector<8x8x1xf32>
    %103 = vector.broadcast %102 : vector<8x8x1xf32> to vector<8x8x8xf32>
    %104 = arith.mulf %99, %103 : vector<8x8x8xf32>
    "tpu.trace_start"() <{level = 10 : i32, message = "nqk,nkd->nqd"}> : () -> ()
    %cst_43 = arith.constant dense<0.000000e+00> : vector<8x8x8xf32>
    %105 = tpu.matmul %104, %89, %cst_43 {dimension_numbers = #tpu.dot_dimension_numbers<[2], [1], [1], [2], [0, 0, 0, 1, 1, 2], [0], [0]>} : vector<8x8x8xf32>, vector<8x8x8xf32>, vector<8x8x8xf32> -> vector<8x8x8xf32>
    "tpu.trace_stop"() : () -> ()
    %c0_44 = arith.constant 0 : index
    %c0_45 = arith.constant 0 : index
    %c0_46 = arith.constant 0 : index
    %106 = vector.load %arg13[%c0_44, %c0_45, %c0_46] : memref<2x1x32xf32, #tpu.memory_space<vmem>>, vector<1x1x32xf32>
    %107 = vector.shape_cast %106 : vector<1x1x32xf32> to vector<1x32xf32>
    %108 = vector.extract_strided_slice %105 {offsets = [0, 0, 0], sizes = [2, 8, 8], strides = [1, 1, 1]} : vector<8x8x8xf32> to vector<2x8x8xf32>
    %109 = vector.shape_cast %108 : vector<2x8x8xf32> to vector<16x8xf32>
    %c0_47 = arith.constant 0 : index
    %c0_48 = arith.constant 0 : index
    %c0_49 = arith.constant 0 : index
    %c0_50 = arith.constant 0 : index
    %110 = vector.load %arg12[%c0_47, %c0_48, %c0_49, %c0_50] : memref<2x4x8x32xf32, #tpu.memory_space<vmem>>, vector<1x1x8x32xf32>
    %111 = vector.shape_cast %110 : vector<1x1x8x32xf32> to vector<8x32xf32>
    %cst_51 = arith.constant dense<0.000000e+00> : vector<16x32xf32>
    %112 = tpu.matmul %109, %111, %cst_51 {dimension_numbers = #tpu.dot_dimension_numbers<[1], [0], [0], [1], [0, 0, 1, 1], [], []>} : vector<16x8xf32>, vector<8x32xf32>, vector<16x32xf32> -> vector<16x32xf32>
    %113 = vector.broadcast %107 : vector<1x32xf32> to vector<16x32xf32>
    %114 = arith.addf %113, %112 : vector<16x32xf32>
    %115 = vector.extract_strided_slice %105 {offsets = [2, 0, 0], sizes = [2, 8, 8], strides = [1, 1, 1]} : vector<8x8x8xf32> to vector<2x8x8xf32>
    %116 = vector.shape_cast %115 : vector<2x8x8xf32> to vector<16x8xf32>
    %c0_52 = arith.constant 0 : index
    %c1 = arith.constant 1 : index
    %c0_53 = arith.constant 0 : index
    %c0_54 = arith.constant 0 : index
    %117 = vector.load %arg12[%c0_52, %c1, %c0_53, %c0_54] : memref<2x4x8x32xf32, #tpu.memory_space<vmem>>, vector<1x1x8x32xf32>
    %118 = vector.shape_cast %117 : vector<1x1x8x32xf32> to vector<8x32xf32>
    %cst_55 = arith.constant dense<0.000000e+00> : vector<16x32xf32>
    %119 = tpu.matmul %116, %118, %cst_55 {dimension_numbers = #tpu.dot_dimension_numbers<[1], [0], [0], [1], [0, 0, 1, 1], [], []>} : vector<16x8xf32>, vector<8x32xf32>, vector<16x32xf32> -> vector<16x32xf32>
    %120 = arith.addf %114, %119 : vector<16x32xf32>
    %121 = vector.extract_strided_slice %105 {offsets = [4, 0, 0], sizes = [2, 8, 8], strides = [1, 1, 1]} : vector<8x8x8xf32> to vector<2x8x8xf32>
    %122 = vector.shape_cast %121 : vector<2x8x8xf32> to vector<16x8xf32>
    %c0_56 = arith.constant 0 : index
    %c2 = arith.constant 2 : index
    %c0_57 = arith.constant 0 : index
    %c0_58 = arith.constant 0 : index
    %123 = vector.load %arg12[%c0_56, %c2, %c0_57, %c0_58] : memref<2x4x8x32xf32, #tpu.memory_space<vmem>>, vector<1x1x8x32xf32>
    %124 = vector.shape_cast %123 : vector<1x1x8x32xf32> to vector<8x32xf32>
    %cst_59 = arith.constant dense<0.000000e+00> : vector<16x32xf32>
    %125 = tpu.matmul %122, %124, %cst_59 {dimension_numbers = #tpu.dot_dimension_numbers<[1], [0], [0], [1], [0, 0, 1, 1], [], []>} : vector<16x8xf32>, vector<8x32xf32>, vector<16x32xf32> -> vector<16x32xf32>
    %126 = arith.addf %120, %125 : vector<16x32xf32>
    %127 = vector.extract_strided_slice %105 {offsets = [6, 0, 0], sizes = [2, 8, 8], strides = [1, 1, 1]} : vector<8x8x8xf32> to vector<2x8x8xf32>
    %128 = vector.shape_cast %127 : vector<2x8x8xf32> to vector<16x8xf32>
    %c0_60 = arith.constant 0 : index
    %c3 = arith.constant 3 : index
    %c0_61 = arith.constant 0 : index
    %c0_62 = arith.constant 0 : index
    %129 = vector.load %arg12[%c0_60, %c3, %c0_61, %c0_62] : memref<2x4x8x32xf32, #tpu.memory_space<vmem>>, vector<1x1x8x32xf32>
    %130 = vector.shape_cast %129 : vector<1x1x8x32xf32> to vector<8x32xf32>
    %cst_63 = arith.constant dense<0.000000e+00> : vector<16x32xf32>
    %131 = tpu.matmul %128, %130, %cst_63 {dimension_numbers = #tpu.dot_dimension_numbers<[1], [0], [0], [1], [0, 0, 1, 1], [], []>} : vector<16x8xf32>, vector<8x32xf32>, vector<16x32xf32> -> vector<16x32xf32>
    %132 = arith.addf %126, %131 : vector<16x32xf32>
    %133 = arith.addf %13, %132 : vector<16x32xf32>
    %c0_64 = arith.constant 0 : index
    %c0_65 = arith.constant 0 : index
    %c0_66 = arith.constant 0 : index
    %134 = vector.load %arg14[%c0_64, %c0_65, %c0_66] : memref<2x1x32xf32, #tpu.memory_space<vmem>>, vector<1x1x32xf32>
    %135 = vector.shape_cast %134 : vector<1x1x32xf32> to vector<1x32xf32>
    %c0_67 = arith.constant 0 : index
    %c0_68 = arith.constant 0 : index
    %c0_69 = arith.constant 0 : index
    %136 = vector.load %arg15[%c0_67, %c0_68, %c0_69] : memref<2x1x32xf32, #tpu.memory_space<vmem>>, vector<1x1x32xf32>
    %137 = vector.shape_cast %136 : vector<1x1x32xf32> to vector<1x32xf32>
    %cst_70 = arith.constant dense<0.000000e+00> : vector<16xf32>
    %138 = vector.multi_reduction <add>, %133, %cst_70 [1] : vector<16x32xf32> to vector<16xf32>
    %139 = vector.shape_cast %138 : vector<16xf32> to vector<16x1xf32>
    %cst_71 = arith.constant 3.200000e+01 : f32
    %140 = vector.broadcast %cst_71 : f32 to vector<16x1xf32>
    %141 = arith.divf %139, %140 : vector<16x1xf32>
    %142 = vector.broadcast %141 : vector<16x1xf32> to vector<16x32xf32>
    %143 = arith.subf %133, %142 : vector<16x32xf32>
    %144 = arith.mulf %143, %143 : vector<16x32xf32>
    %cst_72 = arith.constant dense<0.000000e+00> : vector<16xf32>
    %145 = vector.multi_reduction <add>, %144, %cst_72 [1] : vector<16x32xf32> to vector<16xf32>
    %146 = vector.shape_cast %145 : vector<16xf32> to vector<16x1xf32>
    %cst_73 = arith.constant 3.200000e+01 : f32
    %147 = vector.broadcast %cst_73 : f32 to vector<16x1xf32>
    %148 = arith.divf %146, %147 : vector<16x1xf32>
    %149 = vector.broadcast %141 : vector<16x1xf32> to vector<16x32xf32>
    %150 = arith.subf %133, %149 : vector<16x32xf32>
    %cst_74 = arith.constant 9.99999974E-6 : f32
    %151 = vector.broadcast %cst_74 : f32 to vector<16x1xf32>
    %152 = arith.addf %148, %151 : vector<16x1xf32>
    %153 = math.rsqrt %152 : vector<16x1xf32>
    %154 = vector.broadcast %153 : vector<16x1xf32> to vector<16x32xf32>
    %155 = arith.mulf %150, %154 : vector<16x32xf32>
    %156 = vector.broadcast %135 : vector<1x32xf32> to vector<16x32xf32>
    %157 = arith.mulf %155, %156 : vector<16x32xf32>
    %158 = vector.broadcast %137 : vector<1x32xf32> to vector<16x32xf32>
    %159 = arith.addf %157, %158 : vector<16x32xf32>
    %c0_75 = arith.constant 0 : index
    %c0_76 = arith.constant 0 : index
    %c0_77 = arith.constant 0 : index
    %160 = vector.load %arg16[%c0_75, %c0_76, %c0_77] : memref<2x32x128xf32, #tpu.memory_space<vmem>>, vector<1x32x128xf32>
    %161 = vector.shape_cast %160 : vector<1x32x128xf32> to vector<32x128xf32>
    %cst_78 = arith.constant dense<0.000000e+00> : vector<16x128xf32>
    %162 = tpu.matmul %159, %161, %cst_78 {dimension_numbers = #tpu.dot_dimension_numbers<[1], [0], [0], [1], [0, 0, 1, 1], [], []>} : vector<16x32xf32>, vector<32x128xf32>, vector<16x128xf32> -> vector<16x128xf32>
    %c0_79 = arith.constant 0 : index
    %c0_80 = arith.constant 0 : index
    %c0_81 = arith.constant 0 : index
    %163 = vector.load %arg17[%c0_79, %c0_80, %c0_81] : memref<2x1x128xf32, #tpu.memory_space<vmem>>, vector<1x1x128xf32>
    %164 = vector.shape_cast %163 : vector<1x1x128xf32> to vector<1x128xf32>
    %165 = vector.broadcast %164 : vector<1x128xf32> to vector<16x128xf32>
    %166 = arith.addf %162, %165 : vector<16x128xf32>
    %cst_82 = arith.constant 5.000000e-01 : f32
    %167 = vector.broadcast %cst_82 : f32 to vector<16x128xf32>
    %168 = arith.mulf %167, %166 : vector<16x128xf32>
    %cst_83 = arith.constant 4.471500e-02 : f32
    %169 = vector.broadcast %cst_83 : f32 to vector<16x128xf32>
    %170 = arith.mulf %169, %166 : vector<16x128xf32>
    %171 = arith.mulf %170, %166 : vector<16x128xf32>
    %172 = arith.mulf %171, %166 : vector<16x128xf32>
    %173 = arith.addf %166, %172 : vector<16x128xf32>
    %cst_84 = arith.constant 0.797884583 : f32
    %174 = vector.broadcast %cst_84 : f32 to vector<16x128xf32>
    %175 = arith.mulf %174, %173 : vector<16x128xf32>
    %176 = math.tanh %175 : vector<16x128xf32>
    %cst_85 = arith.constant 1.000000e+00 : f32
    %177 = vector.broadcast %cst_85 : f32 to vector<16x128xf32>
    %178 = arith.addf %177, %176 : vector<16x128xf32>
    %179 = arith.mulf %168, %178 : vector<16x128xf32>
    %c0_86 = arith.constant 0 : index
    %c0_87 = arith.constant 0 : index
    %c0_88 = arith.constant 0 : index
    %180 = vector.load %arg18[%c0_86, %c0_87, %c0_88] : memref<2x128x32xf32, #tpu.memory_space<vmem>>, vector<1x128x32xf32>
    %181 = vector.shape_cast %180 : vector<1x128x32xf32> to vector<128x32xf32>
    %cst_89 = arith.constant dense<0.000000e+00> : vector<16x32xf32>
    %182 = tpu.matmul %179, %181, %cst_89 {dimension_numbers = #tpu.dot_dimension_numbers<[1], [0], [0], [1], [0, 0, 1, 1], [], []>} : vector<16x128xf32>, vector<128x32xf32>, vector<16x32xf32> -> vector<16x32xf32>
    %183 = arith.addf %133, %182 : vector<16x32xf32>
    %c0_90 = arith.constant 0 : index
    %c0_91 = arith.constant 0 : index
    %c0_92 = arith.constant 0 : index
    %184 = vector.load %arg19[%c0_90, %c0_91, %c0_92] : memref<2x1x32xf32, #tpu.memory_space<vmem>>, vector<1x1x32xf32>
    %185 = vector.shape_cast %184 : vector<1x1x32xf32> to vector<1x32xf32>
    %186 = vector.broadcast %185 : vector<1x32xf32> to vector<16x32xf32>
    %187 = arith.addf %183, %186 : vector<16x32xf32>
    %c1_93 = arith.constant 1 : index
    %c0_94 = arith.constant 0 : index
    %c0_95 = arith.constant 0 : index
    %188 = vector.load %arg4[%c1_93, %c0_94, %c0_95] : memref<2x1x32xf32, #tpu.memory_space<vmem>>, vector<1x1x32xf32>
    %189 = vector.shape_cast %188 : vector<1x1x32xf32> to vector<1x32xf32>
    %c1_96 = arith.constant 1 : index
    %c0_97 = arith.constant 0 : index
    %c0_98 = arith.constant 0 : index
    %190 = vector.load %arg5[%c1_96, %c0_97, %c0_98] : memref<2x1x32xf32, #tpu.memory_space<vmem>>, vector<1x1x32xf32>
    %191 = vector.shape_cast %190 : vector<1x1x32xf32> to vector<1x32xf32>
    %cst_99 = arith.constant dense<0.000000e+00> : vector<16xf32>
    %192 = vector.multi_reduction <add>, %187, %cst_99 [1] : vector<16x32xf32> to vector<16xf32>
    %193 = vector.shape_cast %192 : vector<16xf32> to vector<16x1xf32>
    %cst_100 = arith.constant 3.200000e+01 : f32
    %194 = vector.broadcast %cst_100 : f32 to vector<16x1xf32>
    %195 = arith.divf %193, %194 : vector<16x1xf32>
    %196 = vector.broadcast %195 : vector<16x1xf32> to vector<16x32xf32>
    %197 = arith.subf %187, %196 : vector<16x32xf32>
    %198 = arith.mulf %197, %197 : vector<16x32xf32>
    %cst_101 = arith.constant dense<0.000000e+00> : vector<16xf32>
    %199 = vector.multi_reduction <add>, %198, %cst_101 [1] : vector<16x32xf32> to vector<16xf32>
    %200 = vector.shape_cast %199 : vector<16xf32> to vector<16x1xf32>
    %cst_102 = arith.constant 3.200000e+01 : f32
    %201 = vector.broadcast %cst_102 : f32 to vector<16x1xf32>
    %202 = arith.divf %200, %201 : vector<16x1xf32>
    %203 = vector.broadcast %195 : vector<16x1xf32> to vector<16x32xf32>
    %204 = arith.subf %187, %203 : vector<16x32xf32>
    %cst_103 = arith.constant 9.99999974E-6 : f32
    %205 = vector.broadcast %cst_103 : f32 to vector<16x1xf32>
    %206 = arith.addf %202, %205 : vector<16x1xf32>
    %207 = math.rsqrt %206 : vector<16x1xf32>
    %208 = vector.broadcast %207 : vector<16x1xf32> to vector<16x32xf32>
    %209 = arith.mulf %204, %208 : vector<16x32xf32>
    %210 = vector.broadcast %189 : vector<1x32xf32> to vector<16x32xf32>
    %211 = arith.mulf %209, %210 : vector<16x32xf32>
    %212 = vector.broadcast %191 : vector<1x32xf32> to vector<16x32xf32>
    %213 = arith.addf %211, %212 : vector<16x32xf32>
    %c1_104 = arith.constant 1 : index
    %c0_105 = arith.constant 0 : index
    %c0_106 = arith.constant 0 : index
    %214 = vector.load %arg6[%c1_104, %c0_105, %c0_106] : memref<2x32x32xf32, #tpu.memory_space<vmem>>, vector<1x32x32xf32>
    %215 = vector.shape_cast %214 : vector<1x32x32xf32> to vector<32x32xf32>
    %cst_107 = arith.constant dense<0.000000e+00> : vector<16x32xf32>
    %216 = tpu.matmul %213, %215, %cst_107 {dimension_numbers = #tpu.dot_dimension_numbers<[1], [0], [0], [1], [0, 0, 1, 1], [], []>} : vector<16x32xf32>, vector<32x32xf32>, vector<16x32xf32> -> vector<16x32xf32>
    %c1_108 = arith.constant 1 : index
    %c0_109 = arith.constant 0 : index
    %c0_110 = arith.constant 0 : index
    %217 = vector.load %arg7[%c1_108, %c0_109, %c0_110] : memref<2x1x32xf32, #tpu.memory_space<vmem>>, vector<1x1x32xf32>
    %218 = vector.shape_cast %217 : vector<1x1x32xf32> to vector<1x32xf32>
    %219 = vector.broadcast %218 : vector<1x32xf32> to vector<16x32xf32>
    %220 = arith.addf %216, %219 : vector<16x32xf32>
    %c1_111 = arith.constant 1 : index
    %c0_112 = arith.constant 0 : index
    %c0_113 = arith.constant 0 : index
    %221 = vector.load %arg8[%c1_111, %c0_112, %c0_113] : memref<2x32x32xf32, #tpu.memory_space<vmem>>, vector<1x32x32xf32>
    %222 = vector.shape_cast %221 : vector<1x32x32xf32> to vector<32x32xf32>
    %cst_114 = arith.constant dense<0.000000e+00> : vector<16x32xf32>
    %223 = tpu.matmul %213, %222, %cst_114 {dimension_numbers = #tpu.dot_dimension_numbers<[1], [0], [0], [1], [0, 0, 1, 1], [], []>} : vector<16x32xf32>, vector<32x32xf32>, vector<16x32xf32> -> vector<16x32xf32>
    %c1_115 = arith.constant 1 : index
    %c0_116 = arith.constant 0 : index
    %c0_117 = arith.constant 0 : index
    %224 = vector.load %arg9[%c1_115, %c0_116, %c0_117] : memref<2x1x32xf32, #tpu.memory_space<vmem>>, vector<1x1x32xf32>
    %225 = vector.shape_cast %224 : vector<1x1x32xf32> to vector<1x32xf32>
    %226 = vector.broadcast %225 : vector<1x32xf32> to vector<16x32xf32>
    %227 = arith.addf %223, %226 : vector<16x32xf32>
    %c1_118 = arith.constant 1 : index
    %c0_119 = arith.constant 0 : index
    %c0_120 = arith.constant 0 : index
    %228 = vector.load %arg10[%c1_118, %c0_119, %c0_120] : memref<2x32x32xf32, #tpu.memory_space<vmem>>, vector<1x32x32xf32>
    %229 = vector.shape_cast %228 : vector<1x32x32xf32> to vector<32x32xf32>
    %cst_121 = arith.constant dense<0.000000e+00> : vector<16x32xf32>
    %230 = tpu.matmul %213, %229, %cst_121 {dimension_numbers = #tpu.dot_dimension_numbers<[1], [0], [0], [1], [0, 0, 1, 1], [], []>} : vector<16x32xf32>, vector<32x32xf32>, vector<16x32xf32> -> vector<16x32xf32>
    %c1_122 = arith.constant 1 : index
    %c0_123 = arith.constant 0 : index
    %c0_124 = arith.constant 0 : index
    %231 = vector.load %arg11[%c1_122, %c0_123, %c0_124] : memref<2x1x32xf32, #tpu.memory_space<vmem>>, vector<1x1x32xf32>
    %232 = vector.shape_cast %231 : vector<1x1x32xf32> to vector<1x32xf32>
    %233 = vector.broadcast %232 : vector<1x32xf32> to vector<16x32xf32>
    %234 = arith.addf %230, %233 : vector<16x32xf32>
    %235 = vector.extract_strided_slice %220 {offsets = [0, 0], sizes = [16, 8], strides = [1, 1]} : vector<16x32xf32> to vector<16x8xf32>
    %236 = vector.shape_cast %235 : vector<16x8xf32> to vector<2x8x8xf32>
    %237 = vector.extract_strided_slice %220 {offsets = [0, 8], sizes = [16, 8], strides = [1, 1]} : vector<16x32xf32> to vector<16x8xf32>
    %238 = vector.shape_cast %237 : vector<16x8xf32> to vector<2x8x8xf32>
    %239 = vector.extract_strided_slice %220 {offsets = [0, 16], sizes = [16, 8], strides = [1, 1]} : vector<16x32xf32> to vector<16x8xf32>
    %240 = vector.shape_cast %239 : vector<16x8xf32> to vector<2x8x8xf32>
    %241 = vector.extract_strided_slice %220 {offsets = [0, 24], sizes = [16, 8], strides = [1, 1]} : vector<16x32xf32> to vector<16x8xf32>
    %242 = vector.shape_cast %241 : vector<16x8xf32> to vector<2x8x8xf32>
    %243 = tpu.concatenate %236, %238, %240, %242 in 0 : vector<2x8x8xf32>, vector<2x8x8xf32>, vector<2x8x8xf32>, vector<2x8x8xf32> -> vector<8x8x8xf32>
    %244 = vector.extract_strided_slice %227 {offsets = [0, 0], sizes = [16, 8], strides = [1, 1]} : vector<16x32xf32> to vector<16x8xf32>
    %245 = vector.shape_cast %244 : vector<16x8xf32> to vector<2x8x8xf32>
    %246 = vector.extract_strided_slice %227 {offsets = [0, 8], sizes = [16, 8], strides = [1, 1]} : vector<16x32xf32> to vector<16x8xf32>
    %247 = vector.shape_cast %246 : vector<16x8xf32> to vector<2x8x8xf32>
    %248 = vector.extract_strided_slice %227 {offsets = [0, 16], sizes = [16, 8], strides = [1, 1]} : vector<16x32xf32> to vector<16x8xf32>
    %249 = vector.shape_cast %248 : vector<16x8xf32> to vector<2x8x8xf32>
    %250 = vector.extract_strided_slice %227 {offsets = [0, 24], sizes = [16, 8], strides = [1, 1]} : vector<16x32xf32> to vector<16x8xf32>
    %251 = vector.shape_cast %250 : vector<16x8xf32> to vector<2x8x8xf32>
    %252 = tpu.concatenate %245, %247, %249, %251 in 0 : vector<2x8x8xf32>, vector<2x8x8xf32>, vector<2x8x8xf32>, vector<2x8x8xf32> -> vector<8x8x8xf32>
    %253 = vector.extract_strided_slice %234 {offsets = [0, 0], sizes = [16, 8], strides = [1, 1]} : vector<16x32xf32> to vector<16x8xf32>
    %254 = vector.shape_cast %253 : vector<16x8xf32> to vector<2x8x8xf32>
    %255 = vector.extract_strided_slice %234 {offsets = [0, 8], sizes = [16, 8], strides = [1, 1]} : vector<16x32xf32> to vector<16x8xf32>
    %256 = vector.shape_cast %255 : vector<16x8xf32> to vector<2x8x8xf32>
    %257 = vector.extract_strided_slice %234 {offsets = [0, 16], sizes = [16, 8], strides = [1, 1]} : vector<16x32xf32> to vector<16x8xf32>
    %258 = vector.shape_cast %257 : vector<16x8xf32> to vector<2x8x8xf32>
    %259 = vector.extract_strided_slice %234 {offsets = [0, 24], sizes = [16, 8], strides = [1, 1]} : vector<16x32xf32> to vector<16x8xf32>
    %260 = vector.shape_cast %259 : vector<16x8xf32> to vector<2x8x8xf32>
    %261 = tpu.concatenate %254, %256, %258, %260 in 0 : vector<2x8x8xf32>, vector<2x8x8xf32>, vector<2x8x8xf32>, vector<2x8x8xf32> -> vector<8x8x8xf32>
    "tpu.trace_start"() <{level = 10 : i32, message = "nqd,nkd->nqk"}> : () -> ()
    %cst_125 = arith.constant dense<0.000000e+00> : vector<8x8x8xf32>
    %262 = tpu.matmul %243, %252, %cst_125 {dimension_numbers = #tpu.dot_dimension_numbers<[2], [2], [1], [1], [0, 0, 0, 1, 1, 1], [0], [0]>} : vector<8x8x8xf32>, vector<8x8x8xf32>, vector<8x8x8xf32> -> vector<8x8x8xf32>
    "tpu.trace_stop"() : () -> ()
    %cst_126 = arith.constant 0.353553385 : f32
    %263 = vector.broadcast %cst_126 : f32 to vector<8x8x8xf32>
    %264 = arith.mulf %262, %263 : vector<8x8x8xf32>
    %265 = vector.broadcast %15 : vector<1x8x8xf32> to vector<8x8x8xf32>
    %266 = arith.addf %264, %265 : vector<8x8x8xf32>
    %cst_127 = arith.constant dense<0xFF800000> : vector<8x8xf32>
    %267 = vector.multi_reduction <maximumf>, %266, %cst_127 [2] : vector<8x8x8xf32> to vector<8x8xf32>
    %268 = vector.shape_cast %267 : vector<8x8xf32> to vector<8x8x1xf32>
    %269 = vector.broadcast %268 : vector<8x8x1xf32> to vector<8x8x8xf32>
    %270 = arith.subf %266, %269 : vector<8x8x8xf32>
    %271 = math.exp %270 : vector<8x8x8xf32>
    %cst_128 = arith.constant dense<0.000000e+00> : vector<8x8xf32>
    %272 = vector.multi_reduction <add>, %271, %cst_128 [2] : vector<8x8x8xf32> to vector<8x8xf32>
    %273 = vector.shape_cast %272 : vector<8x8xf32> to vector<8x8x1xf32>
    %274 = tpu.reciprocal %273 {approx = true} : vector<8x8x1xf32> -> vector<8x8x1xf32>
    %275 = vector.broadcast %274 : vector<8x8x1xf32> to vector<8x8x8xf32>
    %276 = arith.mulf %271, %275 : vector<8x8x8xf32>
    "tpu.trace_start"() <{level = 10 : i32, message = "nqk,nkd->nqd"}> : () -> ()
    %cst_129 = arith.constant dense<0.000000e+00> : vector<8x8x8xf32>
    %277 = tpu.matmul %276, %261, %cst_129 {dimension_numbers = #tpu.dot_dimension_numbers<[2], [1], [1], [2], [0, 0, 0, 1, 1, 2], [0], [0]>} : vector<8x8x8xf32>, vector<8x8x8xf32>, vector<8x8x8xf32> -> vector<8x8x8xf32>
    "tpu.trace_stop"() : () -> ()
    %c1_130 = arith.constant 1 : index
    %c0_131 = arith.constant 0 : index
    %c0_132 = arith.constant 0 : index
    %278 = vector.load %arg13[%c1_130, %c0_131, %c0_132] : memref<2x1x32xf32, #tpu.memory_space<vmem>>, vector<1x1x32xf32>
    %279 = vector.shape_cast %278 : vector<1x1x32xf32> to vector<1x32xf32>
    %280 = vector.extract_strided_slice %277 {offsets = [0, 0, 0], sizes = [2, 8, 8], strides = [1, 1, 1]} : vector<8x8x8xf32> to vector<2x8x8xf32>
    %281 = vector.shape_cast %280 : vector<2x8x8xf32> to vector<16x8xf32>
    %c1_133 = arith.constant 1 : index
    %c0_134 = arith.constant 0 : index
    %c0_135 = arith.constant 0 : index
    %c0_136 = arith.constant 0 : index
    %282 = vector.load %arg12[%c1_133, %c0_134, %c0_135, %c0_136] : memref<2x4x8x32xf32, #tpu.memory_space<vmem>>, vector<1x1x8x32xf32>
    %283 = vector.shape_cast %282 : vector<1x1x8x32xf32> to vector<8x32xf32>
    %cst_137 = arith.constant dense<0.000000e+00> : vector<16x32xf32>
    %284 = tpu.matmul %281, %283, %cst_137 {dimension_numbers = #tpu.dot_dimension_numbers<[1], [0], [0], [1], [0, 0, 1, 1], [], []>} : vector<16x8xf32>, vector<8x32xf32>, vector<16x32xf32> -> vector<16x32xf32>
    %285 = vector.broadcast %279 : vector<1x32xf32> to vector<16x32xf32>
    %286 = arith.addf %285, %284 : vector<16x32xf32>
    %287 = vector.extract_strided_slice %277 {offsets = [2, 0, 0], sizes = [2, 8, 8], strides = [1, 1, 1]} : vector<8x8x8xf32> to vector<2x8x8xf32>
    %288 = vector.shape_cast %287 : vector<2x8x8xf32> to vector<16x8xf32>
    %c1_138 = arith.constant 1 : index
    %c1_139 = arith.constant 1 : index
    %c0_140 = arith.constant 0 : index
    %c0_141 = arith.constant 0 : index
    %289 = vector.load %arg12[%c1_138, %c1_139, %c0_140, %c0_141] : memref<2x4x8x32xf32, #tpu.memory_space<vmem>>, vector<1x1x8x32xf32>
    %290 = vector.shape_cast %289 : vector<1x1x8x32xf32> to vector<8x32xf32>
    %cst_142 = arith.constant dense<0.000000e+00> : vector<16x32xf32>
    %291 = tpu.matmul %288, %290, %cst_142 {dimension_numbers = #tpu.dot_dimension_numbers<[1], [0], [0], [1], [0, 0, 1, 1], [], []>} : vector<16x8xf32>, vector<8x32xf32>, vector<16x32xf32> -> vector<16x32xf32>
    %292 = arith.addf %286, %291 : vector<16x32xf32>
    %293 = vector.extract_strided_slice %277 {offsets = [4, 0, 0], sizes = [2, 8, 8], strides = [1, 1, 1]} : vector<8x8x8xf32> to vector<2x8x8xf32>
    %294 = vector.shape_cast %293 : vector<2x8x8xf32> to vector<16x8xf32>
    %c1_143 = arith.constant 1 : index
    %c2_144 = arith.constant 2 : index
    %c0_145 = arith.constant 0 : index
    %c0_146 = arith.constant 0 : index
    %295 = vector.load %arg12[%c1_143, %c2_144, %c0_145, %c0_146] : memref<2x4x8x32xf32, #tpu.memory_space<vmem>>, vector<1x1x8x32xf32>
    %296 = vector.shape_cast %295 : vector<1x1x8x32xf32> to vector<8x32xf32>
    %cst_147 = arith.constant dense<0.000000e+00> : vector<16x32xf32>
    %297 = tpu.matmul %294, %296, %cst_147 {dimension_numbers = #tpu.dot_dimension_numbers<[1], [0], [0], [1], [0, 0, 1, 1], [], []>} : vector<16x8xf32>, vector<8x32xf32>, vector<16x32xf32> -> vector<16x32xf32>
    %298 = arith.addf %292, %297 : vector<16x32xf32>
    %299 = vector.extract_strided_slice %277 {offsets = [6, 0, 0], sizes = [2, 8, 8], strides = [1, 1, 1]} : vector<8x8x8xf32> to vector<2x8x8xf32>
    %300 = vector.shape_cast %299 : vector<2x8x8xf32> to vector<16x8xf32>
    %c1_148 = arith.constant 1 : index
    %c3_149 = arith.constant 3 : index
    %c0_150 = arith.constant 0 : index
    %c0_151 = arith.constant 0 : index
    %301 = vector.load %arg12[%c1_148, %c3_149, %c0_150, %c0_151] : memref<2x4x8x32xf32, #tpu.memory_space<vmem>>, vector<1x1x8x32xf32>
    %302 = vector.shape_cast %301 : vector<1x1x8x32xf32> to vector<8x32xf32>
    %cst_152 = arith.constant dense<0.000000e+00> : vector<16x32xf32>
    %303 = tpu.matmul %300, %302, %cst_152 {dimension_numbers = #tpu.dot_dimension_numbers<[1], [0], [0], [1], [0, 0, 1, 1], [], []>} : vector<16x8xf32>, vector<8x32xf32>, vector<16x32xf32> -> vector<16x32xf32>
    %304 = arith.addf %298, %303 : vector<16x32xf32>
    %305 = arith.addf %187, %304 : vector<16x32xf32>
    %c1_153 = arith.constant 1 : index
    %c0_154 = arith.constant 0 : index
    %c0_155 = arith.constant 0 : index
    %306 = vector.load %arg14[%c1_153, %c0_154, %c0_155] : memref<2x1x32xf32, #tpu.memory_space<vmem>>, vector<1x1x32xf32>
    %307 = vector.shape_cast %306 : vector<1x1x32xf32> to vector<1x32xf32>
    %c1_156 = arith.constant 1 : index
    %c0_157 = arith.constant 0 : index
    %c0_158 = arith.constant 0 : index
    %308 = vector.load %arg15[%c1_156, %c0_157, %c0_158] : memref<2x1x32xf32, #tpu.memory_space<vmem>>, vector<1x1x32xf32>
    %309 = vector.shape_cast %308 : vector<1x1x32xf32> to vector<1x32xf32>
    %cst_159 = arith.constant dense<0.000000e+00> : vector<16xf32>
    %310 = vector.multi_reduction <add>, %305, %cst_159 [1] : vector<16x32xf32> to vector<16xf32>
    %311 = vector.shape_cast %310 : vector<16xf32> to vector<16x1xf32>
    %cst_160 = arith.constant 3.200000e+01 : f32
    %312 = vector.broadcast %cst_160 : f32 to vector<16x1xf32>
    %313 = arith.divf %311, %312 : vector<16x1xf32>
    %314 = vector.broadcast %313 : vector<16x1xf32> to vector<16x32xf32>
    %315 = arith.subf %305, %314 : vector<16x32xf32>
    %316 = arith.mulf %315, %315 : vector<16x32xf32>
    %cst_161 = arith.constant dense<0.000000e+00> : vector<16xf32>
    %317 = vector.multi_reduction <add>, %316, %cst_161 [1] : vector<16x32xf32> to vector<16xf32>
    %318 = vector.shape_cast %317 : vector<16xf32> to vector<16x1xf32>
    %cst_162 = arith.constant 3.200000e+01 : f32
    %319 = vector.broadcast %cst_162 : f32 to vector<16x1xf32>
    %320 = arith.divf %318, %319 : vector<16x1xf32>
    %321 = vector.broadcast %313 : vector<16x1xf32> to vector<16x32xf32>
    %322 = arith.subf %305, %321 : vector<16x32xf32>
    %cst_163 = arith.constant 9.99999974E-6 : f32
    %323 = vector.broadcast %cst_163 : f32 to vector<16x1xf32>
    %324 = arith.addf %320, %323 : vector<16x1xf32>
    %325 = math.rsqrt %324 : vector<16x1xf32>
    %326 = vector.broadcast %325 : vector<16x1xf32> to vector<16x32xf32>
    %327 = arith.mulf %322, %326 : vector<16x32xf32>
    %328 = vector.broadcast %307 : vector<1x32xf32> to vector<16x32xf32>
    %329 = arith.mulf %327, %328 : vector<16x32xf32>
    %330 = vector.broadcast %309 : vector<1x32xf32> to vector<16x32xf32>
    %331 = arith.addf %329, %330 : vector<16x32xf32>
    %c1_164 = arith.constant 1 : index
    %c0_165 = arith.constant 0 : index
    %c0_166 = arith.constant 0 : index
    %332 = vector.load %arg16[%c1_164, %c0_165, %c0_166] : memref<2x32x128xf32, #tpu.memory_space<vmem>>, vector<1x32x128xf32>
    %333 = vector.shape_cast %332 : vector<1x32x128xf32> to vector<32x128xf32>
    %cst_167 = arith.constant dense<0.000000e+00> : vector<16x128xf32>
    %334 = tpu.matmul %331, %333, %cst_167 {dimension_numbers = #tpu.dot_dimension_numbers<[1], [0], [0], [1], [0, 0, 1, 1], [], []>} : vector<16x32xf32>, vector<32x128xf32>, vector<16x128xf32> -> vector<16x128xf32>
    %c1_168 = arith.constant 1 : index
    %c0_169 = arith.constant 0 : index
    %c0_170 = arith.constant 0 : index
    %335 = vector.load %arg17[%c1_168, %c0_169, %c0_170] : memref<2x1x128xf32, #tpu.memory_space<vmem>>, vector<1x1x128xf32>
    %336 = vector.shape_cast %335 : vector<1x1x128xf32> to vector<1x128xf32>
    %337 = vector.broadcast %336 : vector<1x128xf32> to vector<16x128xf32>
    %338 = arith.addf %334, %337 : vector<16x128xf32>
    %cst_171 = arith.constant 5.000000e-01 : f32
    %339 = vector.broadcast %cst_171 : f32 to vector<16x128xf32>
    %340 = arith.mulf %339, %338 : vector<16x128xf32>
    %cst_172 = arith.constant 4.471500e-02 : f32
    %341 = vector.broadcast %cst_172 : f32 to vector<16x128xf32>
    %342 = arith.mulf %341, %338 : vector<16x128xf32>
    %343 = arith.mulf %342, %338 : vector<16x128xf32>
    %344 = arith.mulf %343, %338 : vector<16x128xf32>
    %345 = arith.addf %338, %344 : vector<16x128xf32>
    %cst_173 = arith.constant 0.797884583 : f32
    %346 = vector.broadcast %cst_173 : f32 to vector<16x128xf32>
    %347 = arith.mulf %346, %345 : vector<16x128xf32>
    %348 = math.tanh %347 : vector<16x128xf32>
    %cst_174 = arith.constant 1.000000e+00 : f32
    %349 = vector.broadcast %cst_174 : f32 to vector<16x128xf32>
    %350 = arith.addf %349, %348 : vector<16x128xf32>
    %351 = arith.mulf %340, %350 : vector<16x128xf32>
    %c1_175 = arith.constant 1 : index
    %c0_176 = arith.constant 0 : index
    %c0_177 = arith.constant 0 : index
    %352 = vector.load %arg18[%c1_175, %c0_176, %c0_177] : memref<2x128x32xf32, #tpu.memory_space<vmem>>, vector<1x128x32xf32>
    %353 = vector.shape_cast %352 : vector<1x128x32xf32> to vector<128x32xf32>
    %cst_178 = arith.constant dense<0.000000e+00> : vector<16x32xf32>
    %354 = tpu.matmul %351, %353, %cst_178 {dimension_numbers = #tpu.dot_dimension_numbers<[1], [0], [0], [1], [0, 0, 1, 1], [], []>} : vector<16x128xf32>, vector<128x32xf32>, vector<16x32xf32> -> vector<16x32xf32>
    %355 = arith.addf %305, %354 : vector<16x32xf32>
    %c1_179 = arith.constant 1 : index
    %c0_180 = arith.constant 0 : index
    %c0_181 = arith.constant 0 : index
    %356 = vector.load %arg19[%c1_179, %c0_180, %c0_181] : memref<2x1x32xf32, #tpu.memory_space<vmem>>, vector<1x1x32xf32>
    %357 = vector.shape_cast %356 : vector<1x1x32xf32> to vector<1x32xf32>
    %358 = vector.broadcast %357 : vector<1x32xf32> to vector<16x32xf32>
    %359 = arith.addf %355, %358 : vector<16x32xf32>
    %c0_182 = arith.constant 0 : index
    %c0_183 = arith.constant 0 : index
    %360 = vector.load %arg20[%c0_182, %c0_183] : memref<1x32xf32, #tpu.memory_space<vmem>>, vector<1x32xf32>
    %c0_184 = arith.constant 0 : index
    %c0_185 = arith.constant 0 : index
    %361 = vector.load %arg21[%c0_184, %c0_185] : memref<1x32xf32, #tpu.memory_space<vmem>>, vector<1x32xf32>
    %cst_186 = arith.constant dense<0.000000e+00> : vector<16xf32>
    %362 = vector.multi_reduction <add>, %359, %cst_186 [1] : vector<16x32xf32> to vector<16xf32>
    %363 = vector.shape_cast %362 : vector<16xf32> to vector<16x1xf32>
    %cst_187 = arith.constant 3.200000e+01 : f32
    %364 = vector.broadcast %cst_187 : f32 to vector<16x1xf32>
    %365 = arith.divf %363, %364 : vector<16x1xf32>
    %366 = vector.broadcast %365 : vector<16x1xf32> to vector<16x32xf32>
    %367 = arith.subf %359, %366 : vector<16x32xf32>
    %368 = arith.mulf %367, %367 : vector<16x32xf32>
    %cst_188 = arith.constant dense<0.000000e+00> : vector<16xf32>
    %369 = vector.multi_reduction <add>, %368, %cst_188 [1] : vector<16x32xf32> to vector<16xf32>
    %370 = vector.shape_cast %369 : vector<16xf32> to vector<16x1xf32>
    %cst_189 = arith.constant 3.200000e+01 : f32
    %371 = vector.broadcast %cst_189 : f32 to vector<16x1xf32>
    %372 = arith.divf %370, %371 : vector<16x1xf32>
    %373 = vector.broadcast %365 : vector<16x1xf32> to vector<16x32xf32>
    %374 = arith.subf %359, %373 : vector<16x32xf32>
    %cst_190 = arith.constant 9.99999974E-6 : f32
    %375 = vector.broadcast %cst_190 : f32 to vector<16x1xf32>
    %376 = arith.addf %372, %375 : vector<16x1xf32>
    %377 = math.rsqrt %376 : vector<16x1xf32>
    %378 = vector.broadcast %377 : vector<16x1xf32> to vector<16x32xf32>
    %379 = arith.mulf %374, %378 : vector<16x32xf32>
    %380 = vector.broadcast %360 : vector<1x32xf32> to vector<16x32xf32>
    %381 = arith.mulf %379, %380 : vector<16x32xf32>
    %382 = vector.broadcast %361 : vector<1x32xf32> to vector<16x32xf32>
    %383 = arith.addf %381, %382 : vector<16x32xf32>
    %384 = vector.shape_cast %383 : vector<16x32xf32> to vector<2x8x32xf32>
    %cst_191 = arith.constant dense<0.000000e+00> : vector<2x32xf32>
    %385 = vector.multi_reduction <add>, %384, %cst_191 [1] : vector<2x8x32xf32> to vector<2x32xf32>
    %cst_192 = arith.constant 8.000000e+00 : f32
    %386 = vector.broadcast %cst_192 : f32 to vector<2x32xf32>
    %387 = arith.divf %385, %386 : vector<2x32xf32>
    %cst_193 = arith.constant dense<0xFF800000> : vector<2x32xf32>
    %388 = vector.multi_reduction <maximumf>, %384, %cst_193 [1] : vector<2x8x32xf32> to vector<2x32xf32>
    %c0_194 = arith.constant 0 : index
    %c0_195 = arith.constant 0 : index
    %389 = vector.load %arg22[%c0_194, %c0_195] : memref<32x128xf32, #tpu.memory_space<vmem>>, vector<32x128xf32>
    %cst_196 = arith.constant dense<0.000000e+00> : vector<2x128xf32>
    %390 = tpu.matmul %387, %389, %cst_196 {dimension_numbers = #tpu.dot_dimension_numbers<[1], [0], [0], [1], [0, 0, 1, 1], [], []>} : vector<2x32xf32>, vector<32x128xf32>, vector<2x128xf32> -> vector<2x128xf32>
    %c0_197 = arith.constant 0 : index
    %c0_198 = arith.constant 0 : index
    %391 = vector.load %arg23[%c0_197, %c0_198] : memref<32x128xf32, #tpu.memory_space<vmem>>, vector<32x128xf32>
    %cst_199 = arith.constant dense<0.000000e+00> : vector<2x128xf32>
    %392 = tpu.matmul %388, %391, %cst_199 {dimension_numbers = #tpu.dot_dimension_numbers<[1], [0], [0], [1], [0, 0, 1, 1], [], []>} : vector<2x32xf32>, vector<32x128xf32>, vector<2x128xf32> -> vector<2x128xf32>
    %393 = arith.addf %390, %392 : vector<2x128xf32>
    %c0_200 = arith.constant 0 : index
    %c0_201 = arith.constant 0 : index
    %394 = vector.load %arg24[%c0_200, %c0_201] : memref<1x128xf32, #tpu.memory_space<vmem>>, vector<1x128xf32>
    %395 = vector.broadcast %394 : vector<1x128xf32> to vector<2x128xf32>
    %396 = arith.addf %393, %395 : vector<2x128xf32>
    %c0_202 = arith.constant 0 : index
    %c0_203 = arith.constant 0 : index
    %397 = vector.load %arg25[%c0_202, %c0_203] : memref<2x128xf32, #tpu.memory_space<vmem>>, vector<2x128xf32>
    tpu.vector_store %arg25[%c0_202, %c0_203], %396 {strides = array<i32>} : memref<2x128xf32, #tpu.memory_space<vmem>>, vector<2x128xf32>,
    return
  }
}

</mosaic_0001>

<bundles_post_ra>
// kernel: forward.1
= control target key start
LH: loop header
LB: loop body
LE: loop exit
PB: predicated region body
PF: predicated region fallthrough
CT: control target
= control target key end

     0   :  { %s7380_s0 = inlined_call_operand.vmem [shape: s32[16,1], index: 0, kind: input, shape index: {}]   ;;  %s7381_s1 = inlined_call_operand.vmem [shape: f32[64,32], index: 1, kind: input, shape index: {}]   ;;  %s7382_s2 = inlined_call_operand.vmem [shape: f32[8,32], index: 2, kind: input, shape index: {}]   ;;  %s7383_s3 = inlined_call_operand.vmem [shape: f32[8,8], index: 3, kind: input, shape index: {}]   ;;  %s7384_s4 = inlined_call_operand.vmem [shape: f32[2,1,32], index: 4, kind: input, shape index: {}]   ;;  %s7385_s5 = inlined_call_operand.hbm [shape: f32[2,1,32], index: 5, kind: input, shape index: {}]   ;;  %s7386_s6 = inlined_call_operand.vmem [shape: f32[2,32,32], index: 6, kind: input, shape index: {}]   ;;  %s7387_s7 = inlined_call_operand.hbm [shape: f32[2,1,32], index: 7, kind: input, shape index: {}]   ;;  %s7388_s8 = inlined_call_operand.vmem [shape: f32[2,32,32], index: 8, kind: input, shape index: {}]   ;;  %s7389_s9 = inlined_call_operand.hbm [shape: f32[2,1,32], index: 9, kind: input, shape index: {}]   ;;  %s7390_s10 = inlined_call_operand.vmem [shape: f32[2,32,32], index: 10, kind: input, shape index: {}]   ;;  %s7391_s11 = inlined_call_operand.hbm [shape: f32[2,1,32], index: 11, kind: input, shape index: {}]   ;;  %s7392_s12 = inlined_call_operand.vmem [shape: f32[2,4,8,32], index: 12, kind: input, shape index: {}]   ;;  %s7393_s13 = inlined_call_operand.hbm [shape: f32[2,1,32], index: 13, kind: input, shape index: {}]   ;;  %s7394_s14 = inlined_call_operand.vmem [shape: f32[2,1,32], index: 14, kind: input, shape index: {}]   ;;  %s7395_s15 = inlined_call_operand.vmem [shape: f32[2,1,32], index: 15, kind: input, shape index: {}]   ;;  %s7396_s16 = inlined_call_operand.vmem [shape: f32[2,32,128], index: 16, kind: input, shape index: {}]   ;;  %s7397_s17 = inlined_call_operand.hbm [shape: f32[2,1,128], index: 17, kind: input, shape index: {}]   ;;  %s7398_s18 = inlined_call_operand.vmem [shape: f32[2,128,32], index: 18, kind: input, shape index: {}]   ;;  %s7399_s19 = inlined_call_operand.hbm [shape: f32[2,1,32], index: 19, kind: input, shape index: {}]   ;;  %s7400_s20 = inlined_call_operand.hbm [shape: f32[1,32], index: 20, kind: input, shape index: {}]   ;;  %s7401_s21 = inlined_call_operand.hbm [shape: f32[1,32], index: 21, kind: input, shape index: {}]   ;;  %s7402_s22 = inlined_call_operand.vmem [shape: f32[32,128], index: 22, kind: input, shape index: {}]   ;;  %s7403_s23 = inlined_call_operand.vmem [shape: f32[32,128], index: 23, kind: input, shape index: {}]   ;;  %s7404_s24 = inlined_call_operand.hbm [shape: f32[1,128], index: 24, kind: input, shape index: {}]   ;;  %s7405_s25 = inlined_call_operand.hbm [shape: f32[2,128], index: 25, kind: output, shape index: {}]  }
   0x1   :  { %7416 = sst [smem:[#allocation27_spill]] %s7380_s0 }
   0x2   :  { %7417 = sst [smem:[#allocation28_spill]] %s7381_s1 }
   0x3   :  { %7418 = sst [smem:[#allocation29_spill]] %s7382_s2 }
   0x4   :  { %7419 = sst [smem:[#allocation30_spill]] %s7383_s3 }
   0x5   :  { %7420 = sst [smem:[#allocation31_spill]] %s7384_s4 }
   0x6   :  { %7421 = sst [smem:[#allocation32_spill]] %s7385_s5 }
   0x7   :  { %7422 = sst [smem:[#allocation33_spill]] %s7386_s6 }
   0x8   :  { %7423 = sst [smem:[#allocation34_spill]] %s7387_s7 }
   0x9   :  { %7424 = sst [smem:[#allocation35_spill]] %s7388_s8 }
   0xa   :  { %7425 = sst [smem:[#allocation36_spill]] %s7389_s9 }
   0xb   :  { %7426 = sst [smem:[#allocation37_spill]] %s7405_s25 }
   0xc   :  { %30 = vsyncpa [#allocation3], 0 }
   0xd   :  { %31 = vsyncpa [#allocation6], 0 }
   0xe   :  { %32 = vsyncpa [#allocation9], 0 }
   0xf   :  { %33 = vsyncpa [#allocation12], 0 }
  0x10   :  { %34 = vsyncpa [#allocation15], 0 }
  0x11   :  { %35 = vsyncpa [#allocation18], 0 }
  0x12   :  { %36 = vsyncpa [#allocation4], 0  ;;  %s6367_s29 = smov [#allocation5]   ;;  %s6368_s6 = smov [#allocation8]  }
  0x13   :  { %s66_s2 = sshll.u32 %s6367_s29, 4  ;;  %s94_s30 = sshll.u32 %s6368_s6, 4  ;;  %s67_s2 = int_to_ptr.vmem [resolvable:$true] %s66_s2  ;;  %s6517_s30 = int_to_ptr.vmem [resolvable:$true] %s94_s30 }
  0x14   :  { %s7427_s26 = sld [smem:[#allocation34_spill]] }
  0x1a   :  { %s6111_s1 = scalar_lea.hbm %s7427_s26, 32 }
  0x1b   :  { %p6112_p0 = scmp.ne.s32.totalorder %s7427_s26, %s6111_s1  ;;  %p6115_p1 = scmp.lt.u32.totalorder %s6111_s1, %s7427_s26 }
  0x1d   :  { %p6117_p2 = pnand %p6115_p1, %p6112_p0 }
  0x1f   :  { %6120 = shalt.err (!%p6117_p2)
}
  0x20   :  { %s6121_s9 = scalar_lea.vmem %s67_s2, 32  ;;  %p6126_p4 = scmp.lt.s32.totalorder %s67_s2, %s67_s2 }
  0x21   :  { %p6122_p3 = scmp.ne.s32.totalorder %s67_s2, %s6121_s9  ;;  %p6127_p5 = scmp.lt.s32.totalorder %s6121_s9, %s6121_s9 }
  0x23   :  { %p6128_p6 = por %p6127_p5, %p6126_p4 }
  0x25   :  { %p6129_p7 = pnand %p6128_p6, %p6122_p3 }
  0x27   :  { %6132 = shalt.err (!%p6129_p7)
}
  0x28   :  { %s6369_s5 = smov 16   ;;  %s6370_s0 = smov 1  }
  0x29   :  { %72 = dma.hbm_to_vmem [thread:$0]  %s7427_s26, 32, %s67_s2, [#allocation6], %s6369_s5, %s6369_s5, %s6370_s0  }
  0x2a   :  { %s6133_s1 = scalar_lea.hbm %s7391_s11, 32 }
  0x2b   :  { %p6134_p8 = scmp.ne.s32.totalorder %s7391_s11, %s6133_s1  ;;  %p6137_p9 = scmp.lt.u32.totalorder %s6133_s1, %s7391_s11 }
  0x2d   :  { %p6139_p10 = pnand %p6137_p9, %p6134_p8 }
  0x2f   :  { %6142 = shalt.err (!%p6139_p10)
}
  0x30   :  { %s6143_s9 = scalar_lea.vmem %s6517_s30, 32  ;;  %p6148_p12 = scmp.lt.s32.totalorder %s6517_s30, %s6517_s30 }
  0x31   :  { %p6144_p11 = scmp.ne.s32.totalorder %s6517_s30, %s6143_s9  ;;  %p6149_p13 = scmp.lt.s32.totalorder %s6143_s9, %s6143_s9 }
  0x33   :  { %p6150_p0 = por %p6149_p13, %p6148_p12 }
  0x35   :  { %p6151_p1 = pnand %p6150_p0, %p6144_p11 }
  0x37   :  { %6154 = shalt.err (!%p6151_p1)
}
  0x38   :  { %100 = dma.hbm_to_vmem [thread:$0]  %s7391_s11, 32, %s6517_s30, [#allocation9], %s6369_s5, %s6369_s5, %s6370_s0  }
  0x39   :  { %s6371_s29 = smov [#allocation11]   ;;  %s6372_s7 = smov [#allocation14]  }
  0x3a   :  { %s126_s6 = sshll.u32 %s6371_s29, 4  ;;  %s153_s3 = sshll.u32 %s6372_s7, 4  ;;  %s127_s6 = int_to_ptr.vmem [resolvable:$true] %s126_s6  ;;  %s154_s3 = int_to_ptr.vmem [resolvable:$true] %s153_s3 }
  0x3b   :  { %s6155_s27 = scalar_lea.hbm %s7397_s17, 32 }
  0x3c   :  { %p6156_p2 = scmp.ne.s32.totalorder %s7397_s17, %s6155_s27  ;;  %p6159_p3 = scmp.lt.u32.totalorder %s6155_s27, %s7397_s17 }
  0x3e   :  { %p6161_p4 = pnand %p6159_p3, %p6156_p2 }
  0x40   :  { %6164 = shalt.err (!%p6161_p4)
}
  0x41   :  { %s6165_s11 = scalar_lea.vmem %s127_s6, 32  ;;  %p6170_p6 = scmp.lt.s32.totalorder %s127_s6, %s127_s6 }
  0x42   :  { %p6166_p5 = scmp.ne.s32.totalorder %s127_s6, %s6165_s11  ;;  %p6171_p7 = scmp.lt.s32.totalorder %s6165_s11, %s6165_s11 }
  0x44   :  { %p6172_p8 = por %p6171_p7, %p6170_p6 }
  0x46   :  { %p6173_p9 = pnand %p6172_p8, %p6166_p5 }
  0x48   :  { %6176 = shalt.err (!%p6173_p9)
}
  0x49   :  { %132 = dma.hbm_to_vmem [thread:$0]  %s7397_s17, 32, %s127_s6, [#allocation12], %s6369_s5, %s6369_s5, %s6370_s0  }
  0x4a   :  { %s6177_s25 = scalar_lea.hbm %s7400_s20, 16 }
  0x4b   :  { %p6178_p10 = scmp.ne.s32.totalorder %s7400_s20, %s6177_s25  ;;  %p6181_p11 = scmp.lt.u32.totalorder %s6177_s25, %s7400_s20 }
  0x4d   :  { %p6183_p12 = pnand %p6181_p11, %p6178_p10 }
  0x4f   :  { %6186 = shalt.err (!%p6183_p12)
}
  0x50   :  { %s6187_s4 = scalar_lea.vmem %s154_s3, 16  ;;  %s6191_s28 = scalar_lea.vmem %s154_s3, 32 }
  0x51   :  { %p6188_p13 = scmp.ne.s32.totalorder %s154_s3, %s6187_s4  ;;  %p6192_p0 = scmp.lt.s32.totalorder %s154_s3, %s154_s3 }
  0x52   :  { %p6193_p1 = scmp.lt.s32.totalorder %s6191_s28, %s6187_s4 }
  0x54   :  { %p6194_p2 = por %p6193_p1, %p6192_p0 }
  0x56   :  { %p6195_p3 = pnand %p6194_p2, %p6188_p13 }
  0x58   :  { %6198 = shalt.err (!%p6195_p3)
}
  0x59   :  { %156 = dma.hbm_to_vmem [thread:$0]  %s7400_s20, 16, %s154_s3, [#allocation15]  }
  0x5a   :  { %s6373_s9 = smov [#allocation2]   ;;  %s6374_s30 = smov [#allocation7]  }
  0x5b   :  { %s52_s11 = sshll.u32 %s6373_s9, 4  ;;  %s80_s2 = sshll.u32 %s6374_s30, 4  ;;  %s53_s11 = int_to_ptr.vmem [resolvable:$true] %s52_s11  ;;  %s6581_s2 = int_to_ptr.vmem [resolvable:$true] %s80_s2 }
  0x5c   :  { %s7428_s25 = sld [smem:[#allocation32_spill]] }
  0x62   :  { %s6199_s7 = scalar_lea.hbm %s7428_s25, 32 }
  0x63   :  { %p6200_p4 = scmp.ne.s32.totalorder %s7428_s25, %s6199_s7  ;;  %p6203_p5 = scmp.lt.u32.totalorder %s6199_s7, %s7428_s25 }
  0x65   :  { %p6205_p6 = pnand %p6203_p5, %p6200_p4 }
  0x67   :  { %6208 = shalt.err (!%p6205_p6)
}
  0x68   :  { %s6209_s20 = scalar_lea.vmem %s53_s11, 32  ;;  %p6214_p8 = scmp.lt.s32.totalorder %s53_s11, %s53_s11 }
  0x69   :  { %p6210_p7 = scmp.ne.s32.totalorder %s53_s11, %s6209_s20  ;;  %p6215_p9 = scmp.lt.s32.totalorder %s6209_s20, %s6209_s20 }
  0x6b   :  { %p6216_p10 = por %p6215_p9, %p6214_p8 }
  0x6d   :  { %p6217_p11 = pnand %p6216_p10, %p6210_p7 }
  0x6f   :  { %6220 = shalt.err (!%p6217_p11)
}
  0x70   :  { %58 = dma.hbm_to_vmem [thread:$0]  %s7428_s25, 32, %s53_s11, [#allocation3], %s6369_s5, %s6369_s5, %s6370_s0  }
  0x71   :  { %s7429_s9 = sld [smem:[#allocation36_spill]] }
  0x77   :  { %s6221_s30 = scalar_lea.hbm %s7429_s9, 32 }
  0x78   :  { %p6222_p12 = scmp.ne.s32.totalorder %s7429_s9, %s6221_s30  ;;  %p6225_p13 = scmp.lt.u32.totalorder %s6221_s30, %s7429_s9 }
  0x7a   :  { %p6227_p0 = pnand %p6225_p13, %p6222_p12 }
  0x7c   :  { %6230 = shalt.err (!%p6227_p0)
}
  0x7d   :  { %s6231_s8 = scalar_lea.vmem %s6581_s2, 32  ;;  %p6236_p2 = scmp.lt.s32.totalorder %s6581_s2, %s6581_s2 }
  0x7e   :  { %p6232_p1 = scmp.ne.s32.totalorder %s6581_s2, %s6231_s8  ;;  %p6237_p3 = scmp.lt.s32.totalorder %s6231_s8, %s6231_s8 }
  0x80   :  { %p6238_p4 = por %p6237_p3, %p6236_p2 }
  0x82   :  { %p6239_p5 = pnand %p6238_p4, %p6232_p1 }
  0x84   :  { %6242 = shalt.err (!%p6239_p5)
}
  0x85   :  { %86 = dma.hbm_to_vmem [thread:$0]  %s7429_s9, 32, %s6581_s2, [#allocation6], %s6369_s5, %s6369_s5, %s6370_s0  }
  0x86   :  { %s6375_s27 = smov [#allocation10]   ;;  %s6376_s20 = smov [#allocation13]  }
  0x87   :  { %s108_s4 = sshll.u32 %s6375_s27, 4  ;;  %s140_s3 = sshll.u32 %s6376_s20, 4  ;;  %s109_s4 = int_to_ptr.vmem [resolvable:$true] %s108_s4  ;;  %s6618_s3 = int_to_ptr.vmem [resolvable:$true] %s140_s3 }
  0x88   :  { %s6243_s6 = scalar_lea.hbm %s7393_s13, 32 }
  0x89   :  { %p6244_p6 = scmp.ne.s32.totalorder %s7393_s13, %s6243_s6  ;;  %p6247_p7 = scmp.lt.u32.totalorder %s6243_s6, %s7393_s13 }
  0x8b   :  { %p6249_p8 = pnand %p6247_p7, %p6244_p6 }
  0x8d   :  { %6252 = shalt.err (!%p6249_p8)
}
  0x8e   :  { %s6253_s2 = scalar_lea.vmem %s109_s4, 32  ;;  %p6258_p10 = scmp.lt.s32.totalorder %s109_s4, %s109_s4 }
  0x8f   :  { %p6254_p9 = scmp.ne.s32.totalorder %s109_s4, %s6253_s2  ;;  %p6259_p11 = scmp.lt.s32.totalorder %s6253_s2, %s6253_s2 }
  0x91   :  { %p6260_p12 = por %p6259_p11, %p6258_p10 }
  0x93   :  { %p6261_p13 = pnand %p6260_p12, %p6254_p9 }
  0x95   :  { %6264 = shalt.err (!%p6261_p13)
}
  0x96   :  { %114 = dma.hbm_to_vmem [thread:$0]  %s7393_s13, 32, %s109_s4, [#allocation9], %s6369_s5, %s6369_s5, %s6370_s0  }
  0x97   :  { %s6265_s25 = scalar_lea.hbm %s7399_s19, 32 }
  0x98   :  { %p6266_p0 = scmp.ne.s32.totalorder %s7399_s19, %s6265_s25  ;;  %p6269_p1 = scmp.lt.u32.totalorder %s6265_s25, %s7399_s19 }
  0x9a   :  { %p6271_p2 = pnand %p6269_p1, %p6266_p0 }
  0x9c   :  { %6274 = shalt.err (!%p6271_p2)
}
  0x9d   :  { %s6275_s6 = scalar_lea.vmem %s6618_s3, 32  ;;  %p6280_p4 = scmp.lt.s32.totalorder %s6618_s3, %s6618_s3 }
  0x9e   :  { %p6276_p3 = scmp.ne.s32.totalorder %s6618_s3, %s6275_s6  ;;  %p6281_p5 = scmp.lt.s32.totalorder %s6275_s6, %s6275_s6 }
  0xa0   :  { %p6282_p6 = por %p6281_p5, %p6280_p4 }
  0xa2   :  { %p6283_p7 = pnand %p6282_p6, %p6276_p3 }
  0xa4   :  { %6286 = shalt.err (!%p6283_p7)
}
  0xa5   :  { %146 = dma.hbm_to_vmem [thread:$0]  %s7399_s19, 32, %s6618_s3, [#allocation12], %s6369_s5, %s6369_s5, %s6370_s0  }
  0xa6   :  { %s6377_s30 = smov [#allocation16]   ;;  %s6378_s29 = smov [#allocation17]  }
  0xa7   :  { %s163_s26 = sshll.u32 %s6377_s30, 4  ;;  %s177_s7 = sshll.u32 %s6378_s29, 4  ;;  %s164_s26 = int_to_ptr.vmem [resolvable:$true] %s163_s26  ;;  %s178_s7 = int_to_ptr.vmem [resolvable:$true] %s177_s7 }
  0xa8   :  { %s6287_s1 = scalar_lea.hbm %s7401_s21, 16 }
  0xa9   :  { %p6288_p8 = scmp.ne.s32.totalorder %s7401_s21, %s6287_s1  ;;  %p6291_p9 = scmp.lt.u32.totalorder %s6287_s1, %s7401_s21 }
  0xab   :  { %p6293_p10 = pnand %p6291_p9, %p6288_p8 }
  0xad   :  { %6296 = shalt.err (!%p6293_p10)
}
  0xae   :  { %s6297_s19 = scalar_lea.vmem %s164_s26, 16  ;;  %s6301_s5 = scalar_lea.vmem %s164_s26, 32 }
  0xaf   :  { %p6298_p11 = scmp.ne.s32.totalorder %s164_s26, %s6297_s19  ;;  %p6302_p12 = scmp.lt.s32.totalorder %s164_s26, %s164_s26 }
  0xb0   :  { %p6303_p13 = scmp.lt.s32.totalorder %s6301_s5, %s6297_s19 }
  0xb2   :  { %p6304_p0 = por %p6303_p13, %p6302_p12 }
  0xb4   :  { %p6305_p1 = pnand %p6304_p0, %p6298_p11 }
  0xb6   :  { %6308 = shalt.err (!%p6305_p1)
}
  0xb7   :  { %166 = dma.hbm_to_vmem [thread:$0]  %s7401_s21, 16, %s164_s26, [#allocation15]  }
  0xb8   :  { %s6309_s17 = scalar_lea.hbm %s7404_s24, 16 }
  0xb9   :  { %p6310_p2 = scmp.ne.s32.totalorder %s7404_s24, %s6309_s17  ;;  %p6313_p3 = scmp.lt.u32.totalorder %s6309_s17, %s7404_s24 }
  0xbb   :  { %p6315_p4 = pnand %p6313_p3, %p6310_p2 }
  0xbd   :  { %6318 = shalt.err (!%p6315_p4)
}
  0xbe   :  { %s6319_s29 = scalar_lea.vmem %s178_s7, 16  ;;  %s6323_s2 = scalar_lea.vmem %s178_s7, 32 }
  0xbf   :  { %p6320_p5 = scmp.ne.s32.totalorder %s178_s7, %s6319_s29  ;;  %p6324_p6 = scmp.lt.s32.totalorder %s178_s7, %s178_s7 }
  0xc0   :  { %p6325_p7 = scmp.lt.s32.totalorder %s6323_s2, %s6319_s29 }
  0xc2   :  { %p6326_p8 = por %p6325_p7, %p6324_p6 }
  0xc4   :  { %p6327_p9 = pnand %p6326_p8, %p6320_p5 }
  0xc6   :  { %6330 = shalt.err (!%p6327_p9)
}
  0xc7   :  { %180 = dma.hbm_to_vmem [thread:$0]  %s7404_s24, 16, %s178_s7, [#allocation18]  }
  0xc8   :  { %6353 = dma.done.wait [#allocation3], 32  }
  0xc9   :  { %6354 = vsyncadd [#allocation3], 4294967264 }
  0xca   :  { %6355 = dma.done.wait [#allocation6], 64  }
  0xcb   :  { %6356 = vsyncadd [#allocation6], 4294967232 }
  0xcc   :  { %6357 = dma.done.wait [#allocation9], 64  }
  0xcd   :  { %6358 = vsyncadd [#allocation9], 4294967232 }
  0xce   :  { %6359 = dma.done.wait [#allocation12], 64  }
  0xcf   :  { %6360 = vsyncadd [#allocation12], 4294967232 }
  0xd0   :  { %6361 = dma.done.wait [#allocation15], 32  }
  0xd1   :  { %6362 = vsyncadd [#allocation15], 4294967264 }
  0xd2   :  { %6363 = dma.done.wait [#allocation18], 16  }
  0xd3   :  { %6364 = vsyncadd [#allocation18], 4294967280  ;;  %v6379_v0 = vmov 0   ;;  %s7430_s8 = sld [smem:[#allocation27_spill]]  ;;  %s7431_s7 = sld [smem:[#allocation28_spill]]  ;;  %v213_v15 = vlaneseq  ;;  %vm235_vm0 = vcmask 523264  }
  0xd4   :  { %6017 = vset.pattern.permute.xlu0 %v6379_v0  ;;  %v6380_v18 = vmov 0.0   ;;  %s7432_s1 = sld [smem:[#allocation29_spill]]  ;;  %vm323_vm3 = vcmask 261120   ;;  %s7433_s24 = sld [smem:[#allocation33_spill]]  ;;  %v545_v41 = vld [vmem:[%s7390_s10] sm:$0xff]  ;;  %v546_v43 = vld [vmem:[%s7390_s10 + $0x8] sm:$0xff] }
  0xd5   :  { %v214_v16 = vand.u32 127, %v213_v15  ;;  %v5857_v46 = vpack.c.bf16 %v546_v43, %v545_v41  ;;  %v547_v48 = vld [vmem:[%s7390_s10 + $0x10] sm:$0xff]  ;;  %v548_v49 = vld [vmem:[%s7390_s10 + $0x18] sm:$0xff]  ;;  %s7434_s21 = sld [smem:[#allocation35_spill]]  ;;  %s7435_s11 = sld [smem:[#allocation31_spill]]  ;;  %vm6381_vm4 = vmmov 0  }
  0xd6   :  { %v5861_v50 = vpack.c.bf16 %v548_v49, %v547_v48  ;;  %v5088_v63 = vld [vmem:[#allocation2] ss:$0 sm:$0xff]  ;;  %s6382_s5 = smov 120   ;;  %vm679_vm5 = vcmask 64512   ;;  %s6383_s0 = smov 112   ;;  %vm4905_vm6 = vcmask 1041409  }
  0xd7   :  { %s6384_s3 = smov 104   ;;  %s7436_s17 = sld [smem:[#allocation30_spill]] }
  0xd9   :  { %v211_v1 = vld [vmem:[%s7430_s8] sm:$0xff]  ;;  %v228_v3 = vld [vmem:[%s7431_s7 + $0x8] sm:$0xff]  ;;  %v229_v4 = vld [vmem:[%s7431_s7 + $0x10] sm:$0xff] }
  0xda   :  { %v227_v2 = vld [vmem:[%s7431_s7] sm:$0xff]  ;;  %216 = vperm.xlu0 %6017, %v211_v1   ;;  %v230_v5 = vld [vmem:[%s7431_s7 + $0x18] sm:$0xff]  ;;  %v212_v6 = vld [vmem:[%s7430_s8 + $0x8] sm:$0xff] }
  0xdb   :  { %v5825_v7 = vpack.c.bf16 %v228_v3, %v227_v2  ;;  %v5829_v8 = vpack.c.bf16 %v230_v5, %v229_v4  ;;  %v231_v9 = vld [vmem:[%s7431_s7 + $0x20] sm:$0xff]  ;;  %v232_v10 = vld [vmem:[%s7431_s7 + $0x28] sm:$0xff]  ;;  %v233_v12 = vld [vmem:[%s7431_s7 + $0x30] sm:$0xff] }
  0xdc   :  { %v5833_v11 = vpack.c.bf16 %v232_v10, %v231_v9  ;;  %v234_v13 = vld [vmem:[%s7431_s7 + $0x38] sm:$0xff]  ;;  %v317_v22 = vld [vmem:[%s7432_s1] sm:$0xff]  ;;  %v368_v40 = vld [vmem:[%s7433_s24 + $0x8] sm:$0xff] }
  0xdd   :  { %5826 = vmatprep.subr.bf16.mxu0 %v5825_v7  ;;  %v5837_v14 = vpack.c.bf16 %v234_v13, %v233_v12  ;;  %v367_v39 = vld [vmem:[%s7433_s24] sm:$0xff]  ;;  %v369_v44 = vld [vmem:[%s7433_s24 + $0x10] sm:$0xff]  ;;  %v370_v45 = vld [vmem:[%s7433_s24 + $0x18] sm:$0xff] }
  0xde   :  { %219 = vperm.xlu0 %6017, %v212_v6   ;;  %5828 = vmatpush3.bf16.msra.mxu0 %v5825_v7  ;;  %v5841_v42 = vpack.c.bf16 %v368_v40, %v367_v39  ;;  %v5845_v47 = vpack.c.bf16 %v370_v45, %v369_v44  ;;  %v459_v51 = vld [vmem:[%s7434_s21] sm:$0xff]  ;;  %v460_v52 = vld [vmem:[%s7434_s21 + $0x8] sm:$0xff]  ;;  %v461_v4 = vld [vmem:[%s7434_s21 + $0x10] sm:$0xff] }
  0xdf   :  { %5830 = vmatprep.subr.bf16.mxu0 %v5829_v8  ;;  %v5849_v53 = vpack.c.bf16 %v460_v52, %v459_v51  ;;  %v5087_v61 = vld [vmem:[%s7435_s11] ss:$0 sm:$0xff]  ;;  %v462_v5 = vld [vmem:[%s7434_s21 + $0x18] sm:$0xff]  ;;  %v5089_v9 = vld [vmem:[#allocation5] ss:$0 sm:$0xff] }
  0xe0   :  { %5842 = vmatprep.subr.bf16.mxu1 %v5841_v42  ;;  %v6843_v40 = vld [vmem:[%s7436_s17] sm:$0xff] }
  0xe1   :  { %5844 = vmatpush3.bf16.msra.mxu1 %v5841_v42 }
  0xe2   :  { %5832 = vmatpush3.bf16.msra.mxu0 %v5829_v8  ;;  %5846 = vmatprep.subr.bf16.mxu1 %v5845_v47  ;;  %v5853_v8 = vpack.c.bf16 %v462_v5, %v461_v4 }
  0xe3   :  { %5834 = vmatprep.subr.bf16.mxu0 %v5833_v11 }
  0xe5   :  { %5848 = vmatpush3.bf16.msra.mxu1 %v5845_v47 }
  0xe6   :  { %5836 = vmatpush3.bf16.msra.mxu0 %v5833_v11  ;;  %5850 = vmatprep.subr.bf16.mxu1 %v5849_v53 }
  0xe7   :  { %5838 = vmatprep.subr.bf16.mxu0 %v5837_v14 }
  0xea   :  { %5840 = vmatpush3.bf16.msra.mxu0 %v5837_v14 }
  0xeb   :  { %5858 = vmatprep.subr.bf16.mxu0 %v5857_v46 }
 0x159   :  { %v217_v17 = vpop.permute.xlu0 %216 }
 0x15a   :  { %vm221_vm1 = vcmp.eq.s32.totalorder %v217_v17, %v214_v16 }
 0x15b   :  { %v5083_v19 = vsel %vm221_vm1, 1.0, %v6380_v18 }
 0x15c   :  { %5442 = vmatprep.mubr.msk.f32.mxu0 %vm235_vm0, %v5083_v19 }
 0x15d   :  { %v220_v20 = vpop.permute.xlu0 %219 }
 0x15e   :  { %vm222_vm2 = vcmp.eq.s32.totalorder %v220_v20, %v214_v16  ;;  %v5092_v16 = vld [vmem:[#allocation7] ss:$0 sm:$0xff] }
 0x15f   :  { %v5084_v21 = vsel %vm222_vm2, 1.0, %v6380_v18 }
 0x160   :  { %5443 = vmatmul.mubr.msk.f32.vlgmr.msra.gmra.mrb[0].mxu0 %vm235_vm0, %v5084_v21 }
 0x161   :  { %5860 = vmatpush3.bf16.msra.mxu0 %v5857_v46 }
 0x162   :  { %5862 = vmatprep.subr.bf16.mxu0 %v5861_v50 }
 0x165   :  { %5864 = vmatpush3.bf16.msra.mxu0 %v5861_v50 }
 0x166   :  { %5478 = vmatprep.subr.mxu0 %v6380_v18 }
 0x233   :  { %v5444_v23 = vpop.f32.mrb[0].mxu0 }
 0x234   :  { %v308_v24 = vpop.f32.mrb[1].mxu0  ;;  %v6716_v26 = vadd.f32 %v5444_v23, %v317_v22 }
 0x235   :  { %v6714_v25 = vadd.f32 %v317_v22, %v308_v24 }
 0x236   :  { %v327_v28 = vsel %vm323_vm3, %v6716_v26, 0.0 }
 0x237   :  { %v324_v27 = vsel %vm323_vm3, %v6714_v25, 0.0 }
 0x238   :  { %325 = vadd.xlane.f32.xlu1 %v324_v27 }
 0x23c   :  { %328 = vadd.xlane.f32.xlu1 %v327_v28 }
 0x2c5   :  { %v326_v29 = vpop.xlane.xlu1 %325 }
 0x2c6   :  { %v331_v30 = vmul.f32 0.03125, %v326_v29 }
 0x2c8   :  { %v333_v31 = vsub.f32 %v6714_v25, %v331_v30 }
 0x2c9   :  { %v329_v32 = vpop.xlane.xlu1 %328 }
 0x2ca   :  { %v332_v33 = vmul.f32 0.03125, %v329_v32  ;;  %v335_v34 = vmul.f32 %v333_v31, %v333_v31 }
 0x2cc   :  { %v334_v35 = vsub.f32 %v6716_v26, %v332_v33  ;;  %v337_v36 = vsel %vm323_vm3, %v335_v34, 0.0  ;;  %v5095_v33 = vld [vmem:[#allocation8] ss:$0 sm:$0xff] }
 0x2cd   :  { %338 = vadd.xlane.f32.xlu0 %v337_v36 }
 0x2ce   :  { %v336_v37 = vmul.f32 %v334_v35, %v334_v35 }
 0x2d0   :  { %v340_v38 = vsel %vm323_vm3, %v336_v37, 0.0 }
 0x2d1   :  { %341 = vadd.xlane.f32.xlu1 %v340_v38 }
 0x35a   :  { %v339_v54 = vpop.xlane.xlu0 %338 }
 0x35b   :  { %v343_v55 = vmul.f32 0.03125, %v339_v54 }
 0x35d   :  { %v345_v56 = vadd.f32 1e-05, %v343_v55 }
 0x35e   :  { %v342_v57 = vpop.xlane.xlu1 %341 }
 0x35f   :  { %6018 = vrsqrt.f32 %v345_v56  ;;  %v344_v58 = vmul.f32 0.03125, %v342_v57 }
 0x361   :  { %v346_v59 = vadd.f32 1e-05, %v344_v58 }
 0x363   :  { %6020 = vrsqrt.f32 %v346_v59 }
 0x369   :  { %v6019_v60 = vpop.eup %6018 }
 0x36a   :  { %v349_v62 = vmul.f32 %v6019_v60, %v333_v31 }
 0x36c   :  { %v357_v0 = vmul.f32 %v5087_v61, %v349_v62 }
 0x36d   :  { %v6021_v1 = vpop.eup %6020 }
 0x36e   :  { %v350_v2 = vmul.f32 %v6021_v1, %v334_v35  ;;  %v365_v3 = vadd.f32 %v5088_v63, %v357_v0 }
 0x370   :  { %v358_v6 = vmul.f32 %v5087_v61, %v350_v2  ;;  %5453 = vmatprep.mubr.msk.f32.mxu1 %vm323_vm3, %v365_v3  ;;  %5475 = vmatprep.mubr.msk.f32.mxu0 %vm323_vm3, %v365_v3 }
 0x372   :  { %v366_v7 = vadd.f32 %v5088_v63, %v358_v6 }
 0x374   :  { %5454 = vmatmul.mubr.msk.f32.vlgmr.msra.gmra.mrb[0].mxu1 %vm323_vm3, %v366_v7  ;;  %5476 = vmatmul.mubr.msk.f32.vlgmr.msra.gmra.mrb[2].mxu0 %vm323_vm3, %v366_v7 }
 0x375   :  { %5852 = vmatpush3.bf16.msra.mxu1 %v5849_v53  ;;  %5464 = vmatprep.mubr.msk.f32.mxu1 %vm323_vm3, %v365_v3 }
 0x376   :  { %5854 = vmatprep.subr.bf16.mxu1 %v5853_v8  ;;  %5480 = vmatprep.mubr.msk.f32.mxu0 %vm6381_vm4, %v6380_v18 }
 0x379   :  { %5856 = vmatpush3.bf16.msra.mxu1 %v5853_v8 }
 0x37a   :  { %5483 = vmatprep.subr.mxu1 %v6380_v18 }
 0x37c   :  { %5465 = vmatmul.mubr.msk.f32.vlgmr.msra.gmra.mrb[2].mxu1 %vm323_vm3, %v366_v7 }
 0x37d   :  { %5485 = vmatprep.mubr.msk.f32.mxu1 %vm6381_vm4, %v6380_v18 }
 0x447   :  { %v5455_v10 = vpop.f32.mrb[0].mxu1  ;;  %v6777_v11 = vpop.f32.mrb[2].mxu0 }
 0x448   :  { %v456_v12 = vadd.f32 %v5455_v10, %v5089_v9  ;;  %v450_v13 = vpop.f32.mrb[1].mxu1  ;;  %v622_v14 = vpop.f32.mrb[3].mxu0  ;;  %v6828_v37 = vadd.f32 %v6777_v11, %v5095_v33 }
 0x449   :  { %v451_v15 = vadd.f32 %v5089_v9, %v450_v13  ;;  %v6825_v35 = vadd.f32 %v5095_v33, %v622_v14 }
 0x44a   :  { %635 = vrot.lane.b32.xlu1 %v456_v12, %s6382_s5 }
 0x44e   :  { %633 = vrot.lane.b32.xlu1 %v451_v15, %s6382_s5 }
 0x44f   :  { %v5466_v17 = vpop.f32.mrb[2].mxu1 }
 0x450   :  { %v542_v19 = vadd.f32 %v5466_v17, %v5092_v16  ;;  %v536_v20 = vpop.f32.mrb[3].mxu1 }
 0x451   :  { %v537_v21 = vadd.f32 %v5092_v16, %v536_v20 }
 0x452   :  { %5484 = vmatpush3.xpose.msk.msra.mxu1 %vm679_vm5, %v542_v19  ;;  %649 = vrot.lane.b32.xlu1 %v542_v19, %s6382_s5 }
 0x453   :  { %651 = vrot.lane.b32.xlu0 %v537_v21, %s6383_s0  ;;  %5479 = vmatpush3.xpose.msk.msra.mxu0 %vm679_vm5, %v537_v21 }
 0x454   :  { %5493 = vmatprep.subr.mxu1 %v6380_v18  ;;  %5488 = vmatprep.subr.mxu0 %v6380_v18 }
 0x455   :  { %5486 = vmatmul.mubr.msk.f32.vlgmr.msra.gmra.mrb[4].mxu1 %vm679_vm5, %v456_v12 }
 0x456   :  { %5481 = vmatmul.mubr.msk.f32.vlgmr.msra.gmra.mrb[4].mxu0 %vm679_vm5, %v451_v15  ;;  %647 = vrot.lane.b32.xlu1 %v537_v21, %s6382_s5 }
 0x457   :  { %641 = vrot.lane.b32.xlu0 %v451_v15, %s6384_s3  ;;  %5495 = vmatprep.mubr.msk.f32.mxu1 %vm6381_vm4, %v6380_v18 }
 0x458   :  { %5490 = vmatprep.mubr.msk.f32.mxu0 %vm6381_vm4, %v6380_v18 }
 0x45a   :  { %653 = vrot.lane.b32.xlu1 %v542_v19, %s6383_s0 }
 0x45e   :  { %637 = vrot.lane.b32.xlu1 %v451_v15, %s6383_s0 }
 0x462   :  { %639 = vrot.lane.b32.xlu1 %v456_v12, %s6383_s0 }
 0x466   :  { %657 = vrot.lane.b32.xlu1 %v542_v19, %s6384_s3 }
 0x46a   :  { %655 = vrot.lane.b32.xlu1 %v537_v21, %s6384_s3 }
 0x46e   :  { %643 = vrot.lane.b32.xlu1 %v456_v12, %s6384_s3 }
 0x4bc   :  { %v636_v22 = vpop.permute.xlu1 %635 }
 0x4c0   :  { %v634_v23 = vpop.permute.xlu1 %633 }
 0x4c4   :  { %v650_v24 = vpop.permute.xlu1 %649 }
 0x4c5   :  { %5494 = vmatpush3.xpose.msk.msra.mxu1 %vm679_vm5, %v650_v24  ;;  %v652_v28 = vpop.permute.xlu0 %651 }
 0x4c6   :  { %5503 = vmatprep.subr.mxu1 %v6380_v18 }
 0x4c8   :  { %5496 = vmatmul.mubr.msk.f32.vlgmr.msra.gmra.mrb[6].mxu1 %vm679_vm5, %v636_v22  ;;  %v648_v27 = vpop.permute.xlu1 %647 }
 0x4c9   :  { %5489 = vmatpush3.xpose.msk.msra.mxu0 %vm679_vm5, %v648_v27  ;;  %5505 = vmatprep.mubr.msk.f32.mxu1 %vm6381_vm4, %v6380_v18  ;;  %v642_v36 = vpop.permute.xlu0 %641 }
 0x4ca   :  { %5498 = vmatprep.subr.mxu0 %v6380_v18 }
 0x4cc   :  { %v654_v29 = vpop.permute.xlu1 %653  ;;  %5491 = vmatmul.mubr.msk.f32.vlgmr.msra.gmra.mrb[6].mxu0 %vm679_vm5, %v634_v23 }
 0x4cd   :  { %5499 = vmatpush3.xpose.msk.msra.mxu0 %vm679_vm5, %v652_v28  ;;  %5504 = vmatpush3.xpose.msk.msra.mxu1 %vm679_vm5, %v654_v29 }
 0x4ce   :  { %5500 = vmatprep.mubr.msk.f32.mxu0 %vm6381_vm4, %v6380_v18  ;;  %5513 = vmatprep.subr.mxu1 %v6380_v18 }
 0x4cf   :  { %5508 = vmatprep.subr.mxu0 %v6380_v18 }
 0x4d0   :  { %v638_v30 = vpop.permute.xlu1 %637 }
 0x4d1   :  { %5501 = vmatmul.mubr.msk.f32.vlgmr.msra.gmra.mrb[8].mxu0 %vm679_vm5, %v638_v30 }
 0x4d2   :  { %5510 = vmatprep.mubr.msk.f32.mxu0 %vm6381_vm4, %v6380_v18 }
 0x4d4   :  { %v640_v31 = vpop.permute.xlu1 %639 }
 0x4d5   :  { %5506 = vmatmul.mubr.msk.f32.vlgmr.msra.gmra.mrb[8].mxu1 %vm679_vm5, %v640_v31 }
 0x4d6   :  { %5515 = vmatprep.mubr.msk.f32.mxu1 %vm6381_vm4, %v6380_v18 }
 0x4d8   :  { %v658_v32 = vpop.permute.xlu1 %657 }
 0x4d9   :  { %5514 = vmatpush3.xpose.msk.msra.mxu1 %vm679_vm5, %v658_v32 }
 0x4da   :  { %5523 = vmatprep.subr.mxu1 %v6380_v18 }
 0x4dc   :  { %v656_v34 = vpop.permute.xlu1 %655 }
 0x4dd   :  { %5509 = vmatpush3.xpose.msk.msra.mxu0 %vm679_vm5, %v656_v34 }
 0x4de   :  { %5518 = vmatprep.subr.mxu0 %v6380_v18 }
 0x4e0   :  { %v644_v38 = vpop.permute.xlu1 %643  ;;  %5511 = vmatmul.mubr.msk.f32.vlgmr.msra.gmra.mrb[10].mxu0 %vm679_vm5, %v642_v36 }
 0x4e1   :  { %5516 = vmatmul.mubr.msk.f32.vlgmr.msra.gmra.mrb[10].mxu1 %vm679_vm5, %v644_v38  ;;  %5519 = vmatpush3.msra.mxu0 %v6825_v35 }
 0x4e2   :  { %5524 = vmatpush3.msra.mxu1 %v6828_v37  ;;  %5525 = vmatprep.mubr.msk.f32.mxu1 %vm6381_vm4, %v6380_v18 }
 0x4e3   :  { %5520 = vmatprep.mubr.msk.f32.mxu0 %vm6381_vm4, %v6380_v18  ;;  %5528 = vmatprep.subr.mxu0 %v6380_v18 }
 0x4e4   :  { %5533 = vmatprep.subr.mxu1 %v6380_v18 }
 0x528   :  { %v824_v39 = vpop.f32.mrb[4].mxu1 }
 0x529   :  { %v1273_v41 = vmul.f32 0.35355338, %v824_v39  ;;  %v750_v42 = vpop.f32.mrb[4].mxu0  ;;  %v5487_v43 = vpop.f32.mrb[5].mxu1 }
 0x52a   :  { %v1272_v44 = vmul.f32 0.35355338, %v750_v42  ;;  %v5482_v45 = vpop.f32.mrb[5].mxu0 }
 0x52b   :  { %v1281_v46 = vadd.f32 %v1273_v41, %v6843_v40 }
 0x52c   :  { %v1280_v47 = vadd.f32 %v1272_v44, %v6843_v40 }
 0x52d   :  { %v1291_v48 = vsel %vm679_vm5, %v1281_v46, -inf }
 0x52e   :  { %1292 = vmax.xlane.f32.xlu1 %v1291_v48  ;;  %v1288_v49 = vsel %vm679_vm5, %v1280_v47, -inf }
 0x52f   :  { %1289 = vmax.xlane.f32.xlu0 %v1288_v49 }
 0x59b   :  { %v972_v50 = vpop.f32.mrb[6].mxu1 }
 0x59c   :  { %v5497_v51 = vpop.f32.mrb[7].mxu1  ;;  %v1275_v53 = vmul.f32 0.35355338, %v972_v50 }
 0x59e   :  { %v1283_v59 = vadd.f32 %v1275_v53, %v6843_v40 }
 0x59f   :  { %v898_v52 = vpop.f32.mrb[6].mxu0 }
 0x5a0   :  { %v1274_v54 = vmul.f32 0.35355338, %v898_v52  ;;  %v5492_v55 = vpop.f32.mrb[7].mxu0  ;;  %v1297_v0 = vsel %vm679_vm5, %v1283_v59, -inf }
 0x5a2   :  { %v1282_v56 = vadd.f32 %v1274_v54, %v6843_v40 }
 0x5a4   :  { %v1046_v57 = vpop.f32.mrb[8].mxu0  ;;  %v1294_v58 = vsel %vm679_vm5, %v1282_v56, -inf }
 0x5a5   :  { %v1276_v60 = vmul.f32 0.35355338, %v1046_v57  ;;  %1295 = vmax.xlane.f32.xlu0 %v1294_v58  ;;  %v5502_v61 = vpop.f32.mrb[9].mxu0 }
 0x5a7   :  { %v1284_v62 = vadd.f32 %v1276_v60, %v6843_v40 }
 0x5a8   :  { %v1120_v63 = vpop.f32.mrb[8].mxu1 }
 0x5a9   :  { %v1277_v1 = vmul.f32 0.35355338, %v1120_v63  ;;  %v5507_v2 = vpop.f32.mrb[9].mxu1  ;;  %1298 = vmax.xlane.f32.xlu0 %v1297_v0  ;;  %v1300_v3 = vsel %vm679_vm5, %v1284_v62, -inf }
 0x5aa   :  { %1301 = vmax.xlane.f32.xlu1 %v1300_v3 }
 0x5ab   :  { %v6856_v4 = vadd.f32 %v1277_v1, %v6843_v40 }
 0x5ad   :  { %v1303_v5 = vsel %vm679_vm5, %v6856_v4, -inf }
 0x5ae   :  { %1304 = vmax.xlane.f32.xlu0 %v1303_v5 }
 0x5b3   :  { %v1194_v6 = vpop.f32.mrb[10].mxu0 }
 0x5b4   :  { %v1278_v7 = vmul.f32 0.35355338, %v1194_v6  ;;  %v5512_v8 = vpop.f32.mrb[11].mxu0  ;;  %v1268_v9 = vpop.f32.mrb[10].mxu1 }
 0x5b5   :  { %v1279_v10 = vmul.f32 0.35355338, %v1268_v9  ;;  %v5517_v11 = vpop.f32.mrb[11].mxu1 }
 0x5b6   :  { %v1286_v12 = vadd.f32 %v1278_v7, %v6843_v40 }
 0x5b7   :  { %v6862_v13 = vadd.f32 %v1279_v10, %v6843_v40 }
 0x5b8   :  { %v1306_v14 = vsel %vm679_vm5, %v1286_v12, -inf }
 0x5b9   :  { %1307 = vmax.xlane.f32.xlu1 %v1306_v14  ;;  %v1309_v15 = vsel %vm679_vm5, %v6862_v13, -inf }
 0x5ba   :  { %1310 = vmax.xlane.f32.xlu0 %v1309_v15 }
 0x5bb   :  { %v1293_v16 = vpop.xlane.xlu1 %1292 }
 0x5bc   :  { %v1313_v17 = vsub.f32 %v1281_v46, %v1293_v16  ;;  %v1290_v22 = vpop.xlane.xlu0 %1289 }
 0x5bd   :  { %v1312_v23 = vsub.f32 %v1280_v47, %v1290_v22 }
 0x5be   :  { %v1322_v19 = vmul.f32 1.442695, %v1313_v17 }
 0x5bf   :  { %v1320_v24 = vmul.f32 1.442695, %v1312_v23 }
 0x5c0   :  { %6022 = vpow2.f32 %v1322_v19 }
 0x5c1   :  { %6024 = vpow2.f32 %v1320_v24 }
 0x5ca   :  { %v6023_v20 = vpop.eup %6022  ;;  %661 = vrot.lane.b32.xlu1 %v6825_v35, %s6382_s5 }
 0x5cb   :  { %v1339_v21 = vsel %vm679_vm5, %v6023_v20, 0.0  ;;  %v6025_v27 = vpop.eup %6024 }
 0x5cc   :  { %1340 = vadd.xlane.f32.xlu0 %v1339_v21  ;;  %v1336_v28 = vsel %vm679_vm5, %v6025_v27, 0.0 }
 0x5ee   :  { %1337 = vadd.xlane.f32.xlu1 %v1336_v28 }
 0x5ff   :  { %667 = vrot.lane.b32.xlu1 %v6825_v35, %s6383_s0 }
 0x603   :  { %669 = vrot.lane.b32.xlu1 %v6828_v37, %s6383_s0 }
 0x632   :  { %v1296_v29 = vpop.xlane.xlu0 %1295 }
 0x633   :  { %v1314_v30 = vsub.f32 %v1282_v56, %v1296_v29 }
 0x635   :  { %v1324_v31 = vmul.f32 1.442695, %v1314_v30  ;;  %v5125_v30 = vld [vmem:[%s7392_s12 + $0x8] sm:$0xff] }
 0x636   :  { %v1299_v32 = vpop.xlane.xlu0 %1298 }
 0x637   :  { %6026 = vpow2.f32 %v1324_v31  ;;  %v1315_v33 = vsub.f32 %v1283_v59, %v1299_v32  ;;  %v1302_v34 = vpop.xlane.xlu1 %1301 }
 0x638   :  { %v1316_v36 = vsub.f32 %v1284_v62, %v1302_v34 }
 0x639   :  { %v1326_v38 = vmul.f32 1.442695, %v1315_v33 }
 0x63a   :  { %v1328_v39 = vmul.f32 1.442695, %v1316_v36  ;;  %v5128_v36 = vld [vmem:[%s7392_s12 + $0x10] sm:$0xff] }
 0x63b   :  { %6028 = vpow2.f32 %v1326_v38  ;;  %v1305_v50 = vpop.xlane.xlu0 %1304 }
 0x63c   :  { %6030 = vpow2.f32 %v1328_v39  ;;  %v1317_v57 = vsub.f32 %v6856_v4, %v1305_v50 }
 0x63e   :  { %v1330_v58 = vmul.f32 1.442695, %v1317_v57 }
 0x641   :  { %v6027_v41 = vpop.eup %6026 }
 0x642   :  { %v1342_v42 = vsel %vm679_vm5, %v6027_v41, 0.0 }
 0x643   :  { %1343 = vadd.xlane.f32.xlu1 %v1342_v42  ;;  %v5131_v42 = vld [vmem:[%s7392_s12 + $0x18] sm:$0xff] }
 0x645   :  { %v6876_v43 = vpop.eup %6028 }
 0x646   :  { %v6878_v44 = vpop.eup %6030  ;;  %v1308_v45 = vpop.xlane.xlu1 %1307  ;;  %v1345_v46 = vsel %vm679_vm5, %v6876_v43, 0.0 }
 0x647   :  { %v1318_v47 = vsub.f32 %v1286_v12, %v1308_v45  ;;  %1346 = vadd.xlane.f32.xlu0 %v1345_v46  ;;  %v1348_v48 = vsel %vm679_vm5, %v6878_v44, 0.0  ;;  %v1311_v52 = vpop.xlane.xlu0 %1310 }
 0x648   :  { %1349 = vadd.xlane.f32.xlu1 %v1348_v48  ;;  %v1319_v59 = vsub.f32 %v6862_v13, %v1311_v52  ;;  %v5124_v52 = vld [vmem:[#allocation10] ss:$0 sm:$0xff] }
 0x649   :  { %v1332_v49 = vmul.f32 1.442695, %v1318_v47 }
 0x64a   :  { %v1334_v60 = vmul.f32 1.442695, %v1319_v59  ;;  %v662_v61 = vpop.permute.xlu1 %661 }
 0x64b   :  { %6032 = vpow2.f32 %v1332_v49 }
 0x655   :  { %v6884_v51 = vpop.eup %6032 }
 0x656   :  { %v1354_v53 = vsel %vm679_vm5, %v6884_v51, 0.0 }
 0x657   :  { %1355 = vadd.xlane.f32.xlu1 %v1354_v53 }
 0x659   :  { %v1341_v54 = vpop.xlane.xlu0 %1340 }
 0x65a   :  { %6034 = vrcp.f32 %v1341_v54 }
 0x65b   :  { %6036 = vpow2.f32 %v1330_v58 }
 0x65c   :  { %6038 = vpow2.f32 %v1334_v60 }
 0x65d   :  { %663 = vrot.lane.b32.xlu0 %v6828_v37, %s6382_s5 }
 0x664   :  { %v6035_v55 = vpop.eup %6034 }
 0x665   :  { %v1369_v56 = vmul.f32 %v6035_v55, %v6023_v20  ;;  %v6037_v62 = vpop.eup %6036  ;;  %v1961_v20 = vld [vmem:[%s7392_s12] sm:$0xff] }
 0x666   :  { %v1351_v0 = vsel %vm679_vm5, %v6037_v62, 0.0  ;;  %v6039_v1 = vpop.eup %6038 }
 0x667   :  { %5526 = vmatmul.mubr.msk.f32.vlgmr.msra.gmra.mrb[12].mxu1 %vm679_vm5, %v1369_v56  ;;  %v1357_v2 = vsel %vm679_vm5, %v6039_v1, 0.0 }
 0x668   :  { %675 = vrot.lane.b32.xlu1 %v6828_v37, %s6384_s3  ;;  %5535 = vmatprep.mubr.msk.f32.mxu1 %vm6381_vm4, %v6380_v18 }
 0x67b   :  { %v1338_v63 = vpop.xlane.xlu1 %1337 }
 0x67c   :  { %6040 = vrcp.f32 %v1338_v63  ;;  %1352 = vadd.xlane.f32.xlu0 %v1351_v0 }
 0x67f   :  { %v668_v4 = vpop.permute.xlu1 %667 }
 0x680   :  { %1358 = vadd.xlane.f32.xlu0 %v1357_v2 }
 0x683   :  { %v670_v5 = vpop.permute.xlu1 %669 }
 0x686   :  { %v6041_v37 = vpop.eup %6040 }
 0x687   :  { %v1368_v3 = vmul.f32 %v6041_v37, %v6025_v27 }
 0x689   :  { %5521 = vmatmul.mubr.msk.f32.vlgmr.msra.gmra.mrb[12].mxu0 %vm679_vm5, %v1368_v3 }
 0x68a   :  { %5529 = vmatpush3.msra.mxu0 %v662_v61  ;;  %5530 = vmatprep.mubr.msk.f32.mxu0 %vm6381_vm4, %v6380_v18 }
 0x68b   :  { %5538 = vmatprep.subr.mxu0 %v6380_v18 }
 0x696   :  { %673 = vrot.lane.b32.xlu0 %v6825_v35, %s6384_s3 }
 0x6d0   :  { %v1344_v6 = vpop.xlane.xlu1 %1343 }
 0x6d1   :  { %6042 = vrcp.f32 %v1344_v6 }
 0x6d4   :  { %v1347_v7 = vpop.xlane.xlu0 %1346 }
 0x6d5   :  { %6044 = vrcp.f32 %v1347_v7  ;;  %v1350_v8 = vpop.xlane.xlu1 %1349  ;;  %v2354_v7 = vld [vmem:[%s7396_s16 + $0x10] sm:$0xff] }
 0x6d6   :  { %6046 = vrcp.f32 %v1350_v8  ;;  %v2355_v8 = vld [vmem:[%s7396_s16 + $0x18] sm:$0xff] }
 0x6d8   :  { %v664_v9 = vpop.permute.xlu0 %663 }
 0x6d9   :  { %5534 = vmatpush3.msra.mxu1 %v664_v9  ;;  %v5869_v9 = vpack.c.bf16 %v2355_v8, %v2354_v7 }
 0x6da   :  { %5543 = vmatprep.subr.mxu1 %v6380_v18 }
 0x6db   :  { %v6043_v10 = vpop.eup %6042 }
 0x6dc   :  { %v1370_v11 = vmul.f32 %v6043_v10, %v6027_v41  ;;  %v2462_v10 = vld [vmem:[%s7398_s18] sm:$0xff] }
 0x6de   :  { %5531 = vmatmul.mubr.msk.f32.vlgmr.msra.gmra.mrb[14].mxu0 %vm679_vm5, %v1370_v11  ;;  %v2463_v11 = vld [vmem:[%s7398_s18 + $0x8] sm:$0xff] }
 0x6df   :  { %v6045_v12 = vpop.eup %6044  ;;  %5539 = vmatpush3.msra.mxu0 %v668_v4  ;;  %5540 = vmatprep.mubr.msk.f32.mxu0 %vm6381_vm4, %v6380_v18  ;;  %v2352_v4 = vld [vmem:[%s7396_s16] sm:$0xff] }
 0x6e0   :  { %v6047_v35 = vpop.eup %6046  ;;  %v1371_v13 = vmul.f32 %v6045_v12, %v6876_v43  ;;  %5548 = vmatprep.subr.mxu0 %v6380_v18  ;;  %v5873_v12 = vpack.c.bf16 %v2463_v11, %v2462_v10 }
 0x6e1   :  { %v1372_v14 = vmul.f32 %v6047_v35, %v6878_v44 }
 0x6e2   :  { %5536 = vmatmul.mubr.msk.f32.vlgmr.msra.gmra.mrb[14].mxu1 %vm679_vm5, %v1371_v13 }
 0x6e3   :  { %5544 = vmatpush3.msra.mxu1 %v670_v5  ;;  %5541 = vmatmul.mubr.msk.f32.vlgmr.msra.gmra.mrb[16].mxu0 %vm679_vm5, %v1372_v14  ;;  %v2353_v5 = vld [vmem:[%s7396_s16 + $0x8] sm:$0xff] }
 0x6e4   :  { %5550 = vmatprep.mubr.msk.f32.mxu0 %vm6381_vm4, %v6380_v18  ;;  %5545 = vmatprep.mubr.msk.f32.mxu1 %vm6381_vm4, %v6380_v18  ;;  %v1356_v15 = vpop.xlane.xlu1 %1355  ;;  %v5865_v6 = vpack.c.bf16 %v2353_v5, %v2352_v4 }
 0x6e5   :  { %5553 = vmatprep.subr.mxu1 %v6380_v18  ;;  %6048 = vrcp.f32 %v1356_v15 }
 0x6e8   :  { %v676_v27 = vpop.permute.xlu1 %675 }
 0x6ef   :  { %v6049_v19 = vpop.eup %6048 }
 0x6f0   :  { %v1374_v21 = vmul.f32 %v6049_v19, %v6884_v51 }
 0x709   :  { %v1353_v16 = vpop.xlane.xlu0 %1352 }
 0x70a   :  { %6050 = vrcp.f32 %v1353_v16 }
 0x70d   :  { %v1359_v17 = vpop.xlane.xlu0 %1358 }
 0x70e   :  { %6052 = vrcp.f32 %v1359_v17 }
 0x711   :  { %v674_v22 = vpop.permute.xlu0 %673 }
 0x712   :  { %5549 = vmatpush3.msra.mxu0 %v674_v22  ;;  %v5135_v22 = vld [vmem:[%s7395_s15] ss:$0 sm:$0xff] }
 0x713   :  { %5551 = vmatmul.mubr.msk.f32.vlgmr.msra.gmra.mrb[18].mxu0 %vm679_vm5, %v1374_v21  ;;  %5558 = vmatprep.subr.mxu0 %v1961_v20 }
 0x714   :  { %v6051_v23 = vpop.eup %6050  ;;  %5559 = vmatpush3.msra.mxu0 %v1961_v20  ;;  %v5134_v20 = vld [vmem:[%s7394_s14] ss:$0 sm:$0xff] }
 0x715   :  { %v1373_v24 = vmul.f32 %v6051_v23, %v6037_v62  ;;  %5563 = vmatprep.subr.mxu0 %v5125_v30 }
 0x717   :  { %5546 = vmatmul.mubr.msk.f32.vlgmr.msra.gmra.mrb[16].mxu1 %vm679_vm5, %v1373_v24 }
 0x718   :  { %v6053_v28 = vpop.eup %6052  ;;  %5554 = vmatpush3.msra.mxu1 %v676_v27  ;;  %5555 = vmatprep.mubr.msk.f32.mxu1 %vm6381_vm4, %v6380_v18 }
 0x719   :  { %v1375_v29 = vmul.f32 %v6053_v28, %v6039_v1  ;;  %5866 = vmatprep.subr.bf16.mxu1 %v5865_v6 }
 0x71b   :  { %5556 = vmatmul.mubr.msk.f32.vlgmr.msra.gmra.mrb[18].mxu1 %vm679_vm5, %v1375_v29 }
 0x71c   :  { %5868 = vmatpush3.bf16.msra.mxu1 %v5865_v6 }
 0x71d   :  { %5870 = vmatprep.subr.bf16.mxu1 %v5869_v9 }
 0x720   :  { %5872 = vmatpush3.bf16.msra.mxu1 %v5869_v9 }
 0x721   :  { %5874 = vmatprep.subr.bf16.mxu1 %v5873_v12 }
 0x73a   :  { %v1518_v31 = vpop.f32.mrb[12].mxu1 }
 0x73b   :  { %v5527_v32 = vpop.f32.mrb[13].mxu1 }
 0x73c   :  { %v2465_v32 = vld [vmem:[%s7398_s18 + $0x18] sm:$0xff] }
 0x75c   :  { %v1445_v33 = vpop.f32.mrb[12].mxu0 }
 0x75d   :  { %v5522_v34 = vpop.f32.mrb[13].mxu0  ;;  %5560 = vmatprep.mubr.msk.f32.mxu0 %vm679_vm5, %v1445_v33 }
 0x75e   :  { %5561 = vmatmul.mubr.msk.f32.vlgmr.msra.gmra.mrb[20].mxu0 %vm679_vm5, %v1518_v31  ;;  %v2464_v31 = vld [vmem:[%s7398_s18 + $0x10] sm:$0xff]  ;;  %v2466_v34 = vld [vmem:[%s7398_s18 + $0x20] sm:$0xff] }
 0x75f   :  { %5564 = vmatpush3.msra.mxu0 %v5125_v30  ;;  %v5877_v33 = vpack.c.bf16 %v2465_v32, %v2464_v31  ;;  %v5143_v32 = vld [vmem:[%s7433_s24 + $0x20] sm:$0xff] }
 0x760   :  { %5568 = vmatprep.subr.mxu0 %v5128_v36 }
 0x7b1   :  { %v1591_v38 = vpop.f32.mrb[14].mxu0 }
 0x7b2   :  { %v5532_v39 = vpop.f32.mrb[15].mxu0  ;;  %5565 = vmatprep.mubr.msk.f32.mxu0 %vm679_vm5, %v1591_v38 }
 0x7b3   :  { %v2468_v39 = vld [vmem:[%s7398_s18 + $0x30] sm:$0xff] }
 0x7b5   :  { %v1664_v41 = vpop.f32.mrb[14].mxu1 }
 0x7b6   :  { %v5537_v43 = vpop.f32.mrb[15].mxu1  ;;  %v1737_v44 = vpop.f32.mrb[16].mxu0  ;;  %5566 = vmatmul.mubr.msk.f32.vlgmr.msra.gmra.mrb[20].mxu0 %vm679_vm5, %v1664_v41  ;;  %v2469_v41 = vld [vmem:[%s7398_s18 + $0x38] sm:$0xff] }
 0x7b7   :  { %v5542_v45 = vpop.f32.mrb[17].mxu0  ;;  %5570 = vmatprep.mubr.msk.f32.mxu0 %vm679_vm5, %v1737_v44  ;;  %5569 = vmatpush3.msra.mxu0 %v5128_v36  ;;  %v2467_v36 = vld [vmem:[%s7398_s18 + $0x28] sm:$0xff]  ;;  %v2470_v43 = vld [vmem:[%s7398_s18 + $0x40] sm:$0xff] }
 0x7b8   :  { %5573 = vmatprep.subr.mxu0 %v5131_v42  ;;  %v5881_v38 = vpack.c.bf16 %v2467_v36, %v2466_v34  ;;  %v2471_v44 = vld [vmem:[%s7398_s18 + $0x48] sm:$0xff]  ;;  %v5145_v36 = vld [vmem:[%s7433_s24 + $0x30] sm:$0xff] }
 0x7b9   :  { %v5889_v45 = vpack.c.bf16 %v2471_v44, %v2470_v43 }
 0x7e6   :  { %v1883_v46 = vpop.f32.mrb[18].mxu0 }
 0x7e7   :  { %v5552_v47 = vpop.f32.mrb[19].mxu0 }
 0x7e8   :  { %v2473_v47 = vld [vmem:[%s7398_s18 + $0x58] sm:$0xff] }
 0x7ea   :  { %v1810_v48 = vpop.f32.mrb[16].mxu1 }
 0x7eb   :  { %v5547_v49 = vpop.f32.mrb[17].mxu1  ;;  %5571 = vmatmul.mubr.msk.f32.vlgmr.msra.gmra.mrb[20].mxu0 %vm679_vm5, %v1810_v48 }
 0x7ec   :  { %5574 = vmatpush3.msra.mxu0 %v5131_v42  ;;  %5575 = vmatprep.mubr.msk.f32.mxu0 %vm679_vm5, %v1883_v46  ;;  %v5885_v42 = vpack.c.bf16 %v2469_v41, %v2468_v39  ;;  %v2472_v46 = vld [vmem:[%s7398_s18 + $0x50] sm:$0xff]  ;;  %v2474_v49 = vld [vmem:[%s7398_s18 + $0x60] sm:$0xff] }
 0x7ed   :  { %v5893_v48 = vpack.c.bf16 %v2473_v47, %v2472_v46  ;;  %v5150_v41 = vld [vmem:[%s7434_s21 + $0x20] sm:$0xff] }
 0x7ee   :  { %v1956_v50 = vpop.f32.mrb[18].mxu1 }
 0x7ef   :  { %v5557_v51 = vpop.f32.mrb[19].mxu1 }
 0x7f3   :  { %5576 = vmatmul.mubr.msk.f32.vlgmr.msra.gmra.mrb[20].mxu0 %vm679_vm5, %v1956_v50  ;;  %v2475_v50 = vld [vmem:[%s7398_s18 + $0x68] sm:$0xff] }
 0x7f4   :  { %v5897_v51 = vpack.c.bf16 %v2475_v50, %v2474_v49 }
 0x8c6   :  { %v5577_v53 = vpop.f32.mrb[20].mxu0 }
 0x8c7   :  { %v5981_v54 = vadd.f32 %v5577_v53, %v5124_v52  ;;  %v2295_v55 = vpop.f32.mrb[21].mxu0  ;;  %v2477_v53 = vld [vmem:[%s7398_s18 + $0x78] sm:$0xff] }
 0x8c8   :  { %v5982_v56 = vadd.f32 %v5124_v52, %v2295_v55  ;;  %v2476_v52 = vld [vmem:[%s7398_s18 + $0x70] sm:$0xff]  ;;  %v5136_v55 = vld [vmem:[#allocation11] ss:$0 sm:$0xff] }
 0x8c9   :  { %v6946_v57 = vadd.f32 %v5981_v54, %v6716_v26  ;;  %v5901_v54 = vpack.c.bf16 %v2477_v53, %v2476_v52 }
 0x8ca   :  { %v6949_v58 = vadd.f32 %v5982_v56, %v6714_v25 }
 0x8cb   :  { %v2313_v59 = vsel %vm323_vm3, %v6946_v57, 0.0 }
 0x8cc   :  { %2314 = vadd.xlane.f32.xlu1 %v2313_v59  ;;  %v2310_v60 = vsel %vm323_vm3, %v6949_v58, 0.0 }
 0x8cd   :  { %2311 = vadd.xlane.f32.xlu0 %v2310_v60 }
 0x959   :  { %v2315_v61 = vpop.xlane.xlu1 %2314 }
 0x95a   :  { %v2317_v62 = vmul.f32 0.03125, %v2315_v61  ;;  %v2312_v63 = vpop.xlane.xlu0 %2311 }
 0x95b   :  { %v2316_v0 = vmul.f32 0.03125, %v2312_v63 }
 0x95c   :  { %v2319_v1 = vsub.f32 %v6946_v57, %v2317_v62 }
 0x95d   :  { %v2318_v26 = vsub.f32 %v6949_v58, %v2316_v0 }
 0x95e   :  { %v2321_v37 = vmul.f32 %v2319_v1, %v2319_v1 }
 0x95f   :  { %v2320_v2 = vmul.f32 %v2318_v26, %v2318_v26 }
 0x960   :  { %v2325_v3 = vsel %vm323_vm3, %v2321_v37, 0.0 }
 0x961   :  { %v2322_v25 = vsel %vm323_vm3, %v2320_v2, 0.0 }
 0x962   :  { %2323 = vadd.xlane.f32.xlu0 %v2322_v25 }
 0x966   :  { %2326 = vadd.xlane.f32.xlu0 %v2325_v3 }
 0x9ef   :  { %v2324_v35 = vpop.xlane.xlu0 %2323 }
 0x9f0   :  { %v2328_v13 = vmul.f32 0.03125, %v2324_v35 }
 0x9f2   :  { %v2330_v14 = vadd.f32 1e-05, %v2328_v13  ;;  %v5139_v13 = vld [vmem:[#allocation13] ss:$0 sm:$0xff] }
 0x9f3   :  { %v2327_v15 = vpop.xlane.xlu0 %2326 }
 0x9f4   :  { %6054 = vrsqrt.f32 %v2330_v14  ;;  %v2329_v16 = vmul.f32 0.03125, %v2327_v15 }
 0x9f6   :  { %v2331_v17 = vadd.f32 1e-05, %v2329_v16 }
 0x9f8   :  { %6056 = vrsqrt.f32 %v2331_v17 }
 0x9fe   :  { %v6055_v19 = vpop.eup %6054 }
 0x9ff   :  { %v2334_v21 = vmul.f32 %v6055_v19, %v2318_v26 }
 0xa01   :  { %v2342_v23 = vmul.f32 %v5134_v20, %v2334_v21 }
 0xa02   :  { %v6057_v24 = vpop.eup %6056 }
 0xa03   :  { %v2335_v27 = vmul.f32 %v6057_v24, %v2319_v1  ;;  %v2350_v28 = vadd.f32 %v5135_v22, %v2342_v23 }
 0xa05   :  { %v2343_v29 = vmul.f32 %v5134_v20, %v2335_v27  ;;  %5586 = vmatprep.mubr.msk.f32.mxu1 %vm323_vm3, %v2350_v28 }
 0xa07   :  { %v2351_v30 = vadd.f32 %v5135_v22, %v2343_v29 }
 0xa09   :  { %5587 = vmatmul.mubr.msk.f32.vlgmr.msra.gmra.mrb[20].mxu1 %vm323_vm3, %v2351_v30 }
 0xa0a   :  { %5876 = vmatpush3.bf16.msra.mxu1 %v5873_v12 }
 0xa0b   :  { %5878 = vmatprep.subr.bf16.mxu1 %v5877_v33 }
 0xa0e   :  { %5880 = vmatpush3.bf16.msra.mxu1 %v5877_v33  ;;  %v5144_v33 = vld [vmem:[%s7433_s24 + $0x28] sm:$0xff] }
 0xa0f   :  { %5882 = vmatprep.subr.bf16.mxu1 %v5881_v38  ;;  %v5905_v34 = vpack.c.bf16 %v5144_v33, %v5143_v32 }
 0xa11   :  { %5906 = vmatprep.subr.bf16.mxu0 %v5905_v34 }
 0xa12   :  { %5884 = vmatpush3.bf16.msra.mxu1 %v5881_v38  ;;  %v5146_v38 = vld [vmem:[%s7433_s24 + $0x38] sm:$0xff]  ;;  %5908 = vmatpush3.bf16.msra.mxu0 %v5905_v34 }
 0xa13   :  { %5886 = vmatprep.subr.bf16.mxu1 %v5885_v42  ;;  %v5909_v39 = vpack.c.bf16 %v5146_v38, %v5145_v36 }
 0xa15   :  { %5910 = vmatprep.subr.bf16.mxu0 %v5909_v39 }
 0xa16   :  { %5888 = vmatpush3.bf16.msra.mxu1 %v5885_v42  ;;  %5912 = vmatpush3.bf16.msra.mxu0 %v5909_v39  ;;  %v5151_v42 = vld [vmem:[%s7434_s21 + $0x28] sm:$0xff] }
 0xa17   :  { %5890 = vmatprep.subr.bf16.mxu1 %v5889_v45  ;;  %v5913_v43 = vpack.c.bf16 %v5151_v42, %v5150_v41 }
 0xa19   :  { %5914 = vmatprep.subr.bf16.mxu0 %v5913_v43 }
 0xa1a   :  { %5892 = vmatpush3.bf16.msra.mxu1 %v5889_v45 }
 0xa1b   :  { %5894 = vmatprep.subr.bf16.mxu1 %v5893_v48 }
 0xa1e   :  { %5896 = vmatpush3.bf16.msra.mxu1 %v5893_v48 }
 0xa1f   :  { %5898 = vmatprep.subr.bf16.mxu1 %v5897_v51 }
 0xa22   :  { %5900 = vmatpush3.bf16.msra.mxu1 %v5897_v51  ;;  %v5141_v51 = vld [vmem:[%s7435_s11 + $0x1] ss:$0 sm:$0xff] }
 0xa23   :  { %5902 = vmatprep.subr.bf16.mxu1 %v5901_v54 }
 0xa26   :  { %5904 = vmatpush3.bf16.msra.mxu1 %v5901_v54 }
 0xa27   :  { %5662 = vmatprep.subr.mxu1 %v6380_v18 }
 0xadc   :  { %v5588_v56 = vpop.f32.mrb[20].mxu1 }
 0xadd   :  { %v2441_v59 = vadd.f32 %v5588_v56, %v5136_v55  ;;  %v2435_v60 = vpop.f32.mrb[21].mxu1 }
 0xade   :  { %v2436_v61 = vadd.f32 %v5136_v55, %v2435_v60  ;;  %v5142_v55 = vld [vmem:[#allocation2 + $0x1] ss:$0 sm:$0xff]  ;;  %v5152_v60 = vld [vmem:[%s7434_s21 + $0x30] sm:$0xff] }
 0xadf   :  { %v2447_v62 = vmul.f32 0.044715, %v2441_v59  ;;  %v2445_v10 = vmul.f32 0.5, %v2441_v59 }
 0xae0   :  { %v2446_v63 = vmul.f32 0.044715, %v2436_v61  ;;  %v2444_v8 = vmul.f32 0.5, %v2436_v61 }
 0xae1   :  { %v2449_v0 = vmul.f32 %v2447_v62, %v2441_v59 }
 0xae2   :  { %v2448_v1 = vmul.f32 %v2446_v63, %v2436_v61 }
 0xae3   :  { %v2451_v26 = vmul.f32 %v2449_v0, %v2441_v59 }
 0xae4   :  { %v2450_v2 = vmul.f32 %v2448_v1, %v2436_v61  ;;  %v5157_v1 = vld [vmem:[%s7390_s10 + $0x20] sm:$0xff] }
 0xae5   :  { %v2453_v25 = vadd.f32 %v2451_v26, %v2441_v59  ;;  %v5158_v26 = vld [vmem:[%s7390_s10 + $0x28] sm:$0xff] }
 0xae6   :  { %v2452_v37 = vadd.f32 %v2450_v2, %v2436_v61  ;;  %v5153_v61 = vld [vmem:[%s7434_s21 + $0x38] sm:$0xff]  ;;  %v5921_v2 = vpack.c.bf16 %v5158_v26, %v5157_v1 }
 0xae7   :  { %v2455_v3 = vmul.f32 0.7978846, %v2453_v25  ;;  %v5917_v0 = vpack.c.bf16 %v5153_v61, %v5152_v60  ;;  %v5159_v25 = vld [vmem:[%s7390_s10 + $0x30] sm:$0xff] }
 0xae8   :  { %v2454_v4 = vmul.f32 0.7978846, %v2452_v37  ;;  %v5160_v37 = vld [vmem:[%s7390_s10 + $0x38] sm:$0xff] }
 0xae9   :  { %6058 = vtanh.f32 %v2455_v3  ;;  %v5925_v3 = vpack.c.bf16 %v5160_v37, %v5159_v25 }
 0xaea   :  { %6060 = vtanh.f32 %v2454_v4  ;;  %v5147_v4 = vld [vmem:[#allocation5 + $0x1] ss:$0 sm:$0xff] }
 0xaf3   :  { %v6059_v5 = vpop.eup %6058 }
 0xaf4   :  { %v6061_v6 = vpop.eup %6060  ;;  %v2459_v7 = vadd.f32 1.0, %v6059_v5 }
 0xaf5   :  { %v2458_v9 = vadd.f32 1.0, %v6061_v6 }
 0xaf6   :  { %v2461_v12 = vmul.f32 %v2459_v7, %v2445_v10 }
 0xaf7   :  { %v2460_v11 = vmul.f32 %v2458_v9, %v2444_v8  ;;  %v5154_v8 = vld [vmem:[#allocation7 + $0x1] ss:$0 sm:$0xff] }
 0xaf9   :  { %5621 = vmatprep.mubr.f32.mxu1 %v2460_v11 }
 0xafa   :  { %5622 = vmatmul.mubr.f32.vlgmr.msra.gmra.mrb[22].mxu1 %v2461_v12 }
 0xafb   :  { %5664 = vmatprep.mubr.msk.f32.mxu1 %vm6381_vm4, %v6380_v18 }
 0xbcd   :  { %v5623_v35 = vpop.f32.mrb[22].mxu1 }
 0xbce   :  { %v2554_v14 = vadd.f32 %v5623_v35, %v6946_v57  ;;  %v2544_v15 = vpop.f32.mrb[23].mxu1 }
 0xbcf   :  { %v2553_v16 = vadd.f32 %v2544_v15, %v6949_v58 }
 0xbd0   :  { %v7032_v17 = vadd.f32 %v5139_v13, %v2554_v14 }
 0xbd1   :  { %v7034_v19 = vadd.f32 %v5139_v13, %v2553_v16 }
 0xbd2   :  { %v2571_v20 = vsel %vm323_vm3, %v7032_v17, 0.0 }
 0xbd3   :  { %2572 = vadd.xlane.f32.xlu0 %v2571_v20  ;;  %v2568_v21 = vsel %vm323_vm3, %v7034_v19, 0.0 }
 0xbd4   :  { %2569 = vadd.xlane.f32.xlu1 %v2568_v21 }
 0xc60   :  { %v2573_v22 = vpop.xlane.xlu0 %2572 }
 0xc61   :  { %v2575_v23 = vmul.f32 0.03125, %v2573_v22  ;;  %v2570_v24 = vpop.xlane.xlu1 %2569 }
 0xc62   :  { %v2574_v27 = vmul.f32 0.03125, %v2570_v24 }
 0xc63   :  { %v2577_v57 = vsub.f32 %v7032_v17, %v2575_v23 }
 0xc64   :  { %v2576_v58 = vsub.f32 %v7034_v19, %v2574_v27 }
 0xc65   :  { %v2579_v28 = vmul.f32 %v2577_v57, %v2577_v57 }
 0xc66   :  { %v2578_v29 = vmul.f32 %v2576_v58, %v2576_v58 }
 0xc67   :  { %v2583_v30 = vsel %vm323_vm3, %v2579_v28, 0.0 }
 0xc68   :  { %2584 = vadd.xlane.f32.xlu0 %v2583_v30  ;;  %v2580_v31 = vsel %vm323_vm3, %v2578_v29, 0.0 }
 0xc69   :  { %2581 = vadd.xlane.f32.xlu1 %v2580_v31 }
 0xcf5   :  { %v2585_v44 = vpop.xlane.xlu0 %2584 }
 0xcf6   :  { %v2587_v45 = vmul.f32 0.03125, %v2585_v44  ;;  %v2582_v46 = vpop.xlane.xlu1 %2581 }
 0xcf7   :  { %v2586_v47 = vmul.f32 0.03125, %v2582_v46 }
 0xcf8   :  { %v2589_v48 = vadd.f32 1e-05, %v2587_v45 }
 0xcf9   :  { %v2588_v49 = vadd.f32 1e-05, %v2586_v47 }
 0xcfa   :  { %6062 = vrsqrt.f32 %v2589_v48 }
 0xcfb   :  { %6064 = vrsqrt.f32 %v2588_v49 }
 0xd04   :  { %v6063_v50 = vpop.eup %6062 }
 0xd05   :  { %v6065_v52 = vpop.eup %6064  ;;  %v2593_v53 = vmul.f32 %v6063_v50, %v2577_v57  ;;  %v5161_v57 = vld [vmem:[#allocation8 + $0x1] ss:$0 sm:$0xff] }
 0xd06   :  { %v2592_v54 = vmul.f32 %v6065_v52, %v2576_v58 }
 0xd07   :  { %v2601_v56 = vmul.f32 %v5141_v51, %v2593_v53 }
 0xd08   :  { %v2600_v59 = vmul.f32 %v5141_v51, %v2592_v54 }
 0xd09   :  { %v2609_v63 = vadd.f32 %v5142_v55, %v2601_v56 }
 0xd0a   :  { %v2608_v62 = vadd.f32 %v5142_v55, %v2600_v59 }
 0xd0c   :  { %5632 = vmatprep.mubr.msk.f32.mxu0 %vm323_vm3, %v2608_v62 }
 0xd0d   :  { %5633 = vmatmul.mubr.msk.f32.vlgmr.msra.gmra.mrb[22].mxu0 %vm323_vm3, %v2609_v63 }
 0xd0e   :  { %5916 = vmatpush3.bf16.msra.mxu0 %v5913_v43  ;;  %5643 = vmatprep.mubr.msk.f32.mxu0 %vm323_vm3, %v2608_v62 }
 0xd0f   :  { %5918 = vmatprep.subr.bf16.mxu0 %v5917_v0 }
 0xd12   :  { %5920 = vmatpush3.bf16.msra.mxu0 %v5917_v0 }
 0xd13   :  { %5922 = vmatprep.subr.bf16.mxu0 %v5921_v2 }
 0xd15   :  { %5644 = vmatmul.mubr.msk.f32.vlgmr.msra.gmra.mrb[24].mxu0 %vm323_vm3, %v2609_v63 }
 0xd16   :  { %5924 = vmatpush3.bf16.msra.mxu0 %v5921_v2  ;;  %5654 = vmatprep.mubr.msk.f32.mxu0 %vm323_vm3, %v2608_v62  ;;  %v6110_v2 = vld [vmem:[%s7436_s17] sm:$0xff] }
 0xd17   :  { %5926 = vmatprep.subr.bf16.mxu0 %v5925_v3 }
 0xd1a   :  { %5928 = vmatpush3.bf16.msra.mxu0 %v5925_v3 }
 0xd1b   :  { %5657 = vmatprep.subr.mxu0 %v6380_v18 }
 0xd1d   :  { %5655 = vmatmul.mubr.msk.f32.vlgmr.msra.gmra.mrb[26].mxu0 %vm323_vm3, %v2609_v63 }
 0xd1e   :  { %5659 = vmatprep.mubr.msk.f32.mxu0 %vm6381_vm4, %v6380_v18 }
 0xde0   :  { %v5634_v5 = vpop.f32.mrb[22].mxu0 }
 0xde1   :  { %v2695_v6 = vpop.f32.mrb[23].mxu0  ;;  %v2701_v35 = vadd.f32 %v5634_v5, %v5147_v4 }
 0xde2   :  { %v2696_v7 = vadd.f32 %v5147_v4, %v2695_v6 }
 0xde4   :  { %2882 = vrot.lane.b32.xlu1 %v2696_v7, %s6382_s5 }
 0xde8   :  { %v5645_v9 = vpop.f32.mrb[24].mxu0 }
 0xde9   :  { %v2789_v10 = vadd.f32 %v5645_v9, %v5154_v8  ;;  %v2783_v11 = vpop.f32.mrb[25].mxu0 }
 0xdea   :  { %v2784_v12 = vadd.f32 %v5154_v8, %v2783_v11 }
 0xdeb   :  { %2898 = vrot.lane.b32.xlu0 %v2789_v10, %s6382_s5  ;;  %5663 = vmatpush3.xpose.msk.msra.mxu1 %vm679_vm5, %v2789_v10 }
 0xdec   :  { %5658 = vmatpush3.xpose.msk.msra.mxu0 %vm679_vm5, %v2784_v12  ;;  %2896 = vrot.lane.b32.xlu1 %v2784_v12, %s6382_s5 }
 0xded   :  { %5672 = vmatprep.subr.mxu1 %v6380_v18  ;;  %5667 = vmatprep.subr.mxu0 %v6380_v18 }
 0xdee   :  { %5665 = vmatmul.mubr.msk.f32.vlgmr.msra.gmra.mrb[24].mxu1 %vm679_vm5, %v2701_v35 }
 0xdef   :  { %2900 = vrot.lane.b32.xlu0 %v2784_v12, %s6383_s0  ;;  %5660 = vmatmul.mubr.msk.f32.vlgmr.msra.gmra.mrb[28].mxu0 %vm679_vm5, %v2696_v7 }
 0xdf0   :  { %v5656_v13 = vpop.f32.mrb[26].mxu0  ;;  %2884 = vrot.lane.b32.xlu1 %v2701_v35, %s6382_s5  ;;  %5669 = vmatprep.mubr.msk.f32.mxu0 %vm6381_vm4, %v6380_v18 }
 0xdf1   :  { %v2871_v14 = vpop.f32.mrb[27].mxu0  ;;  %5674 = vmatprep.mubr.msk.f32.mxu1 %vm6381_vm4, %v6380_v18  ;;  %v7145_v31 = vadd.f32 %v5656_v13, %v5161_v57 }
 0xdf2   :  { %v7136_v28 = vadd.f32 %v5161_v57, %v2871_v14 }
 0xdf3   :  { %2886 = vrot.lane.b32.xlu0 %v2696_v7, %s6383_s0 }
 0xdf4   :  { %2902 = vrot.lane.b32.xlu1 %v2789_v10, %s6383_s0 }
 0xdf7   :  { %2904 = vrot.lane.b32.xlu0 %v2784_v12, %s6384_s3 }
 0xdf8   :  { %2888 = vrot.lane.b32.xlu1 %v2701_v35, %s6383_s0 }
 0xdfb   :  { %2890 = vrot.lane.b32.xlu0 %v2696_v7, %s6384_s3 }
 0xdfc   :  { %2906 = vrot.lane.b32.xlu1 %v2789_v10, %s6384_s3 }
 0xe00   :  { %2892 = vrot.lane.b32.xlu1 %v2701_v35, %s6384_s3 }
 0xe56   :  { %v2883_v15 = vpop.permute.xlu1 %2882 }
 0xe5d   :  { %v2899_v16 = vpop.permute.xlu0 %2898 }
 0xe5e   :  { %5673 = vmatpush3.xpose.msk.msra.mxu1 %vm679_vm5, %v2899_v16  ;;  %v2897_v20 = vpop.permute.xlu1 %2896 }
 0xe5f   :  { %5668 = vmatpush3.xpose.msk.msra.mxu0 %vm679_vm5, %v2897_v20  ;;  %5682 = vmatprep.subr.mxu1 %v6380_v18 }
 0xe60   :  { %5677 = vmatprep.subr.mxu0 %v6380_v18 }
 0xe61   :  { %v2901_v21 = vpop.permute.xlu0 %2900 }
 0xe62   :  { %v2885_v22 = vpop.permute.xlu1 %2884  ;;  %5670 = vmatmul.mubr.msk.f32.vlgmr.msra.gmra.mrb[30].mxu0 %vm679_vm5, %v2883_v15 }
 0xe63   :  { %5675 = vmatmul.mubr.msk.f32.vlgmr.msra.gmra.mrb[26].mxu1 %vm679_vm5, %v2885_v22  ;;  %5678 = vmatpush3.xpose.msk.msra.mxu0 %vm679_vm5, %v2901_v21 }
 0xe64   :  { %5679 = vmatprep.mubr.msk.f32.mxu0 %vm6381_vm4, %v6380_v18  ;;  %5687 = vmatprep.subr.mxu0 %v6380_v18 }
 0xe65   :  { %v2887_v23 = vpop.permute.xlu0 %2886  ;;  %5684 = vmatprep.mubr.msk.f32.mxu1 %vm6381_vm4, %v6380_v18 }
 0xe66   :  { %v2903_v24 = vpop.permute.xlu1 %2902  ;;  %5680 = vmatmul.mubr.msk.f32.vlgmr.msra.gmra.mrb[32].mxu0 %vm679_vm5, %v2887_v23 }
 0xe67   :  { %5683 = vmatpush3.xpose.msk.msra.mxu1 %vm679_vm5, %v2903_v24  ;;  %5689 = vmatprep.mubr.msk.f32.mxu0 %vm6381_vm4, %v6380_v18 }
 0xe68   :  { %5692 = vmatprep.subr.mxu1 %v6380_v18 }
 0xe69   :  { %v2905_v27 = vpop.permute.xlu0 %2904 }
 0xe6a   :  { %v2889_v58 = vpop.permute.xlu1 %2888  ;;  %5688 = vmatpush3.xpose.msk.msra.mxu0 %vm679_vm5, %v2905_v27 }
 0xe6b   :  { %5685 = vmatmul.mubr.msk.f32.vlgmr.msra.gmra.mrb[28].mxu1 %vm679_vm5, %v2889_v58  ;;  %5697 = vmatprep.subr.mxu0 %v6380_v18 }
 0xe6c   :  { %5694 = vmatprep.mubr.msk.f32.mxu1 %vm6381_vm4, %v6380_v18 }
 0xe6d   :  { %v2891_v29 = vpop.permute.xlu0 %2890 }
 0xe6e   :  { %v2907_v30 = vpop.permute.xlu1 %2906  ;;  %5690 = vmatmul.mubr.msk.f32.vlgmr.msra.gmra.mrb[34].mxu0 %vm679_vm5, %v2891_v29 }
 0xe6f   :  { %5698 = vmatpush3.msra.mxu0 %v7136_v28  ;;  %5693 = vmatpush3.xpose.msk.msra.mxu1 %vm679_vm5, %v2907_v30 }
 0xe70   :  { %5702 = vmatprep.subr.mxu1 %v6380_v18  ;;  %5699 = vmatprep.mubr.msk.f32.mxu0 %vm6381_vm4, %v6380_v18 }
 0xe71   :  { %5707 = vmatprep.subr.mxu0 %v6380_v18 }
 0xe72   :  { %v2893_v32 = vpop.permute.xlu1 %2892 }
 0xe73   :  { %5695 = vmatmul.mubr.msk.f32.vlgmr.msra.gmra.mrb[30].mxu1 %vm679_vm5, %v2893_v32 }
 0xe74   :  { %5703 = vmatpush3.msra.mxu1 %v7145_v31  ;;  %5704 = vmatprep.mubr.msk.f32.mxu1 %vm6381_vm4, %v6380_v18 }
 0xe75   :  { %5712 = vmatprep.subr.mxu1 %v6380_v18 }
 0xec1   :  { %v3072_v33 = vpop.f32.mrb[24].mxu1 }
 0xec2   :  { %v3521_v34 = vmul.f32 0.35355338, %v3072_v33  ;;  %v2998_v36 = vpop.f32.mrb[28].mxu0  ;;  %v5666_v38 = vpop.f32.mrb[25].mxu1 }
 0xec3   :  { %v3520_v39 = vmul.f32 0.35355338, %v2998_v36  ;;  %v5661_v41 = vpop.f32.mrb[29].mxu0 }
 0xec4   :  { %v3529_v42 = vadd.f32 %v3521_v34, %v6843_v40 }
 0xec5   :  { %v3528_v43 = vadd.f32 %v3520_v39, %v6843_v40 }
 0xec6   :  { %v3539_v44 = vsel %vm679_vm5, %v3529_v42, -inf }
 0xec7   :  { %3540 = vmax.xlane.f32.xlu1 %v3539_v44  ;;  %v3536_v45 = vsel %vm679_vm5, %v3528_v43, -inf }
 0xec8   :  { %3537 = vmax.xlane.f32.xlu0 %v3536_v45 }
 0xf35   :  { %v3146_v46 = vpop.f32.mrb[30].mxu0 }
 0xf36   :  { %v3522_v47 = vmul.f32 0.35355338, %v3146_v46  ;;  %v5671_v48 = vpop.f32.mrb[31].mxu0  ;;  %v3220_v49 = vpop.f32.mrb[26].mxu1 }
 0xf37   :  { %v3523_v50 = vmul.f32 0.35355338, %v3220_v49  ;;  %v5676_v51 = vpop.f32.mrb[27].mxu1 }
 0xf38   :  { %v3530_v52 = vadd.f32 %v3522_v47, %v6843_v40 }
 0xf39   :  { %v3294_v53 = vpop.f32.mrb[32].mxu0  ;;  %v3531_v59 = vadd.f32 %v3523_v50, %v6843_v40 }
 0xf3a   :  { %v3524_v54 = vmul.f32 0.35355338, %v3294_v53  ;;  %v5681_v55 = vpop.f32.mrb[33].mxu0  ;;  %v3542_v56 = vsel %vm679_vm5, %v3530_v52, -inf }
 0xf3b   :  { %3543 = vmax.xlane.f32.xlu0 %v3542_v56  ;;  %v3545_v62 = vsel %vm679_vm5, %v3531_v59, -inf }
 0xf3c   :  { %v3532_v60 = vadd.f32 %v3524_v54, %v6843_v40 }
 0xf3e   :  { %v3368_v61 = vpop.f32.mrb[28].mxu1  ;;  %v3548_v63 = vsel %vm679_vm5, %v3532_v60, -inf }
 0xf3f   :  { %v3525_v0 = vmul.f32 0.35355338, %v3368_v61  ;;  %v5686_v1 = vpop.f32.mrb[29].mxu1  ;;  %3546 = vmax.xlane.f32.xlu0 %v3545_v62  ;;  %3549 = vmax.xlane.f32.xlu1 %v3548_v63 }
 0xf41   :  { %v3442_v26 = vpop.f32.mrb[34].mxu0  ;;  %v7165_v25 = vadd.f32 %v6110_v2, %v3525_v0 }
 0xf42   :  { %v3526_v37 = vmul.f32 0.35355338, %v3442_v26  ;;  %v5691_v3 = vpop.f32.mrb[35].mxu0 }
 0xf43   :  { %v3551_v40 = vsel %vm679_vm5, %v7165_v25, -inf }
 0xf44   :  { %3552 = vmax.xlane.f32.xlu0 %v3551_v40  ;;  %v3534_v4 = vadd.f32 %v6110_v2, %v3526_v37 }
 0xf46   :  { %v3516_v5 = vpop.f32.mrb[30].mxu1  ;;  %v3554_v6 = vsel %vm679_vm5, %v3534_v4, -inf }
 0xf47   :  { %v3527_v7 = vmul.f32 0.35355338, %v3516_v5  ;;  %v5696_v8 = vpop.f32.mrb[31].mxu1  ;;  %3555 = vmax.xlane.f32.xlu1 %v3554_v6 }
 0xf49   :  { %v3535_v9 = vadd.f32 %v6110_v2, %v3527_v7 }
 0xf4b   :  { %v3557_v10 = vsel %vm679_vm5, %v3535_v9, -inf }
 0xf4c   :  { %3558 = vmax.xlane.f32.xlu0 %v3557_v10 }
 0xf54   :  { %v3541_v11 = vpop.xlane.xlu1 %3540 }
 0xf55   :  { %v3561_v12 = vsub.f32 %v3529_v42, %v3541_v11  ;;  %v3538_v14 = vpop.xlane.xlu0 %3537 }
 0xf56   :  { %v3560_v16 = vsub.f32 %v3528_v43, %v3538_v14 }
 0xf57   :  { %v3570_v35 = vmul.f32 1.442695, %v3561_v12 }
 0xf58   :  { %2910 = vrot.lane.b32.xlu1 %v7136_v28, %s6382_s5  ;;  %v3568_v20 = vmul.f32 1.442695, %v3560_v16 }
 0xf59   :  { %6066 = vpow2.f32 %v3570_v35  ;;  %v5188_v35 = vld [vmem:[%s7392_s12 + $0x20] sm:$0xff] }
 0xf5a   :  { %6068 = vpow2.f32 %v3568_v20 }
 0xf63   :  { %v6067_v13 = vpop.eup %6066 }
 0xf64   :  { %v3587_v15 = vsel %vm679_vm5, %v6067_v13, 0.0  ;;  %v6069_v21 = vpop.eup %6068 }
 0xf65   :  { %3588 = vadd.xlane.f32.xlu0 %v3587_v15  ;;  %v3584_v22 = vsel %vm679_vm5, %v6069_v21, 0.0 }
 0xf7c   :  { %3585 = vadd.xlane.f32.xlu1 %v3584_v22 }
 0xf8d   :  { %2916 = vrot.lane.b32.xlu1 %v7136_v28, %s6383_s0 }
 0xf91   :  { %2918 = vrot.lane.b32.xlu1 %v7145_v31, %s6383_s0 }
 0xfc8   :  { %v3544_v23 = vpop.xlane.xlu0 %3543 }
 0xfc9   :  { %v3562_v24 = vsub.f32 %v3530_v52, %v3544_v23  ;;  %v5192_v23 = vld [vmem:[%s7392_s12 + $0x28] sm:$0xff] }
 0xfcb   :  { %v3572_v27 = vmul.f32 1.442695, %v3562_v24 }
 0xfcc   :  { %v3547_v57 = vpop.xlane.xlu0 %3546  ;;  %v3550_v58 = vpop.xlane.xlu1 %3549 }
 0xfcd   :  { %6070 = vpow2.f32 %v3572_v27  ;;  %v3563_v29 = vsub.f32 %v3531_v59, %v3547_v57  ;;  %v3564_v30 = vsub.f32 %v3532_v60, %v3550_v58 }
 0xfcf   :  { %v3574_v32 = vmul.f32 1.442695, %v3563_v29  ;;  %v3576_v33 = vmul.f32 1.442695, %v3564_v30  ;;  %v5195_v29 = vld [vmem:[%s7392_s12 + $0x30] sm:$0xff] }
 0xfd1   :  { %6072 = vpow2.f32 %v3574_v32  ;;  %v3553_v48 = vpop.xlane.xlu0 %3552 }
 0xfd2   :  { %6074 = vpow2.f32 %v3576_v33  ;;  %v3565_v51 = vsub.f32 %v7165_v25, %v3553_v48 }
 0xfd4   :  { %v3556_v34 = vpop.xlane.xlu1 %3555  ;;  %v3578_v54 = vmul.f32 1.442695, %v3565_v51 }
 0xfd5   :  { %v3566_v36 = vsub.f32 %v3534_v4, %v3556_v34  ;;  %v5198_v34 = vld [vmem:[%s7392_s12 + $0x38] sm:$0xff] }
 0xfd7   :  { %v6071_v38 = vpop.eup %6070  ;;  %v3580_v39 = vmul.f32 1.442695, %v3566_v36 }
 0xfd8   :  { %v3590_v41 = vsel %vm679_vm5, %v6071_v38, 0.0  ;;  %v2911_v59 = vpop.permute.xlu1 %2910 }
 0xfd9   :  { %6076 = vpow2.f32 %v3580_v39  ;;  %3591 = vadd.xlane.f32.xlu1 %v3590_v41  ;;  %v3559_v49 = vpop.xlane.xlu0 %3558 }
 0xfda   :  { %v3567_v55 = vsub.f32 %v3535_v9, %v3559_v49 }
 0xfdb   :  { %v6073_v42 = vpop.eup %6072 }
 0xfdc   :  { %v6075_v43 = vpop.eup %6074  ;;  %v3593_v44 = vsel %vm679_vm5, %v6073_v42, 0.0  ;;  %v3582_v56 = vmul.f32 1.442695, %v3567_v55 }
 0xfdd   :  { %3594 = vadd.xlane.f32.xlu0 %v3593_v44  ;;  %v3596_v45 = vsel %vm679_vm5, %v6075_v43, 0.0 }
 0xfde   :  { %3597 = vadd.xlane.f32.xlu1 %v3596_v45 }
 0xfe3   :  { %v7182_v46 = vpop.eup %6076 }
 0xfe4   :  { %v3602_v47 = vsel %vm679_vm5, %v7182_v46, 0.0 }
 0xfe5   :  { %3603 = vadd.xlane.f32.xlu1 %v3602_v47  ;;  %v5191_v47 = vld [vmem:[#allocation10 + $0x1] ss:$0 sm:$0xff] }
 0xff2   :  { %v3589_v50 = vpop.xlane.xlu0 %3588 }
 0xff3   :  { %6078 = vrcp.f32 %v3589_v50  ;;  %2912 = vrot.lane.b32.xlu0 %v7145_v31, %s6382_s5 }
 0xff4   :  { %6080 = vpow2.f32 %v3578_v54 }
 0xff5   :  { %6082 = vpow2.f32 %v3582_v56 }
 0xff6   :  { %2924 = vrot.lane.b32.xlu1 %v7145_v31, %s6384_s3 }
 0xffd   :  { %v6079_v52 = vpop.eup %6078 }
 0xffe   :  { %v3617_v53 = vmul.f32 %v6079_v52, %v6067_v13  ;;  %v6081_v61 = vpop.eup %6080 }
 0xfff   :  { %v3599_v31 = vsel %vm679_vm5, %v6081_v61, 0.0  ;;  %v6083_v62 = vpop.eup %6082 }
0x1000   :  { %5705 = vmatmul.mubr.msk.f32.vlgmr.msra.gmra.mrb[32].mxu1 %vm679_vm5, %v3617_v53  ;;  %v3605_v1 = vsel %vm679_vm5, %v6083_v62, 0.0 }
0x1001   :  { %5714 = vmatprep.mubr.msk.f32.mxu1 %vm6381_vm4, %v6380_v18 }
0x1009   :  { %v3586_v60 = vpop.xlane.xlu1 %3585 }
0x100a   :  { %6084 = vrcp.f32 %v3586_v60 }
0x100d   :  { %v2917_v26 = vpop.permute.xlu1 %2916 }
0x1011   :  { %v2919_v2 = vpop.permute.xlu1 %2918 }
0x1012   :  { %3600 = vadd.xlane.f32.xlu0 %v3599_v31 }
0x1014   :  { %v6085_v63 = vpop.eup %6084 }
0x1015   :  { %v3616_v0 = vmul.f32 %v6085_v63, %v6069_v21 }
0x1016   :  { %3606 = vadd.xlane.f32.xlu0 %v3605_v1  ;;  %v5205_v1 = vld [vmem:[%s7396_s16 + $0x20] sm:$0xff] }
0x1017   :  { %5700 = vmatmul.mubr.msk.f32.vlgmr.msra.gmra.mrb[36].mxu0 %vm679_vm5, %v3616_v0 }
0x1018   :  { %5708 = vmatpush3.msra.mxu0 %v2911_v59  ;;  %5709 = vmatprep.mubr.msk.f32.mxu0 %vm6381_vm4, %v6380_v18 }
0x1019   :  { %5717 = vmatprep.subr.mxu0 %v6380_v18 }
0x102c   :  { %2922 = vrot.lane.b32.xlu0 %v7136_v28, %s6384_s3 }
0x1066   :  { %v3592_v25 = vpop.xlane.xlu1 %3591 }
0x1067   :  { %6086 = vrcp.f32 %v3592_v25  ;;  %v5207_v25 = vld [vmem:[%s7396_s16 + $0x30] sm:$0xff] }
0x106a   :  { %v3595_v37 = vpop.xlane.xlu0 %3594 }
0x106b   :  { %6088 = vrcp.f32 %v3595_v37  ;;  %v3598_v3 = vpop.xlane.xlu1 %3597  ;;  %v5208_v37 = vld [vmem:[%s7396_s16 + $0x38] sm:$0xff] }
0x106c   :  { %6090 = vrcp.f32 %v3598_v3  ;;  %v5933_v3 = vpack.c.bf16 %v5208_v37, %v5207_v25 }
0x106e   :  { %v2913_v40 = vpop.permute.xlu0 %2912 }
0x106f   :  { %5713 = vmatpush3.msra.mxu1 %v2913_v40  ;;  %v5212_v40 = vld [vmem:[%s7398_s18 + $0x80] sm:$0xff] }
0x1070   :  { %5722 = vmatprep.subr.mxu1 %v6380_v18 }
0x1071   :  { %v6087_v4 = vpop.eup %6086 }
0x1072   :  { %v3618_v5 = vmul.f32 %v6087_v4, %v6071_v38  ;;  %v3604_v9 = vpop.xlane.xlu1 %3603  ;;  %v5213_v4 = vld [vmem:[%s7398_s18 + $0x88] sm:$0xff] }
0x1073   :  { %6092 = vrcp.f32 %v3604_v9 }
0x1074   :  { %5710 = vmatmul.mubr.msk.f32.vlgmr.msra.gmra.mrb[38].mxu0 %vm679_vm5, %v3618_v5  ;;  %v5937_v5 = vpack.c.bf16 %v5213_v4, %v5212_v40 }
0x1075   :  { %v6089_v6 = vpop.eup %6088  ;;  %5718 = vmatpush3.msra.mxu0 %v2917_v26  ;;  %5719 = vmatprep.mubr.msk.f32.mxu0 %vm6381_vm4, %v6380_v18  ;;  %v5206_v26 = vld [vmem:[%s7396_s16 + $0x28] sm:$0xff] }
0x1076   :  { %v6091_v28 = vpop.eup %6090  ;;  %v3619_v7 = vmul.f32 %v6089_v6, %v6073_v42  ;;  %5727 = vmatprep.subr.mxu0 %v6380_v18  ;;  %v2925_v20 = vpop.permute.xlu1 %2924 }
0x1077   :  { %v3620_v8 = vmul.f32 %v6091_v28, %v6075_v43 }
0x1078   :  { %5715 = vmatmul.mubr.msk.f32.vlgmr.msra.gmra.mrb[34].mxu1 %vm679_vm5, %v3619_v7 }
0x1079   :  { %5720 = vmatmul.mubr.msk.f32.vlgmr.msra.gmra.mrb[40].mxu0 %vm679_vm5, %v3620_v8  ;;  %5723 = vmatpush3.msra.mxu1 %v2919_v2  ;;  %v5929_v2 = vpack.c.bf16 %v5206_v26, %v5205_v1 }
0x107a   :  { %5729 = vmatprep.mubr.msk.f32.mxu0 %vm6381_vm4, %v6380_v18  ;;  %5724 = vmatprep.mubr.msk.f32.mxu1 %vm6381_vm4, %v6380_v18 }
0x107b   :  { %5732 = vmatprep.subr.mxu1 %v6380_v18 }
0x107d   :  { %v6093_v12 = vpop.eup %6092 }
0x107e   :  { %v3622_v13 = vmul.f32 %v6093_v12, %v7182_v46  ;;  %v5203_v12 = vld [vmem:[%s7394_s14 + $0x1] ss:$0 sm:$0xff] }
0x109f   :  { %v3601_v10 = vpop.xlane.xlu0 %3600 }
0x10a0   :  { %6094 = vrcp.f32 %v3601_v10 }
0x10a3   :  { %v3607_v11 = vpop.xlane.xlu0 %3606 }
0x10a4   :  { %6096 = vrcp.f32 %v3607_v11 }
0x10a7   :  { %v2923_v14 = vpop.permute.xlu0 %2922 }
0x10a8   :  { %5728 = vmatpush3.msra.mxu0 %v2923_v14 }
0x10a9   :  { %5730 = vmatmul.mubr.msk.f32.vlgmr.msra.gmra.mrb[42].mxu0 %vm679_vm5, %v3622_v13  ;;  %5737 = vmatprep.subr.mxu0 %v5188_v35  ;;  %v5204_v13 = vld [vmem:[%s7395_s15 + $0x1] ss:$0 sm:$0xff] }
0x10aa   :  { %v6095_v15 = vpop.eup %6094  ;;  %5738 = vmatpush3.msra.mxu0 %v5188_v35 }
0x10ab   :  { %v3621_v16 = vmul.f32 %v6095_v15, %v6081_v61  ;;  %5742 = vmatprep.subr.mxu0 %v5192_v23 }
0x10ad   :  { %5725 = vmatmul.mubr.msk.f32.vlgmr.msra.gmra.mrb[36].mxu1 %vm679_vm5, %v3621_v16 }
0x10ae   :  { %v6097_v21 = vpop.eup %6096  ;;  %5733 = vmatpush3.msra.mxu1 %v2925_v20  ;;  %5734 = vmatprep.mubr.msk.f32.mxu1 %vm6381_vm4, %v6380_v18 }
0x10af   :  { %v3623_v22 = vmul.f32 %v6097_v21, %v6083_v62  ;;  %5930 = vmatprep.subr.bf16.mxu1 %v5929_v2 }
0x10b1   :  { %5735 = vmatmul.mubr.msk.f32.vlgmr.msra.gmra.mrb[38].mxu1 %vm679_vm5, %v3623_v22 }
0x10b2   :  { %5932 = vmatpush3.bf16.msra.mxu1 %v5929_v2 }
0x10b3   :  { %5934 = vmatprep.subr.bf16.mxu1 %v5933_v3 }
0x10b6   :  { %5936 = vmatpush3.bf16.msra.mxu1 %v5933_v3 }
0x10b7   :  { %5938 = vmatprep.subr.bf16.mxu1 %v5937_v5 }
0x10d3   :  { %v3766_v24 = vpop.f32.mrb[32].mxu1 }
0x10d4   :  { %v5706_v27 = vpop.f32.mrb[33].mxu1 }
0x10ea   :  { %v3693_v57 = vpop.f32.mrb[36].mxu0 }
0x10eb   :  { %v5701_v58 = vpop.f32.mrb[37].mxu0  ;;  %5739 = vmatprep.mubr.msk.f32.mxu0 %vm679_vm5, %v3693_v57  ;;  %v5216_v57 = vld [vmem:[%s7398_s18 + $0xa0] sm:$0xff] }
0x10ec   :  { %5740 = vmatmul.mubr.msk.f32.vlgmr.msra.gmra.mrb[44].mxu0 %vm679_vm5, %v3766_v24  ;;  %v5215_v24 = vld [vmem:[%s7398_s18 + $0x98] sm:$0xff]  ;;  %v5217_v58 = vld [vmem:[%s7398_s18 + $0xa8] sm:$0xff] }
0x10ed   :  { %5743 = vmatpush3.msra.mxu0 %v5192_v23  ;;  %v5214_v23 = vld [vmem:[%s7398_s18 + $0x90] sm:$0xff] }
0x10ee   :  { %5747 = vmatprep.subr.mxu0 %v5195_v29  ;;  %v5941_v27 = vpack.c.bf16 %v5215_v24, %v5214_v23  ;;  %v4899_v23 = vld [vmem:[%s7403_s23] sm:$0xff]  ;;  %v4900_v24 = vld [vmem:[%s7403_s23 + $0x8] sm:$0xff] }
0x1147   :  { %v3839_v30 = vpop.f32.mrb[38].mxu0 }
0x1148   :  { %v5711_v32 = vpop.f32.mrb[39].mxu0  ;;  %5744 = vmatprep.mubr.msk.f32.mxu0 %vm679_vm5, %v3839_v30  ;;  %v5218_v30 = vld [vmem:[%s7398_s18 + $0xb0] sm:$0xff] }
0x1149   :  { %v5219_v32 = vld [vmem:[%s7398_s18 + $0xb8] sm:$0xff] }
0x114b   :  { %v3912_v33 = vpop.f32.mrb[34].mxu1 }
0x114c   :  { %v3985_v36 = vpop.f32.mrb[40].mxu0  ;;  %v5716_v38 = vpop.f32.mrb[35].mxu1  ;;  %5745 = vmatmul.mubr.msk.f32.vlgmr.msra.gmra.mrb[44].mxu0 %vm679_vm5, %v3912_v33  ;;  %v5949_v33 = vpack.c.bf16 %v5219_v32, %v5218_v30 }
0x114d   :  { %v5721_v39 = vpop.f32.mrb[41].mxu0  ;;  %5749 = vmatprep.mubr.msk.f32.mxu0 %vm679_vm5, %v3985_v36  ;;  %5748 = vmatpush3.msra.mxu0 %v5195_v29  ;;  %v5945_v29 = vpack.c.bf16 %v5217_v58, %v5216_v57  ;;  %v5221_v36 = vld [vmem:[%s7398_s18 + $0xc8] sm:$0xff]  ;;  %v6385_v57 = vmov 0.0|0.0   ;;  %v5970_v58 = vpack.c.bf16 %v4900_v24, %v4899_v23  ;;  %v5233_v24 = vld [vmem:[#allocation17] ss:$0 sm:$0xff] }
0x114e   :  { %5752 = vmatprep.subr.mxu0 %v5198_v34  ;;  %v5222_v39 = vld [vmem:[%s7398_s18 + $0xd0] sm:$0xff] }
0x117c   :  { %v4131_v41 = vpop.f32.mrb[42].mxu0 }
0x117d   :  { %v5731_v42 = vpop.f32.mrb[43].mxu0 }
0x1180   :  { %v4058_v43 = vpop.f32.mrb[36].mxu1 }
0x1181   :  { %v5726_v44 = vpop.f32.mrb[37].mxu1  ;;  %5750 = vmatmul.mubr.msk.f32.vlgmr.msra.gmra.mrb[44].mxu0 %vm679_vm5, %v4058_v43  ;;  %v5224_v43 = vld [vmem:[%s7398_s18 + $0xe0] sm:$0xff] }
0x1182   :  { %5753 = vmatpush3.msra.mxu0 %v5198_v34  ;;  %5754 = vmatprep.mubr.msk.f32.mxu0 %vm679_vm5, %v4131_v41  ;;  %v5220_v34 = vld [vmem:[%s7398_s18 + $0xc0] sm:$0xff]  ;;  %v5223_v41 = vld [vmem:[%s7398_s18 + $0xd8] sm:$0xff]  ;;  %v5225_v44 = vld [vmem:[%s7398_s18 + $0xe8] sm:$0xff] }
0x1183   :  { %v5953_v38 = vpack.c.bf16 %v5221_v36, %v5220_v34  ;;  %v5957_v42 = vpack.c.bf16 %v5223_v41, %v5222_v39  ;;  %5969 = vmatprep.subr.bf16.mxu0 %v6385_v57 }
0x1184   :  { %v4204_v45 = vpop.f32.mrb[38].mxu1 }
0x1185   :  { %v5736_v46 = vpop.f32.mrb[39].mxu1 }
0x1186   :  { %v5226_v46 = vld [vmem:[%s7398_s18 + $0xf0] sm:$0xff] }
0x1189   :  { %5755 = vmatmul.mubr.msk.f32.vlgmr.msra.gmra.mrb[44].mxu0 %vm679_vm5, %v4204_v45  ;;  %v5961_v45 = vpack.c.bf16 %v5225_v44, %v5224_v43 }
0x118a   :  { %5811 = vmatprep.mubr.msk.f32.mxu0 %vm6381_vm4, %v6380_v18  ;;  %5971 = vmatpush3.bf16.msra.mxu0 %v5970_v58 }
0x118b   :  { %5972 = vmatprep.subr.bf16.mxu0 %v6385_v57 }
0x125c   :  { %v5756_v48 = vpop.f32.mrb[44].mxu0 }
0x125d   :  { %v5983_v49 = vadd.f32 %v5756_v48, %v5191_v47  ;;  %v4545_v50 = vpop.f32.mrb[45].mxu0 }
0x125e   :  { %v5984_v51 = vadd.f32 %v5191_v47, %v4545_v50  ;;  %v5227_v47 = vld [vmem:[%s7398_s18 + $0xf8] sm:$0xff] }
0x125f   :  { %v7243_v52 = vadd.f32 %v5983_v49, %v7032_v17  ;;  %v5965_v48 = vpack.c.bf16 %v5227_v47, %v5226_v46  ;;  %v5209_v49 = vld [vmem:[#allocation11 + $0x1] ss:$0 sm:$0xff] }
0x1260   :  { %v7246_v53 = vadd.f32 %v5984_v51, %v7034_v19 }
0x1261   :  { %v4565_v54 = vsel %vm323_vm3, %v7243_v52, 0.0 }
0x1262   :  { %4566 = vadd.xlane.f32.xlu1 %v4565_v54  ;;  %v4562_v55 = vsel %vm323_vm3, %v7246_v53, 0.0 }
0x1263   :  { %4563 = vadd.xlane.f32.xlu0 %v4562_v55 }
0x12ef   :  { %v4567_v56 = vpop.xlane.xlu1 %4566 }
0x12f0   :  { %v4569_v59 = vmul.f32 0.03125, %v4567_v56  ;;  %v4564_v60 = vpop.xlane.xlu0 %4563 }
0x12f1   :  { %v4568_v61 = vmul.f32 0.03125, %v4564_v60 }
0x12f2   :  { %v4571_v31 = vsub.f32 %v7243_v52, %v4569_v59 }
0x12f3   :  { %v4570_v17 = vsub.f32 %v7246_v53, %v4568_v61 }
0x12f4   :  { %v4573_v63 = vmul.f32 %v4571_v31, %v4571_v31 }
0x12f5   :  { %v4572_v62 = vmul.f32 %v4570_v17, %v4570_v17 }
0x12f6   :  { %v4577_v0 = vsel %vm323_vm3, %v4573_v63, 0.0 }
0x12f7   :  { %v4574_v19 = vsel %vm323_vm3, %v4572_v62, 0.0 }
0x12f8   :  { %4575 = vadd.xlane.f32.xlu0 %v4574_v19 }
0x12fc   :  { %4578 = vadd.xlane.f32.xlu0 %v4577_v0 }
0x1385   :  { %v4576_v6 = vpop.xlane.xlu0 %4575 }
0x1386   :  { %v4580_v28 = vmul.f32 0.03125, %v4576_v6  ;;  %v5228_v6 = vld [vmem:[#allocation13 + $0x1] ss:$0 sm:$0xff] }
0x1388   :  { %v4582_v7 = vadd.f32 1e-05, %v4580_v28 }
0x1389   :  { %v4579_v8 = vpop.xlane.xlu0 %4578 }
0x138a   :  { %6098 = vrsqrt.f32 %v4582_v7  ;;  %v4581_v9 = vmul.f32 0.03125, %v4579_v8 }
0x138c   :  { %v4583_v10 = vadd.f32 1e-05, %v4581_v9 }
0x138e   :  { %6100 = vrsqrt.f32 %v4583_v10 }
0x1394   :  { %v6099_v11 = vpop.eup %6098 }
0x1395   :  { %v4586_v35 = vmul.f32 %v6099_v11, %v4570_v17 }
0x1397   :  { %v4594_v14 = vmul.f32 %v5203_v12, %v4586_v35 }
0x1398   :  { %v6101_v15 = vpop.eup %6100 }
0x1399   :  { %v4587_v16 = vmul.f32 %v6101_v15, %v4571_v31  ;;  %v4602_v20 = vadd.f32 %v5204_v13, %v4594_v14 }
0x139b   :  { %v4595_v21 = vmul.f32 %v5203_v12, %v4587_v16  ;;  %5765 = vmatprep.mubr.msk.f32.mxu1 %vm323_vm3, %v4602_v20 }
0x139d   :  { %v4603_v22 = vadd.f32 %v5204_v13, %v4595_v21 }
0x139f   :  { %5766 = vmatmul.mubr.msk.f32.vlgmr.msra.gmra.mrb[40].mxu1 %vm323_vm3, %v4603_v22 }
0x13a0   :  { %5940 = vmatpush3.bf16.msra.mxu1 %v5937_v5 }
0x13a1   :  { %5942 = vmatprep.subr.bf16.mxu1 %v5941_v27 }
0x13a4   :  { %5944 = vmatpush3.bf16.msra.mxu1 %v5941_v27  ;;  %v4901_v27 = vld [vmem:[%s7403_s23 + $0x10] sm:$0xff] }
0x13a5   :  { %5946 = vmatprep.subr.bf16.mxu1 %v5945_v29 }
0x13a8   :  { %5948 = vmatpush3.bf16.msra.mxu1 %v5945_v29  ;;  %v4902_v29 = vld [vmem:[%s7403_s23 + $0x18] sm:$0xff] }
0x13a9   :  { %5950 = vmatprep.subr.bf16.mxu1 %v5949_v33  ;;  %v5973_v30 = vpack.c.bf16 %v4902_v29, %v4901_v27 }
0x13ab   :  { %5974 = vmatpush3.bf16.msra.mxu0 %v5973_v30 }
0x13ac   :  { %5952 = vmatpush3.bf16.msra.mxu1 %v5949_v33  ;;  %5975 = vmatprep.subr.bf16.mxu0 %v6385_v57 }
0x13ad   :  { %5954 = vmatprep.subr.bf16.mxu1 %v5953_v38 }
0x13b0   :  { %5956 = vmatpush3.bf16.msra.mxu1 %v5953_v38 }
0x13b1   :  { %5958 = vmatprep.subr.bf16.mxu1 %v5957_v42 }
0x13b4   :  { %5960 = vmatpush3.bf16.msra.mxu1 %v5957_v42  ;;  %v5229_v42 = vld [vmem:[#allocation14] ss:$0 sm:$0xff] }
0x13b5   :  { %5962 = vmatprep.subr.bf16.mxu1 %v5961_v45 }
0x13b8   :  { %5964 = vmatpush3.bf16.msra.mxu1 %v5961_v45  ;;  %v5230_v45 = vld [vmem:[#allocation16] ss:$0 sm:$0xff] }
0x13b9   :  { %5966 = vmatprep.subr.bf16.mxu1 %v5965_v48 }
0x13bc   :  { %5968 = vmatpush3.bf16.msra.mxu1 %v5965_v48 }
0x1472   :  { %v5767_v50 = vpop.f32.mrb[40].mxu1 }
0x1473   :  { %v4695_v51 = vadd.f32 %v5767_v50, %v5209_v49  ;;  %v4689_v54 = vpop.f32.mrb[41].mxu1 }
0x1474   :  { %v4690_v55 = vadd.f32 %v5209_v49, %v4689_v54 }
0x1475   :  { %v4701_v56 = vmul.f32 0.044715, %v4695_v51  ;;  %v4699_v3 = vmul.f32 0.5, %v4695_v51 }
0x1476   :  { %v4700_v59 = vmul.f32 0.044715, %v4690_v55  ;;  %v4698_v25 = vmul.f32 0.5, %v4690_v55 }
0x1477   :  { %v4703_v60 = vmul.f32 %v4701_v56, %v4695_v51 }
0x1478   :  { %v4702_v61 = vmul.f32 %v4700_v59, %v4690_v55 }
0x1479   :  { %v4705_v31 = vmul.f32 %v4703_v60, %v4695_v51 }
0x147a   :  { %v4704_v17 = vmul.f32 %v4702_v61, %v4690_v55 }
0x147b   :  { %v4707_v62 = vadd.f32 %v4705_v31, %v4695_v51 }
0x147c   :  { %v4706_v19 = vadd.f32 %v4704_v17, %v4690_v55 }
0x147d   :  { %v4709_v63 = vmul.f32 0.7978846, %v4707_v62 }
0x147e   :  { %v4708_v0 = vmul.f32 0.7978846, %v4706_v19 }
0x147f   :  { %6102 = vtanh.f32 %v4709_v63 }
0x1480   :  { %6104 = vtanh.f32 %v4708_v0 }
0x1489   :  { %v6103_v1 = vpop.eup %6102 }
0x148a   :  { %v6105_v26 = vpop.eup %6104  ;;  %v4713_v2 = vadd.f32 1.0, %v6103_v1 }
0x148b   :  { %v4712_v37 = vadd.f32 1.0, %v6105_v26 }
0x148c   :  { %v4715_v4 = vmul.f32 %v4713_v2, %v4699_v3 }
0x148d   :  { %v4714_v40 = vmul.f32 %v4712_v37, %v4698_v25 }
0x148f   :  { %5800 = vmatprep.mubr.f32.mxu1 %v4714_v40 }
0x1490   :  { %5801 = vmatmul.mubr.f32.vlgmr.msra.gmra.mrb[42].mxu1 %v4715_v4 }
0x1563   :  { %v5802_v5 = vpop.f32.mrb[42].mxu1 }
0x1564   :  { %v4809_v28 = vadd.f32 %v5802_v5, %v7243_v52  ;;  %v4799_v7 = vpop.f32.mrb[43].mxu1  ;;  %v4895_v5 = vld [vmem:[%s7402_s22] sm:$0xff] }
0x1565   :  { %v4808_v8 = vadd.f32 %v4799_v7, %v7246_v53 }
0x1566   :  { %v4819_v9 = vadd.f32 %v5228_v6, %v4809_v28 }
0x1567   :  { %v4818_v10 = vadd.f32 %v5228_v6, %v4808_v8  ;;  %v4896_v6 = vld [vmem:[%s7402_s22 + $0x8] sm:$0xff] }
0x1568   :  { %v4825_v11 = vsel %vm323_vm3, %v4819_v9, 0.0 }
0x1569   :  { %4826 = vadd.xlane.f32.xlu0 %v4825_v11  ;;  %v4822_v12 = vsel %vm323_vm3, %v4818_v10, 0.0  ;;  %v5976_v11 = vpack.c.bf16 %v4896_v6, %v4895_v5 }
0x156a   :  { %4823 = vadd.xlane.f32.xlu1 %v4822_v12  ;;  %v4897_v12 = vld [vmem:[%s7402_s22 + $0x10] sm:$0xff] }
0x15f6   :  { %v4827_v35 = vpop.xlane.xlu0 %4826 }
0x15f7   :  { %v4829_v13 = vmul.f32 0.03125, %v4827_v35  ;;  %v4824_v14 = vpop.xlane.xlu1 %4823  ;;  %v4898_v35 = vld [vmem:[%s7402_s22 + $0x18] sm:$0xff]  ;;  %s6386_s22 = smov [#allocation19]  }
0x15f8   :  { %v4828_v15 = vmul.f32 0.03125, %v4824_v14  ;;  %s5069_s6 = sshll.u32 %s6386_s22, 4  ;;  %s5070_s6 = int_to_ptr.vmem [resolvable:$true] %s5069_s6 }
0x15f9   :  { %v4831_v16 = vsub.f32 %v4819_v9, %v4829_v13  ;;  %s6331_s13 = scalar_lea.vmem %s5070_s6, 32  ;;  %p6336_p11 = scmp.lt.s32.totalorder %s5070_s6, %s5070_s6 }
0x15fa   :  { %v4830_v20 = vsub.f32 %v4818_v10, %v4828_v15  ;;  %p6332_p10 = scmp.ne.s32.totalorder %s5070_s6, %s6331_s13  ;;  %p6337_p12 = scmp.lt.s32.totalorder %s6331_s13, %s6331_s13 }
0x15fb   :  { %v4833_v21 = vmul.f32 %v4831_v16, %v4831_v16 }
0x15fc   :  { %v4832_v22 = vmul.f32 %v4830_v20, %v4830_v20  ;;  %p6338_p13 = por %p6337_p12, %p6336_p11 }
0x15fd   :  { %v4837_v52 = vsel %vm323_vm3, %v4833_v21, 0.0 }
0x15fe   :  { %4838 = vadd.xlane.f32.xlu0 %v4837_v52  ;;  %v4834_v53 = vsel %vm323_vm3, %v4832_v22, 0.0  ;;  %p6339_p0 = pnand %p6338_p13, %p6332_p10 }
0x15ff   :  { %4835 = vadd.xlane.f32.xlu1 %v4834_v53 }
0x168b   :  { %v4839_v32 = vpop.xlane.xlu0 %4838 }
0x168c   :  { %v4841_v33 = vmul.f32 0.03125, %v4839_v32  ;;  %v4836_v34 = vpop.xlane.xlu1 %4835 }
0x168d   :  { %v4840_v36 = vmul.f32 0.03125, %v4836_v34 }
0x168e   :  { %v4843_v38 = vadd.f32 1e-05, %v4841_v33 }
0x168f   :  { %v4842_v39 = vadd.f32 1e-05, %v4840_v36 }
0x1690   :  { %6106 = vrsqrt.f32 %v4843_v38 }
0x1691   :  { %6108 = vrsqrt.f32 %v4842_v39 }
0x169a   :  { %v6107_v41 = vpop.eup %6106 }
0x169b   :  { %v6109_v43 = vpop.eup %6108  ;;  %v4847_v44 = vmul.f32 %v6107_v41, %v4831_v16  ;;  %v5979_v16 = vpack.c.bf16 %v4898_v35, %v4897_v12 }
0x169c   :  { %v4846_v46 = vmul.f32 %v6109_v43, %v4830_v20 }
0x169d   :  { %v4855_v47 = vmul.f32 %v5229_v42, %v4847_v44 }
0x169e   :  { %v4854_v48 = vmul.f32 %v5229_v42, %v4846_v46 }
0x169f   :  { %v4863_v49 = vadd.f32 %v5230_v45, %v4855_v47 }
0x16a0   :  { %v4862_v50 = vadd.f32 %v5230_v45, %v4854_v48 }
0x16a1   :  { %v4888_v51 = vsel %vm323_vm3, %v4863_v49, -inf  ;;  %v4871_v54 = vsel %vm323_vm3, %v4863_v49, 0.0 }
0x16a2   :  { %v4881_v55 = vsel %vm323_vm3, %v4862_v50, -inf  ;;  %v4889_v56 = vrot.slane %v4888_v51, 4  ;;  %v4864_v59 = vsel %vm323_vm3, %v4862_v50, 0.0  ;;  %v4872_v60 = vrot.slane %v4871_v54, 4 }
0x16a3   :  { %v4882_v61 = vrot.slane %v4881_v55, 4  ;;  %v4865_v31 = vrot.slane %v4864_v59, 4 }
0x16a4   :  { %v4890_v17 = vmax.f32 %v4888_v51, %v4889_v56  ;;  %v4873_v62 = vadd.f32 %v4872_v60, %v4871_v54 }
0x16a5   :  { %v4883_v19 = vmax.f32 %v4881_v55, %v4882_v61  ;;  %v4866_v63 = vadd.f32 %v4865_v31, %v4864_v59 }
0x16a6   :  { %v4891_v0 = vrot.slane %v4890_v17, 2  ;;  %v4874_v1 = vrot.slane %v4873_v62, 2 }
0x16a7   :  { %v4884_v26 = vrot.slane %v4883_v19, 2  ;;  %v4867_v2 = vrot.slane %v4866_v63, 2 }
0x16a8   :  { %v4892_v25 = vmax.f32 %v4890_v17, %v4891_v0  ;;  %v4875_v37 = vadd.f32 %v4874_v1, %v4873_v62 }
0x16a9   :  { %v4885_v3 = vmax.f32 %v4883_v19, %v4884_v26  ;;  %v4868_v40 = vadd.f32 %v4867_v2, %v4866_v63 }
0x16aa   :  { %v4893_v4 = vrot.slane %v4892_v25, 1  ;;  %v4876_v8 = vrot.slane %v4875_v37, 1 }
0x16ab   :  { %v4886_v28 = vrot.slane %v4885_v3, 1  ;;  %v4869_v7 = vrot.slane %v4868_v40, 1 }
0x16ac   :  { %v4894_v9 = vmax.f32 %v4892_v25, %v4893_v4  ;;  %v4877_v15 = vadd.f32 %v4876_v8, %v4875_v37 }
0x16ad   :  { %v4887_v10 = vmax.f32 %v4885_v3, %v4886_v28  ;;  %v4870_v14 = vadd.f32 %v4869_v7, %v4868_v40 }
0x16ae   :  { %v4880_v21 = vmul.f32 0.125, %v4877_v15 }
0x16af   :  { %v4906_v13 = vsel %vm4905_vm6, %v4894_v9, %v4887_v10  ;;  %v4879_v20 = vmul.f32 0.125, %v4870_v14 }
0x16b0   :  { %5812 = vmatmul.mubr.msk.f32.vlgmr.msra.gmra.mrb[46].mxu0 %vm323_vm3, %v4906_v13 }
0x16b1   :  { %5977 = vmatpush3.bf16.msra.mxu0 %v5976_v11  ;;  %5822 = vmatprep.mubr.msk.f32.mxu0 %vm6381_vm4, %v6380_v18  ;;  %v4981_v22 = vsel %vm4905_vm6, %v4880_v21, %v4879_v20 }
0x16b2   :  { %5978 = vmatprep.subr.bf16.mxu0 %v6385_v57 }
0x16b5   :  { %5980 = vmatpush3.bf16.msra.mxu0 %v5979_v16 }
0x16b8   :  { %5823 = vmatmul.mubr.msk.f32.vlgmr.msra.gmra.mrb[48].mxu0 %vm323_vm3, %v4981_v22 }
0x1783   :  { %v4975_v52 = vpop.f32.mrb[46].mxu0 }
0x1784   :  { %v5813_v53 = vpop.f32.mrb[47].mxu0 }
0x178b   :  { %v5050_v23 = vpop.f32.mrb[48].mxu0 }
0x178c   :  { %v5051_v27 = vadd.f32 %v5050_v23, %v4975_v52  ;;  %v5824_v58 = vpop.f32.mrb[49].mxu0 }
0x178e   :  { %v5061_v29 = vadd.f32 %v5233_v24, %v5051_v27 }
0x1790   :  { %5062 = vst [vmem:[#allocation19] sm:$0x3] %v5061_v29 }
0x1791   :  { %6342 = shalt.err (!%p6339_p0)
}
0x1792   :  { %s7437_s29 = sld [smem:[#allocation37_spill]] }
0x1798   :  { %s6343_s11 = scalar_lea.hbm %s7437_s29, 32 }
0x1799   :  { %p6344_p1 = scmp.ne.s32.totalorder %s7437_s29, %s6343_s11  ;;  %p6347_p2 = scmp.lt.u32.totalorder %s6343_s11, %s7437_s29 }
0x179b   :  { %p6349_p3 = pnand %p6347_p2, %p6344_p1 }
0x179d   :  { %6352 = shalt.err (!%p6349_p3)
}
0x179e   :  { %5072 = dma.vmem_to_hbm [thread:$0]  %s5070_s6, 32, %s7437_s29, [#allocation4]  }
0x179f   :  { %6365 = dma.done.wait [#allocation4], 32  }
0x17a0   :  { %6366 = vsyncadd [#allocation4], 4294967264 }
0x17a1   :  { %5076 = vsyncpa [#allocation3], 1 }
0x17a2   :  { %5077 = vsyncpa [#allocation6], 1 }
0x17a3   :  { %5078 = vsyncpa [#allocation9], 1 }
0x17a4   :  { %5079 = vsyncpa [#allocation12], 1 }
0x17a5   :  { %5080 = vsyncpa [#allocation15], 1 }
0x17a6   :  { %5081 = vsyncpa [#allocation18], 1 }
0x17a7   :  { %5082 = vsyncpa [#allocation4], 1 }

</bundles_post_ra>
